<compile_context>
chip_gen: v7x
topology: tpu7x:2x2x1
jax: 0.10.0
libtpu: 0.0.40
codegen_flags: <defaults>
</compile_context>

<pallas_src>
import jax
import jax.numpy as jnp
from jax import lax
from jax.experimental import pallas as pl
from jax.experimental.pallas import tpu as pltpu

D_IN = 1024          # input feature dim of ecg / cxr
D = 64               # d_model
NHEAD = 8
HEAD_DIM = D // NHEAD
D_FF = 2048          # TransformerEncoderLayer default dim_feedforward
LN_EPS = 1e-5


# --------------------------------------------------------------------------- #
# small math helpers (used inside the kernels and by the pure-JAX reference)  #
# --------------------------------------------------------------------------- #
def _layernorm(x, g, b, eps=LN_EPS):
    mu = jnp.mean(x, axis=-1, keepdims=True)
    var = jnp.mean((x - mu) ** 2, axis=-1, keepdims=True)
    return (x - mu) * lax.rsqrt(var + eps) * g + b


def _log_softmax(x):
    m = jnp.max(x, axis=-1, keepdims=True)
    z = x - m
    return z - jnp.log(jnp.sum(jnp.exp(z), axis=-1, keepdims=True))


# --------------------------------------------------------------------------- #
# kernel 1: shared_private front end + per-row JS-divergence contribution     #
# --------------------------------------------------------------------------- #
def _frontend_kernel(ecg_ref, cxr_ref, w_in_e_ref, w_in_c_ref, vec_ref,
                     blkmean_ref, w_priv_ref, w_sh_ref, out_ref, kl_ref):
    b_in = vec_ref[0:1, :]
    ln_g = vec_ref[1:2, :]
    ln_b = vec_ref[2:3, :]
    b_pr = vec_ref[3:4, :]
    b_sh = vec_ref[4:5, :]

    # two half-size bf16 matmuls (no (tb, 2048) concat, half the weight VMEM/DMA)
    h_e = jnp.dot(ecg_ref[...].astype(jnp.bfloat16), w_in_e_ref[...],
                  preferred_element_type=jnp.float32)
    h_c = jnp.dot(cxr_ref[...].astype(jnp.bfloat16), w_in_c_ref[...],
                  preferred_element_type=jnp.float32)
    h = jnp.maximum(jnp.concatenate([h_e, h_c], axis=-1) + b_in, 0.0)   # (tb, 128)

    # per-stream LayerNorm(64) on the packed (tb, 128) tensor via a block-mean
    # matmul; blk_mean is a VMEM-resident constant (shipped, not rebuilt per step).
    blk = blkmean_ref[...]
    mu = jnp.dot(h, blk, preferred_element_type=jnp.float32)
    d = h - mu
    var = jnp.dot(d * d, blk, preferred_element_type=jnp.float32)
    hn = d * lax.rsqrt(var + LN_EPS) * ln_g + ln_b

    priv = jax.nn.sigmoid(
        jnp.dot(hn, w_priv_ref[...], preferred_element_type=jnp.float32) + b_pr)
    sh = jax.nn.sigmoid(
        jnp.dot(hn, w_sh_ref[...], preferred_element_type=jnp.float32) + b_sh)

    # packed intermediates: [priv_ecg | priv_cxr | shared_ecg | shared_cxr]
    # (two 128-lane slab stores -> unmasked vst, no concat copy)
    out_ref[:, 0:2 * D] = priv
    out_ref[:, 2 * D:4 * D] = sh

    # per-row JS-divergence contribution; alpha = sum(rows[:B]) / B in the wrapper
    sh_e = sh[:, 0:D]
    sh_c = sh[:, D:2 * D]
    lsp = _log_softmax(sh_e)
    lsq = _log_softmax(sh_c)
    lsm = _log_softmax((sh_e + sh_c) * 0.5)
    kl = (0.5 * jnp.sum(jnp.exp(lsp) * (lsp - lsm), axis=-1, keepdims=True)
          + 0.5 * jnp.sum(jnp.exp(lsq) * (lsq - lsm), axis=-1, keepdims=True))
    kl_ref[...] = jnp.broadcast_to(kl, kl_ref.shape)


# --------------------------------------------------------------------------- #
# kernel 2: alignment mixing + TransformerEncoder(1 layer) + fusion1          #
# --------------------------------------------------------------------------- #
def _transformer_kernel(alpha_ref, inter_ref, wt_ref, wqkv_ref, bqkv_ref, wo_ref,
                        tvec_ref, wff1_ref, bff1_ref, wff2_ref, wf1a_ref,
                        wf1b_ref, fvec_ref, agg3_ref, agg3t_ref, out_ref):
    tb = inter_ref.shape[0]
    alpha = alpha_ref[0, 0]

    inter = inter_ref[...]
    priv_e = inter[:, 0:D]
    priv_c = inter[:, D:2 * D]
    sh = inter[:, 2 * D:4 * D]            # [sh_e | sh_c]
    sh_e = inter[:, 2 * D:3 * D]
    sh_c = inter[:, 3 * D:4 * D]

    # f = (1-alpha)*(sh_e @ ecg_w + sh_c @ cxr_w) + alpha*sh_e + alpha*sh_c
    ab = jnp.dot(sh, wt_ref[...], preferred_element_type=jnp.float32)
    f = (1.0 - alpha) * ab + alpha * (sh_e + sh_c)

    # seq = [priv_e, priv_c, f] stacked along rows -> (3*tb, 64)
    x = jnp.concatenate([priv_e, priv_c, f], axis=0)

    # fused QKV projection: one (3tb, 64) x (64, 192) matmul
    qkv = jnp.dot(x, wqkv_ref[...], preferred_element_type=jnp.float32) + bqkv_ref[...]
    q = qkv[:, 0:D]
    k = qkv[:, D:2 * D]
    v = qkv[:, 2 * D:3 * D]

    # stream-rotated K / V: row-block i of kB holds k_{(i+1)%3}, kC holds k_{(i+2)%3}
    kB = jnp.concatenate([k[tb:], k[:tb]], axis=0)
    kC = jnp.concatenate([k[2 * tb:], k[:2 * tb]], axis=0)
    vB = jnp.concatenate([v[tb:], v[:tb]], axis=0)
    vC = jnp.concatenate([v[2 * tb:], v[:2 * tb]], axis=0)

    scale = 1.0 / (HEAD_DIM ** 0.5)

    # lane-dense scores: (3tb, 192) q*k slab -> (3tb, 24) per-head scores, where
    # lane group g (8 lanes) holds scores of query stream i vs key stream (i+g)%3.
    qk = jnp.concatenate([q * k, q * kB, q * kC], axis=-1)          # (3tb, 192)
    s = jnp.dot(qk, agg3_ref[...], preferred_element_type=jnp.float32) * scale
    s0 = s[:, 0:NHEAD]
    s1 = s[:, NHEAD:2 * NHEAD]
    s2 = s[:, 2 * NHEAD:3 * NHEAD]
    m = jnp.maximum(jnp.maximum(s0, s1), s2)
    e0 = jnp.exp(s0 - m)
    e1 = jnp.exp(s1 - m)
    e2 = jnp.exp(s2 - m)
    inv = 1.0 / (e0 + e1 + e2)
    w = jnp.concatenate([e0 * inv, e1 * inv, e2 * inv], axis=-1)    # (3tb, 24)
    wf = jnp.dot(w, agg3t_ref[...], preferred_element_type=jnp.float32)  # (3tb,192)
    ctx = wf[:, 0:D] * v + wf[:, D:2 * D] * vB + wf[:, 2 * D:3 * D] * vC  # (3tb,64)

    bo = tvec_ref[0:1, :]
    ln1_g = tvec_ref[1:2, :]
    ln1_b = tvec_ref[2:3, :]
    ln2_g = tvec_ref[3:4, :]
    ln2_b = tvec_ref[4:5, :]
    b_ff2 = tvec_ref[5:6, :]

    attn = jnp.dot(ctx, wo_ref[...], preferred_element_type=jnp.float32) + bo
    y = _layernorm(x + attn, ln1_g, ln1_b)

    # FFN: bf16 operands on the MXU, f32 accumulation
    hff = jnp.maximum(
        jnp.dot(y.astype(jnp.bfloat16), wff1_ref[...],
                preferred_element_type=jnp.float32) + bff1_ref[...], 0.0)
    ff = jnp.dot(hff.astype(jnp.bfloat16), wff2_ref[...],
                 preferred_element_type=jnp.float32) + b_ff2
    z = _layernorm(y + ff, ln2_g, ln2_b)

    # fusion1: concat(z0, z1, z2) folded into row-slices of f1a_w; second linear is
    # zero-padded to 128 output lanes so the final store is unmasked (lane-dense).
    t = (jnp.dot(z[0:tb], wf1a_ref[0:D, :], preferred_element_type=jnp.float32)
         + jnp.dot(z[tb:2 * tb], wf1a_ref[D:2 * D, :],
                   preferred_element_type=jnp.float32)
         + jnp.dot(z[2 * tb:3 * tb], wf1a_ref[2 * D:3 * D, :],
                   preferred_element_type=jnp.float32)
         + fvec_ref[0:1, :])
    o = jnp.dot(jnp.maximum(t, 0.0), wf1b_ref[...],
                preferred_element_type=jnp.float32) + fvec_ref[1:2, :]
    out_ref[...] = o


# --------------------------------------------------------------------------- #
# wrapper: batch tiling, global-alpha reduction between the two kernels       #
# --------------------------------------------------------------------------- #
def _tpu_kind():
    try:
        return jax.devices()[0].device_kind.lower()
    except Exception:
        return ""


def imfm_pallas(ecg, cxr, packed, block_b=None):
    """IMFM forward on TPU.  ecg/cxr: (B, 1024) float32 -> (B, 64) float32."""
    B = ecg.shape[0]
    kind = _tpu_kind()
    is_v7 = "v7" in kind

    if block_b is None:
        # kernel 1 is HBM-bound (8 KiB/row of input); big tiles reach the roofline.
        # v7x has half the VMEM and two TensorCores -> smaller tile + >=2 grid steps.
        block_b = 256 if is_v7 else 512

    b8 = ((B + 7) // 8) * 8
    tb = max(8, min(block_b, b8))
    if is_v7 and b8 > 8 and b8 // tb < 2:
        # guarantee >=2 grid steps so ("parallel",) can shard across both v7x TCs
        tb = max(8, ((b8 // 2 + 7) // 8) * 8)
    Bp = ((B + tb - 1) // tb) * tb
    if Bp != B:
        ecg = jnp.pad(ecg, ((0, Bp - B), (0, 0)))
        cxr = jnp.pad(cxr, ((0, Bp - B), (0, 0)))
    grid = (Bp // tb,)

    vmem_limit = (48 if is_v7 else 64) * 1024 * 1024
    cparams = pltpu.CompilerParams(
        dimension_semantics=("parallel",),
        vmem_limit_bytes=vmem_limit)

    def cspec(shape):                      # weight: full array, VMEM-resident
        return pl.BlockSpec(shape, lambda i: (0, 0))

    # ---- kernel 1: front end -> packed intermediates + per-row JS contribution ----
    w1_bytes = 2 * D_IN * D * 2 + (3 * (2 * D) * (2 * D) + 8 * 2 * D) * 4
    ce1 = pl.CostEstimate(
        flops=int(2 * Bp * (2 * D_IN * D + 4 * (2 * D) * (2 * D))),
        transcendentals=int(Bp * 10 * D),
        bytes_accessed=int(Bp * (2 * D_IN + 4 * D + 2 * D) * 4 + w1_bytes))

    inter, kl_rows = pl.pallas_call(
        _frontend_kernel,
        out_shape=(jax.ShapeDtypeStruct((Bp, 4 * D), jnp.float32),
                   jax.ShapeDtypeStruct((Bp, 2 * D), jnp.float32)),
        grid=grid,
        in_specs=[
            pl.BlockSpec((tb, D_IN), lambda i: (i, 0)),
            pl.BlockSpec((tb, D_IN), lambda i: (i, 0)),
            cspec((D_IN, D)),               # pe_w (bf16)
            cspec((D_IN, D)),               # pc_w (bf16)
            cspec((8, 2 * D)),              # packed biases / LN params
            cspec((2 * D, 2 * D)),          # block-mean LN matrix
            cspec((2 * D, 2 * D)),          # blockdiag(prE_w, prC_w)
            cspec((2 * D, 2 * D)),          # blockdiag(sh_w, sh_w)
        ],
        out_specs=(pl.BlockSpec((tb, 4 * D), lambda i: (i, 0)),
                   pl.BlockSpec((tb, 2 * D), lambda i: (i, 0))),
        compiler_params=cparams,
        cost_estimate=ce1,
    )(ecg, cxr, packed["w_in_e"], packed["w_in_c"], packed["fe_vecs"],
      packed["blk_mean"], packed["w_priv"], packed["w_sh"])

    # ---- alpha: JS divergence with 'batchmean' is a GLOBAL batch statistic; the
    # per-row contributions come out of kernel 1, only the (B,) sum happens here.
    alpha = (jnp.sum(kl_rows[:B, 0]) / B).reshape(1, 1).astype(jnp.float32)

    # ---- kernel 2: transformer encoder layer + fusion1 ----
    w2_bytes = ((2 * D) * D + D * 3 * D + 3 * D + D * D + 8 * D + D_FF
                + 3 * D * 2 * D + 2 * D * 2 * D + 8 * 2 * D
                + 3 * D * 3 * NHEAD + 3 * NHEAD * 3 * D) * 4 \
               + (D * D_FF + D_FF * D) * 2
    ce2 = pl.CostEstimate(
        flops=int(2 * Bp * (2 * D) * D
                  + 2 * 3 * Bp * (D * 3 * D + 2 * 3 * D * 3 * NHEAD + D * D
                                  + 2 * D * D_FF)
                  + 2 * Bp * (3 * D * 2 * D + 2 * D * 2 * D)),
        transcendentals=int(3 * Bp * (3 * NHEAD + 8)),
        bytes_accessed=int(Bp * (4 * D + 2 * D) * 4 + w2_bytes))

    out = pl.pallas_call(
        _transformer_kernel,
        out_shape=jax.ShapeDtypeStruct((Bp, 2 * D), jnp.float32),
        grid=grid,
        in_specs=[
            pl.BlockSpec(memory_space=pltpu.MemorySpace.SMEM),   # alpha (1, 1)
            pl.BlockSpec((tb, 4 * D), lambda i: (i, 0)),         # intermediates
            cspec((2 * D, D)),          # [ecg_weight; cxr_weight]
            cspec((D, 3 * D)),          # fused Wqkv
            cspec((1, 3 * D)),          # fused bqkv
            cspec((D, D)),              # Wo
            cspec((8, D)),              # bo / ln1 / ln2 / ff2-bias vectors
            cspec((D, D_FF)),           # ff1 W (bf16)
            cspec((1, D_FF)),           # ff1 b
            cspec((D_FF, D)),           # ff2 W (bf16)
            cspec((3 * D, 2 * D)),      # fusion1 first linear
            cspec((2 * D, 2 * D)),      # fusion1 second linear (padded to 128 lanes)
            cspec((8, 2 * D)),          # fusion1 biases
            cspec((3 * D, 3 * NHEAD)),  # block-diag head aggregation (192, 24)
            cspec((3 * NHEAD, 3 * D)),  # its transpose (24, 192)
        ],
        out_specs=pl.BlockSpec((tb, 2 * D), lambda i: (i, 0)),
        compiler_params=cparams,
        cost_estimate=ce2,
    )(alpha, inter, packed["wt_pack"], packed["w_qkv"], packed["b_qkv"],
      packed["w_o"], packed["tvecs"], packed["w_ff1"], packed["b_ff1"],
      packed["w_ff2"], packed["w_f1a"], packed["w_f1b"], packed["fvecs"],
      packed["agg3"], packed["agg3t"])

    return out[:B, :D]


# --------------------------------------------------------------------------- #
# pure-JAX reference (same math / layout as the PyTorch module).  The kernel  #
# uses bf16 MXU operands for the three big matmuls (per the perf review);     #
# match_bf16=True applies the identical casts so the self-check isolates the  #
# kernel plumbing from that documented quantization trade-off.                #
# --------------------------------------------------------------------------- #
def imfm_math(ecg, cxr, p, match_bf16=True):
    B = ecg.shape[0]

    def mm(x, w, bf16=False):
        if bf16:
            x = x.astype(jnp.bfloat16)
            w = w.astype(jnp.bfloat16)
        return jnp.dot(x, w, preferred_element_type=jnp.float32)

    h_e = _layernorm(jnp.maximum(mm(ecg, p["pe_w"], match_bf16) + p["pe_b"], 0.0),
                     p["ln_e_g"], p["ln_e_b"])
    h_c = _layernorm(jnp.maximum(mm(cxr, p["pc_w"], match_bf16) + p["pc_b"], 0.0),
                     p["ln_c_g"], p["ln_c_b"])
    priv_e = jax.nn.sigmoid(mm(h_e, p["prE_w"]) + p["prE_b"])
    priv_c = jax.nn.sigmoid(mm(h_c, p["prC_w"]) + p["prC_b"])
    sh_e = jax.nn.sigmoid(mm(h_e, p["sh_w"]) + p["sh_b"])
    sh_c = jax.nn.sigmoid(mm(h_c, p["sh_w"]) + p["sh_b"])

    lsp = _log_softmax(sh_e)
    lsq = _log_softmax(sh_c)
    lsm = _log_softmax((sh_e + sh_c) * 0.5)
    kl1 = jnp.sum(jnp.exp(lsp) * (lsp - lsm)) / B
    kl2 = jnp.sum(jnp.exp(lsq) * (lsq - lsm)) / B
    alpha = 0.5 * kl1 + 0.5 * kl2

    a = mm(sh_e, p["ecg_wt"])
    b = mm(sh_c, p["cxr_wt"])
    f = (1.0 - alpha) * (a + b) + alpha * sh_e + alpha * sh_c

    agg = (jnp.arange(D)[:, None] // HEAD_DIM
           == jnp.arange(NHEAD)[None, :]).astype(jnp.float32)
    aggT = agg.T

    xs = [priv_e, priv_c, f]
    qs = [mm(x, p["wq"]) + p["bq"] for x in xs]
    ks = [mm(x, p["wk"]) + p["bk"] for x in xs]
    vs = [mm(x, p["wv"]) + p["bv"] for x in xs]
    scale = 1.0 / (HEAD_DIM ** 0.5)

    attn_outs = []
    for i in range(3):
        s = [mm(qs[i] * ks[j], agg) * scale for j in range(3)]
        m = jnp.maximum(jnp.maximum(s[0], s[1]), s[2])
        e = [jnp.exp(sj - m) for sj in s]
        inv = 1.0 / (e[0] + e[1] + e[2])
        ctx = jnp.zeros_like(xs[i])
        for j in range(3):
            w_full = mm(e[j] * inv, aggT)
            ctx = ctx + w_full * vs[j]
        attn_outs.append(mm(ctx, p["wo"]) + p["bo"])

    ys = [_layernorm(xs[i] + attn_outs[i], p["ln1_g"], p["ln1_b"]) for i in range(3)]
    zs = []
    for i in range(3):
        hff = jnp.maximum(mm(ys[i], p["ff1_w"], match_bf16) + p["ff1_b"], 0.0)
        ff = mm(hff, p["ff2_w"], match_bf16) + p["ff2_b"]
        zs.append(_layernorm(ys[i] + ff, p["ln2_g"], p["ln2_b"]))

    t = (mm(zs[0], p["f1a_w"][0 * D:1 * D, :])
         + mm(zs[1], p["f1a_w"][1 * D:2 * D, :])
         + mm(zs[2], p["f1a_w"][2 * D:3 * D, :])
         + p["f1a_b"])
    o = mm(jnp.maximum(t, 0.0), p["f1b_w"]) + p["f1b_b"]
    return o


# --------------------------------------------------------------------------- #
# parameter construction / packing                                            #
# --------------------------------------------------------------------------- #
def init_params(key):
    def w(k, shape, fan_in):
        return jax.random.normal(k, shape, jnp.float32) / jnp.sqrt(jnp.float32(fan_in))

    names_shapes = {
        "pe_w": (D_IN, D), "pc_w": (D_IN, D),
        "prE_w": (D, D), "prC_w": (D, D), "sh_w": (D, D),
        "wq": (D, D), "wk": (D, D), "wv": (D, D), "wo": (D, D),
        "ff1_w": (D, D_FF), "ff2_w": (D_FF, D),
        "f1a_w": (3 * D, 2 * D), "f1b_w": (2 * D, D),
    }
    bias_shapes = {
        "pe_b": D, "pc_b": D, "prE_b": D, "prC_b": D, "sh_b": D,
        "bq": D, "bk": D, "bv": D, "bo": D,
        "ff1_b": D_FF, "ff2_b": D,
        "f1a_b": 2 * D, "f1b_b": D,
    }
    p = {}
    keys = jax.random.split(key, len(names_shapes) + len(bias_shapes) + 2)
    ki = 0
    for n, s in names_shapes.items():
        p[n] = w(keys[ki], s, s[0]); ki += 1
    for n, s in bias_shapes.items():
        p[n] = 0.01 * jax.random.normal(keys[ki], (1, s), jnp.float32); ki += 1
    p["ecg_wt"] = jax.random.normal(keys[ki], (D, D), jnp.float32); ki += 1
    p["cxr_wt"] = jax.random.normal(keys[ki], (D, D), jnp.float32); ki += 1
    for n in ["ln_e_g", "ln_c_g", "ln1_g", "ln2_g"]:
        p[n] = jnp.ones((1, D), jnp.float32)
    for n in ["ln_e_b", "ln_c_b", "ln1_b", "ln2_b"]:
        p[n] = jnp.zeros((1, D), jnp.float32)
    return p


def pack_params(p):
    """One-time repack of the natural parameter dict into the kernel layout."""
    f32 = jnp.float32
    bf16 = jnp.bfloat16

    fe = jnp.zeros((8, 2 * D), f32)
    fe = fe.at[0].set(jnp.concatenate([p["pe_b"][0], p["pc_b"][0]]))
    fe = fe.at[1].set(jnp.concatenate([p["ln_e_g"][0], p["ln_c_g"][0]]))
    fe = fe.at[2].set(jnp.concatenate([p["ln_e_b"][0], p["ln_c_b"][0]]))
    fe = fe.at[3].set(jnp.concatenate([p["prE_b"][0], p["prC_b"][0]]))
    fe = fe.at[4].set(jnp.concatenate([p["sh_b"][0], p["sh_b"][0]]))

    w_priv = jnp.zeros((2 * D, 2 * D), f32)
    w_priv = w_priv.at[:D, :D].set(p["prE_w"]).at[D:, D:].set(p["prC_w"])
    w_sh = jnp.zeros((2 * D, 2 * D), f32)
    w_sh = w_sh.at[:D, :D].set(p["sh_w"]).at[D:, D:].set(p["sh_w"])

    r = jnp.arange(2 * D)[:, None] // D
    c = jnp.arange(2 * D)[None, :] // D
    blk_mean = jnp.where(r == c, 1.0 / D, 0.0).astype(f32)

    wt_pack = jnp.concatenate([p["ecg_wt"], p["cxr_wt"]], axis=0)      # (128, 64)
    w_qkv = jnp.concatenate([p["wq"], p["wk"], p["wv"]], axis=1)       # (64, 192)
    b_qkv = jnp.concatenate([p["bq"], p["bk"], p["bv"]], axis=1)       # (1, 192)

    tvecs = jnp.zeros((8, D), f32)
    tvecs = (tvecs.at[0].set(p["bo"][0]).at[1].set(p["ln1_g"][0])
             .at[2].set(p["ln1_b"][0]).at[3].set(p["ln2_g"][0])
             .at[4].set(p["ln2_b"][0]).at[5].set(p["ff2_b"][0]))

    w_f1b = jnp.zeros((2 * D, 2 * D), f32).at[:, :D].set(p["f1b_w"])
    fvecs = jnp.zeros((8, 2 * D), f32)
    fvecs = fvecs.at[0].set(p["f1a_b"][0]).at[1, :D].set(p["f1b_b"][0])

    agg = (jnp.arange(D)[:, None] // HEAD_DIM
           == jnp.arange(NHEAD)[None, :]).astype(f32)                  # (64, 8)
    agg3 = jnp.zeros((3 * D, 3 * NHEAD), f32)
    for j in range(3):
        agg3 = agg3.at[j * D:(j + 1) * D, j * NHEAD:(j + 1) * NHEAD].set(agg)
    agg3t = agg3.T                                                      # (24, 192)

    return dict(
        w_in_e=p["pe_w"].astype(bf16),
        w_in_c=p["pc_w"].astype(bf16),
        fe_vecs=fe, blk_mean=blk_mean, w_priv=w_priv, w_sh=w_sh,
        wt_pack=wt_pack, w_qkv=w_qkv, b_qkv=b_qkv, w_o=p["wo"],
        tvecs=tvecs,
        w_ff1=p["ff1_w"].astype(bf16), b_ff1=p["ff1_b"],
        w_ff2=p["ff2_w"].astype(bf16),
        w_f1a=p["f1a_w"], w_f1b=w_f1b, fvecs=fvecs,
        agg3=agg3, agg3t=agg3t)


if __name__ == "__main__":
    B = 8
    key = jax.random.PRNGKey(0)
    k_ecg, k_cxr, k_par = jax.random.split(key, 3)
    ecg = jax.random.normal(k_ecg, (B, D_IN), jnp.float32)
    cxr = jax.random.normal(k_cxr, (B, D_IN), jnp.float32)
    params = init_params(k_par)
    packed = pack_params(params)

    fwd = jax.jit(lambda e, c, pk: imfm_pallas(e, c, pk))
    out = jax.block_until_ready(fwd(ecg, cxr, packed))

    # sanity check vs. plain-JAX reference of the same math (bf16-matched matmuls)
    ref = jax.block_until_ready(imfm_math(ecg, cxr, params, match_bf16=True))
    assert out.shape == (B, D)
    assert bool(jnp.all(jnp.isfinite(out)))
    assert bool(jnp.allclose(out, ref, atol=2e-3, rtol=2e-3))

    print("KERNEL_OK")
</pallas_src>

<mosaic_0001>
module attributes {stable_mosaic.version = 11 : i64} {
  func.func @_frontend_kernel(%arg0: i32, %arg1: memref<8x1024xf32, #tpu.memory_space<vmem>>, %arg2: memref<8x1024xf32, #tpu.memory_space<vmem>>, %arg3: memref<1024x64xbf16, #tpu.memory_space<vmem>>, %arg4: memref<1024x64xbf16, #tpu.memory_space<vmem>>, %arg5: memref<8x128xf32, #tpu.memory_space<vmem>>, %arg6: memref<128x128xf32, #tpu.memory_space<vmem>>, %arg7: memref<128x128xf32, #tpu.memory_space<vmem>>, %arg8: memref<128x128xf32, #tpu.memory_space<vmem>>, %arg9: memref<8x256xf32, #tpu.memory_space<vmem>>, %arg10: memref<8x128xf32, #tpu.memory_space<vmem>>) attributes {dimension_semantics = [#tpu.dimension_semantics<parallel>], iteration_bounds = array<i64: 1>, scalar_prefetch = 0 : i64, scratch_operands = 0 : i64, tpu.core_type = #tpu.core_type<tc>, window_params = [{transform_indices = @transform_0, window_bounds = array<i64: 8, 1024>}, {transform_indices = @transform_1, window_bounds = array<i64: 8, 1024>}, {pipeline_mode = #tpu.pipeline_mode<synchronous>, transform_indices = @transform_2, window_bounds = array<i64: 1024, 64>}, {pipeline_mode = #tpu.pipeline_mode<synchronous>, transform_indices = @transform_3, window_bounds = array<i64: 1024, 64>}, {pipeline_mode = #tpu.pipeline_mode<synchronous>, transform_indices = @transform_4, window_bounds = array<i64: 8, 128>}, {pipeline_mode = #tpu.pipeline_mode<synchronous>, transform_indices = @transform_5, window_bounds = array<i64: 128, 128>}, {pipeline_mode = #tpu.pipeline_mode<synchronous>, transform_indices = @transform_6, window_bounds = array<i64: 128, 128>}, {pipeline_mode = #tpu.pipeline_mode<synchronous>, transform_indices = @transform_7, window_bounds = array<i64: 128, 128>}, {transform_indices = @transform_8, window_bounds = array<i64: 8, 256>}, {transform_indices = @transform_9, window_bounds = array<i64: 8, 128>}]} {
    %c0 = arith.constant 0 : index
    %c0_0 = arith.constant 0 : index
    %0 = vector.load %arg5[%c0, %c0_0] : memref<8x128xf32, #tpu.memory_space<vmem>>, vector<1x128xf32>
    %c1 = arith.constant 1 : index
    %c0_1 = arith.constant 0 : index
    %1 = vector.load %arg5[%c1, %c0_1] : memref<8x128xf32, #tpu.memory_space<vmem>>, vector<1x128xf32>
    %c2 = arith.constant 2 : index
    %c0_2 = arith.constant 0 : index
    %2 = vector.load %arg5[%c2, %c0_2] : memref<8x128xf32, #tpu.memory_space<vmem>>, vector<1x128xf32>
    %c3 = arith.constant 3 : index
    %c0_3 = arith.constant 0 : index
    %3 = vector.load %arg5[%c3, %c0_3] : memref<8x128xf32, #tpu.memory_space<vmem>>, vector<1x128xf32>
    %c4 = arith.constant 4 : index
    %c0_4 = arith.constant 0 : index
    %4 = vector.load %arg5[%c4, %c0_4] : memref<8x128xf32, #tpu.memory_space<vmem>>, vector<1x128xf32>
    %c0_5 = arith.constant 0 : index
    %c0_6 = arith.constant 0 : index
    %5 = vector.load %arg1[%c0_5, %c0_6] : memref<8x1024xf32, #tpu.memory_space<vmem>>, vector<8x1024xf32>
    %6 = arith.truncf %5 : vector<8x1024xf32> to vector<8x1024xbf16>
    %c0_7 = arith.constant 0 : index
    %c0_8 = arith.constant 0 : index
    %7 = vector.load %arg3[%c0_7, %c0_8] : memref<1024x64xbf16, #tpu.memory_space<vmem>>, vector<1024x64xbf16>
    %cst = arith.constant dense<0.000000e+00> : vector<8x64xf32>
    %8 = tpu.matmul %6, %7, %cst {dimension_numbers = #tpu.dot_dimension_numbers<[1], [0], [0], [1], [0, 0, 1, 1], [], []>} : vector<8x1024xbf16>, vector<1024x64xbf16>, vector<8x64xf32> -> vector<8x64xf32>
    %c0_9 = arith.constant 0 : index
    %c0_10 = arith.constant 0 : index
    %9 = vector.load %arg2[%c0_9, %c0_10] : memref<8x1024xf32, #tpu.memory_space<vmem>>, vector<8x1024xf32>
    %10 = arith.truncf %9 : vector<8x1024xf32> to vector<8x1024xbf16>
    %c0_11 = arith.constant 0 : index
    %c0_12 = arith.constant 0 : index
    %11 = vector.load %arg4[%c0_11, %c0_12] : memref<1024x64xbf16, #tpu.memory_space<vmem>>, vector<1024x64xbf16>
    %cst_13 = arith.constant dense<0.000000e+00> : vector<8x64xf32>
    %12 = tpu.matmul %10, %11, %cst_13 {dimension_numbers = #tpu.dot_dimension_numbers<[1], [0], [0], [1], [0, 0, 1, 1], [], []>} : vector<8x1024xbf16>, vector<1024x64xbf16>, vector<8x64xf32> -> vector<8x64xf32>
    %13 = tpu.concatenate %8, %12 in 1 : vector<8x64xf32>, vector<8x64xf32> -> vector<8x128xf32>
    %14 = vector.broadcast %0 : vector<1x128xf32> to vector<8x128xf32>
    %15 = arith.addf %13, %14 : vector<8x128xf32>
    %cst_14 = arith.constant 0.000000e+00 : f32
    %16 = vector.broadcast %cst_14 : f32 to vector<8x128xf32>
    %17 = arith.maximumf %15, %16 : vector<8x128xf32>
    %c0_15 = arith.constant 0 : index
    %c0_16 = arith.constant 0 : index
    %18 = vector.load %arg6[%c0_15, %c0_16] : memref<128x128xf32, #tpu.memory_space<vmem>>, vector<128x128xf32>
    %cst_17 = arith.constant dense<0.000000e+00> : vector<8x128xf32>
    %19 = tpu.matmul %17, %18, %cst_17 {dimension_numbers = #tpu.dot_dimension_numbers<[1], [0], [0], [1], [0, 0, 1, 1], [], []>} : vector<8x128xf32>, vector<128x128xf32>, vector<8x128xf32> -> vector<8x128xf32>
    %20 = arith.subf %17, %19 : vector<8x128xf32>
    %21 = arith.mulf %20, %20 : vector<8x128xf32>
    %cst_18 = arith.constant dense<0.000000e+00> : vector<8x128xf32>
    %22 = tpu.matmul %21, %18, %cst_18 {dimension_numbers = #tpu.dot_dimension_numbers<[1], [0], [0], [1], [0, 0, 1, 1], [], []>} : vector<8x128xf32>, vector<128x128xf32>, vector<8x128xf32> -> vector<8x128xf32>
    %cst_19 = arith.constant 9.99999974E-6 : f32
    %23 = vector.broadcast %cst_19 : f32 to vector<8x128xf32>
    %24 = arith.addf %22, %23 : vector<8x128xf32>
    %25 = math.rsqrt %24 : vector<8x128xf32>
    %26 = arith.mulf %20, %25 : vector<8x128xf32>
    %27 = vector.broadcast %1 : vector<1x128xf32> to vector<8x128xf32>
    %28 = arith.mulf %26, %27 : vector<8x128xf32>
    %29 = vector.broadcast %2 : vector<1x128xf32> to vector<8x128xf32>
    %30 = arith.addf %28, %29 : vector<8x128xf32>
    %c0_20 = arith.constant 0 : index
    %c0_21 = arith.constant 0 : index
    %31 = vector.load %arg7[%c0_20, %c0_21] : memref<128x128xf32, #tpu.memory_space<vmem>>, vector<128x128xf32>
    %cst_22 = arith.constant dense<0.000000e+00> : vector<8x128xf32>
    %32 = tpu.matmul %30, %31, %cst_22 {dimension_numbers = #tpu.dot_dimension_numbers<[1], [0], [0], [1], [0, 0, 1, 1], [], []>} : vector<8x128xf32>, vector<128x128xf32>, vector<8x128xf32> -> vector<8x128xf32>
    %33 = vector.broadcast %3 : vector<1x128xf32> to vector<8x128xf32>
    %34 = arith.addf %32, %33 : vector<8x128xf32>
    %35 = arith.negf %34 : vector<8x128xf32>
    %36 = math.exp %35 : vector<8x128xf32>
    %cst_23 = arith.constant 1.000000e+00 : f32
    %37 = vector.broadcast %cst_23 : f32 to vector<8x128xf32>
    %38 = arith.addf %37, %36 : vector<8x128xf32>
    %39 = arith.divf %37, %38 : vector<8x128xf32>
    %c0_24 = arith.constant 0 : index
    %c0_25 = arith.constant 0 : index
    %40 = vector.load %arg8[%c0_24, %c0_25] : memref<128x128xf32, #tpu.memory_space<vmem>>, vector<128x128xf32>
    %cst_26 = arith.constant dense<0.000000e+00> : vector<8x128xf32>
    %41 = tpu.matmul %30, %40, %cst_26 {dimension_numbers = #tpu.dot_dimension_numbers<[1], [0], [0], [1], [0, 0, 1, 1], [], []>} : vector<8x128xf32>, vector<128x128xf32>, vector<8x128xf32> -> vector<8x128xf32>
    %42 = vector.broadcast %4 : vector<1x128xf32> to vector<8x128xf32>
    %43 = arith.addf %41, %42 : vector<8x128xf32>
    %44 = arith.negf %43 : vector<8x128xf32>
    %45 = math.exp %44 : vector<8x128xf32>
    %cst_27 = arith.constant 1.000000e+00 : f32
    %46 = vector.broadcast %cst_27 : f32 to vector<8x128xf32>
    %47 = arith.addf %46, %45 : vector<8x128xf32>
    %48 = arith.divf %46, %47 : vector<8x128xf32>
    %c0_28 = arith.constant 0 : index
    %c0_29 = arith.constant 0 : index
    %49 = vector.load %arg9[%c0_28, %c0_29] : memref<8x256xf32, #tpu.memory_space<vmem>>, vector<8x128xf32>
    tpu.vector_store %arg9[%c0_28, %c0_29], %39 {strides = array<i32>} : memref<8x256xf32, #tpu.memory_space<vmem>>, vector<8x128xf32>,
    %c0_30 = arith.constant 0 : index
    %c128 = arith.constant 128 : index
    %50 = vector.load %arg9[%c0_30, %c128] : memref<8x256xf32, #tpu.memory_space<vmem>>, vector<8x128xf32>
    tpu.vector_store %arg9[%c0_30, %c128], %48 {strides = array<i32>} : memref<8x256xf32, #tpu.memory_space<vmem>>, vector<8x128xf32>,
    %51 = vector.extract_strided_slice %48 {offsets = [0, 0], sizes = [8, 64], strides = [1, 1]} : vector<8x128xf32> to vector<8x64xf32>
    %52 = vector.extract_strided_slice %48 {offsets = [0, 64], sizes = [8, 64], strides = [1, 1]} : vector<8x128xf32> to vector<8x64xf32>
    %cst_31 = arith.constant dense<0xFF800000> : vector<8xf32>
    %53 = vector.multi_reduction <maximumf>, %51, %cst_31 [1] : vector<8x64xf32> to vector<8xf32>
    %54 = vector.shape_cast %53 : vector<8xf32> to vector<8x1xf32>
    %55 = vector.broadcast %54 : vector<8x1xf32> to vector<8x64xf32>
    %56 = arith.subf %51, %55 : vector<8x64xf32>
    %57 = math.exp %56 : vector<8x64xf32>
    %cst_32 = arith.constant dense<0.000000e+00> : vector<8xf32>
    %58 = vector.multi_reduction <add>, %57, %cst_32 [1] : vector<8x64xf32> to vector<8xf32>
    %59 = vector.shape_cast %58 : vector<8xf32> to vector<8x1xf32>
    %60 = math.log %59 : vector<8x1xf32>
    %61 = vector.broadcast %60 : vector<8x1xf32> to vector<8x64xf32>
    %62 = arith.subf %56, %61 : vector<8x64xf32>
    %cst_33 = arith.constant dense<0xFF800000> : vector<8xf32>
    %63 = vector.multi_reduction <maximumf>, %52, %cst_33 [1] : vector<8x64xf32> to vector<8xf32>
    %64 = vector.shape_cast %63 : vector<8xf32> to vector<8x1xf32>
    %65 = vector.broadcast %64 : vector<8x1xf32> to vector<8x64xf32>
    %66 = arith.subf %52, %65 : vector<8x64xf32>
    %67 = math.exp %66 : vector<8x64xf32>
    %cst_34 = arith.constant dense<0.000000e+00> : vector<8xf32>
    %68 = vector.multi_reduction <add>, %67, %cst_34 [1] : vector<8x64xf32> to vector<8xf32>
    %69 = vector.shape_cast %68 : vector<8xf32> to vector<8x1xf32>
    %70 = math.log %69 : vector<8x1xf32>
    %71 = vector.broadcast %70 : vector<8x1xf32> to vector<8x64xf32>
    %72 = arith.subf %66, %71 : vector<8x64xf32>
    %73 = arith.addf %51, %52 : vector<8x64xf32>
    %cst_35 = arith.constant 5.000000e-01 : f32
    %74 = vector.broadcast %cst_35 : f32 to vector<8x64xf32>
    %75 = arith.mulf %73, %74 : vector<8x64xf32>
    %cst_36 = arith.constant dense<0xFF800000> : vector<8xf32>
    %76 = vector.multi_reduction <maximumf>, %75, %cst_36 [1] : vector<8x64xf32> to vector<8xf32>
    %77 = vector.shape_cast %76 : vector<8xf32> to vector<8x1xf32>
    %78 = vector.broadcast %77 : vector<8x1xf32> to vector<8x64xf32>
    %79 = arith.subf %75, %78 : vector<8x64xf32>
    %80 = math.exp %79 : vector<8x64xf32>
    %cst_37 = arith.constant dense<0.000000e+00> : vector<8xf32>
    %81 = vector.multi_reduction <add>, %80, %cst_37 [1] : vector<8x64xf32> to vector<8xf32>
    %82 = vector.shape_cast %81 : vector<8xf32> to vector<8x1xf32>
    %83 = math.log %82 : vector<8x1xf32>
    %84 = vector.broadcast %83 : vector<8x1xf32> to vector<8x64xf32>
    %85 = arith.subf %79, %84 : vector<8x64xf32>
    %86 = math.exp %62 : vector<8x64xf32>
    %87 = arith.subf %62, %85 : vector<8x64xf32>
    %88 = arith.mulf %86, %87 : vector<8x64xf32>
    %cst_38 = arith.constant dense<0.000000e+00> : vector<8xf32>
    %89 = vector.multi_reduction <add>, %88, %cst_38 [1] : vector<8x64xf32> to vector<8xf32>
    %90 = vector.shape_cast %89 : vector<8xf32> to vector<8x1xf32>
    %cst_39 = arith.constant 5.000000e-01 : f32
    %91 = vector.broadcast %cst_39 : f32 to vector<8x1xf32>
    %92 = arith.mulf %91, %90 : vector<8x1xf32>
    %93 = math.exp %72 : vector<8x64xf32>
    %94 = arith.subf %72, %85 : vector<8x64xf32>
    %95 = arith.mulf %93, %94 : vector<8x64xf32>
    %cst_40 = arith.constant dense<0.000000e+00> : vector<8xf32>
    %96 = vector.multi_reduction <add>, %95, %cst_40 [1] : vector<8x64xf32> to vector<8xf32>
    %97 = vector.shape_cast %96 : vector<8xf32> to vector<8x1xf32>
    %cst_41 = arith.constant 5.000000e-01 : f32
    %98 = vector.broadcast %cst_41 : f32 to vector<8x1xf32>
    %99 = arith.mulf %98, %97 : vector<8x1xf32>
    %100 = arith.addf %92, %99 : vector<8x1xf32>
    %101 = vector.shape_cast %100 : vector<8x1xf32> to vector<8x1xf32>
    %102 = vector.broadcast %101 : vector<8x1xf32> to vector<8x128xf32>
    %c0_42 = arith.constant 0 : index
    %c0_43 = arith.constant 0 : index
    %103 = vector.load %arg10[%c0_42, %c0_43] : memref<8x128xf32, #tpu.memory_space<vmem>>, vector<8x128xf32>
    tpu.vector_store %arg10[%c0_42, %c0_43], %102 {strides = array<i32>} : memref<8x128xf32, #tpu.memory_space<vmem>>, vector<8x128xf32>,
    return
  }
  func.func @transform_0(%arg0: i32) -> (i32, i32) {
    %c0_i32 = arith.constant 0 : i32
    %c0_i32_0 = arith.constant 0 : i32
    return %arg0, %c0_i32 : i32, i32
  }
  func.func @transform_1(%arg0: i32) -> (i32, i32) {
    %c0_i32 = arith.constant 0 : i32
    %c0_i32_0 = arith.constant 0 : i32
    return %arg0, %c0_i32 : i32, i32
  }
  func.func @transform_2(%arg0: i32) -> (i32, i32) {
    %c0_i32 = arith.constant 0 : i32
    %c0_i32_0 = arith.constant 0 : i32
    %c0_i32_1 = arith.constant 0 : i32
    return %c0_i32, %c0_i32_0 : i32, i32
  }
  func.func @transform_3(%arg0: i32) -> (i32, i32) {
    %c0_i32 = arith.constant 0 : i32
    %c0_i32_0 = arith.constant 0 : i32
    %c0_i32_1 = arith.constant 0 : i32
    return %c0_i32, %c0_i32_0 : i32, i32
  }
  func.func @transform_4(%arg0: i32) -> (i32, i32) {
    %c0_i32 = arith.constant 0 : i32
    %c0_i32_0 = arith.constant 0 : i32
    %c0_i32_1 = arith.constant 0 : i32
    return %c0_i32, %c0_i32_0 : i32, i32
  }
  func.func @transform_5(%arg0: i32) -> (i32, i32) {
    %c0_i32 = arith.constant 0 : i32
    %c0_i32_0 = arith.constant 0 : i32
    %c0_i32_1 = arith.constant 0 : i32
    return %c0_i32, %c0_i32_0 : i32, i32
  }
  func.func @transform_6(%arg0: i32) -> (i32, i32) {
    %c0_i32 = arith.constant 0 : i32
    %c0_i32_0 = arith.constant 0 : i32
    %c0_i32_1 = arith.constant 0 : i32
    return %c0_i32, %c0_i32_0 : i32, i32
  }
  func.func @transform_7(%arg0: i32) -> (i32, i32) {
    %c0_i32 = arith.constant 0 : i32
    %c0_i32_0 = arith.constant 0 : i32
    %c0_i32_1 = arith.constant 0 : i32
    return %c0_i32, %c0_i32_0 : i32, i32
  }
  func.func @transform_8(%arg0: i32) -> (i32, i32) {
    %c0_i32 = arith.constant 0 : i32
    %c0_i32_0 = arith.constant 0 : i32
    return %arg0, %c0_i32 : i32, i32
  }
  func.func @transform_9(%arg0: i32) -> (i32, i32) {
    %c0_i32 = arith.constant 0 : i32
    %c0_i32_0 = arith.constant 0 : i32
    return %arg0, %c0_i32 : i32, i32
  }
}

module attributes {stable_mosaic.version = 11 : i64} {
  func.func @_transformer_kernel(%arg0: i32, %arg1: memref<1x1xf32, #tpu.memory_space<smem>>, %arg2: memref<8x256xf32, #tpu.memory_space<vmem>>, %arg3: memref<128x64xf32, #tpu.memory_space<vmem>>, %arg4: memref<64x192xf32, #tpu.memory_space<vmem>>, %arg5: memref<1x192xf32, #tpu.memory_space<vmem>>, %arg6: memref<64x64xf32, #tpu.memory_space<vmem>>, %arg7: memref<8x64xf32, #tpu.memory_space<vmem>>, %arg8: memref<64x2048xbf16, #tpu.memory_space<vmem>>, %arg9: memref<1x2048xf32, #tpu.memory_space<vmem>>, %arg10: memref<2048x64xbf16, #tpu.memory_space<vmem>>, %arg11: memref<192x128xf32, #tpu.memory_space<vmem>>, %arg12: memref<128x128xf32, #tpu.memory_space<vmem>>, %arg13: memref<8x128xf32, #tpu.memory_space<vmem>>, %arg14: memref<192x24xf32, #tpu.memory_space<vmem>>, %arg15: memref<24x192xf32, #tpu.memory_space<vmem>>, %arg16: memref<8x128xf32, #tpu.memory_space<vmem>>) attributes {dimension_semantics = [#tpu.dimension_semantics<parallel>], iteration_bounds = array<i64: 1>, scalar_prefetch = 0 : i64, scratch_operands = 0 : i64, tpu.core_type = #tpu.core_type<tc>, window_params = [{transform_indices = @transform_0, window_bounds = array<i64: 1, 1>}, {transform_indices = @transform_1, window_bounds = array<i64: 8, 256>}, {pipeline_mode = #tpu.pipeline_mode<synchronous>, transform_indices = @transform_2, window_bounds = array<i64: 128, 64>}, {pipeline_mode = #tpu.pipeline_mode<synchronous>, transform_indices = @transform_3, window_bounds = array<i64: 64, 192>}, {pipeline_mode = #tpu.pipeline_mode<synchronous>, transform_indices = @transform_4, window_bounds = array<i64: 1, 192>}, {pipeline_mode = #tpu.pipeline_mode<synchronous>, transform_indices = @transform_5, window_bounds = array<i64: 64, 64>}, {pipeline_mode = #tpu.pipeline_mode<synchronous>, transform_indices = @transform_6, window_bounds = array<i64: 8, 64>}, {pipeline_mode = #tpu.pipeline_mode<synchronous>, transform_indices = @transform_7, window_bounds = array<i64: 64, 2048>}, {pipeline_mode = #tpu.pipeline_mode<synchronous>, transform_indices = @transform_8, window_bounds = array<i64: 1, 2048>}, {pipeline_mode = #tpu.pipeline_mode<synchronous>, transform_indices = @transform_9, window_bounds = array<i64: 2048, 64>}, {pipeline_mode = #tpu.pipeline_mode<synchronous>, transform_indices = @transform_10, window_bounds = array<i64: 192, 128>}, {pipeline_mode = #tpu.pipeline_mode<synchronous>, transform_indices = @transform_11, window_bounds = array<i64: 128, 128>}, {pipeline_mode = #tpu.pipeline_mode<synchronous>, transform_indices = @transform_12, window_bounds = array<i64: 8, 128>}, {pipeline_mode = #tpu.pipeline_mode<synchronous>, transform_indices = @transform_13, window_bounds = array<i64: 192, 24>}, {pipeline_mode = #tpu.pipeline_mode<synchronous>, transform_indices = @transform_14, window_bounds = array<i64: 24, 192>}, {transform_indices = @transform_15, window_bounds = array<i64: 8, 128>}]} {
    %c0 = arith.constant 0 : index
    %c0_0 = arith.constant 0 : index
    %0 = memref.load %arg1[%c0, %c0_0] : memref<1x1xf32, #tpu.memory_space<smem>>
    %c0_1 = arith.constant 0 : index
    %c0_2 = arith.constant 0 : index
    %1 = vector.load %arg2[%c0_1, %c0_2] : memref<8x256xf32, #tpu.memory_space<vmem>>, vector<8x256xf32>
    %2 = vector.extract_strided_slice %1 {offsets = [0, 0], sizes = [8, 64], strides = [1, 1]} : vector<8x256xf32> to vector<8x64xf32>
    %3 = vector.extract_strided_slice %1 {offsets = [0, 64], sizes = [8, 64], strides = [1, 1]} : vector<8x256xf32> to vector<8x64xf32>
    %4 = vector.extract_strided_slice %1 {offsets = [0, 128], sizes = [8, 128], strides = [1, 1]} : vector<8x256xf32> to vector<8x128xf32>
    %5 = vector.extract_strided_slice %1 {offsets = [0, 128], sizes = [8, 64], strides = [1, 1]} : vector<8x256xf32> to vector<8x64xf32>
    %6 = vector.extract_strided_slice %1 {offsets = [0, 192], sizes = [8, 64], strides = [1, 1]} : vector<8x256xf32> to vector<8x64xf32>
    %c0_3 = arith.constant 0 : index
    %c0_4 = arith.constant 0 : index
    %7 = vector.load %arg3[%c0_3, %c0_4] : memref<128x64xf32, #tpu.memory_space<vmem>>, vector<128x64xf32>
    %cst = arith.constant dense<0.000000e+00> : vector<8x64xf32>
    %8 = tpu.matmul %4, %7, %cst {dimension_numbers = #tpu.dot_dimension_numbers<[1], [0], [0], [1], [0, 0, 1, 1], [], []>} : vector<8x128xf32>, vector<128x64xf32>, vector<8x64xf32> -> vector<8x64xf32>
    %cst_5 = arith.constant 1.000000e+00 : f32
    %9 = arith.subf %cst_5, %0 : f32
    %10 = vector.broadcast %9 : f32 to vector<8x64xf32>
    %11 = arith.mulf %10, %8 : vector<8x64xf32>
    %12 = arith.addf %5, %6 : vector<8x64xf32>
    %13 = vector.broadcast %0 : f32 to vector<8x64xf32>
    %14 = arith.mulf %13, %12 : vector<8x64xf32>
    %15 = arith.addf %11, %14 : vector<8x64xf32>
    %16 = tpu.concatenate %2, %3, %15 in 0 : vector<8x64xf32>, vector<8x64xf32>, vector<8x64xf32> -> vector<24x64xf32>
    %c0_6 = arith.constant 0 : index
    %c0_7 = arith.constant 0 : index
    %17 = vector.load %arg4[%c0_6, %c0_7] : memref<64x192xf32, #tpu.memory_space<vmem>>, vector<64x192xf32>
    %cst_8 = arith.constant dense<0.000000e+00> : vector<24x192xf32>
    %18 = tpu.matmul %16, %17, %cst_8 {dimension_numbers = #tpu.dot_dimension_numbers<[1], [0], [0], [1], [0, 0, 1, 1], [], []>} : vector<24x64xf32>, vector<64x192xf32>, vector<24x192xf32> -> vector<24x192xf32>
    %c0_9 = arith.constant 0 : index
    %c0_10 = arith.constant 0 : index
    %19 = vector.load %arg5[%c0_9, %c0_10] : memref<1x192xf32, #tpu.memory_space<vmem>>, vector<1x192xf32>
    %20 = vector.broadcast %19 : vector<1x192xf32> to vector<24x192xf32>
    %21 = arith.addf %18, %20 : vector<24x192xf32>
    %22 = vector.extract_strided_slice %21 {offsets = [0, 0], sizes = [24, 64], strides = [1, 1]} : vector<24x192xf32> to vector<24x64xf32>
    %23 = vector.extract_strided_slice %21 {offsets = [0, 64], sizes = [24, 64], strides = [1, 1]} : vector<24x192xf32> to vector<24x64xf32>
    %24 = vector.extract_strided_slice %21 {offsets = [0, 128], sizes = [24, 64], strides = [1, 1]} : vector<24x192xf32> to vector<24x64xf32>
    %25 = vector.extract_strided_slice %23 {offsets = [8, 0], sizes = [16, 64], strides = [1, 1]} : vector<24x64xf32> to vector<16x64xf32>
    %26 = vector.extract_strided_slice %23 {offsets = [0, 0], sizes = [8, 64], strides = [1, 1]} : vector<24x64xf32> to vector<8x64xf32>
    %27 = tpu.concatenate %25, %26 in 0 : vector<16x64xf32>, vector<8x64xf32> -> vector<24x64xf32>
    %28 = vector.extract_strided_slice %23 {offsets = [16, 0], sizes = [8, 64], strides = [1, 1]} : vector<24x64xf32> to vector<8x64xf32>
    %29 = vector.extract_strided_slice %23 {offsets = [0, 0], sizes = [16, 64], strides = [1, 1]} : vector<24x64xf32> to vector<16x64xf32>
    %30 = tpu.concatenate %28, %29 in 0 : vector<8x64xf32>, vector<16x64xf32> -> vector<24x64xf32>
    %31 = vector.extract_strided_slice %24 {offsets = [8, 0], sizes = [16, 64], strides = [1, 1]} : vector<24x64xf32> to vector<16x64xf32>
    %32 = vector.extract_strided_slice %24 {offsets = [0, 0], sizes = [8, 64], strides = [1, 1]} : vector<24x64xf32> to vector<8x64xf32>
    %33 = tpu.concatenate %31, %32 in 0 : vector<16x64xf32>, vector<8x64xf32> -> vector<24x64xf32>
    %34 = vector.extract_strided_slice %24 {offsets = [16, 0], sizes = [8, 64], strides = [1, 1]} : vector<24x64xf32> to vector<8x64xf32>
    %35 = vector.extract_strided_slice %24 {offsets = [0, 0], sizes = [16, 64], strides = [1, 1]} : vector<24x64xf32> to vector<16x64xf32>
    %36 = tpu.concatenate %34, %35 in 0 : vector<8x64xf32>, vector<16x64xf32> -> vector<24x64xf32>
    %37 = arith.mulf %22, %23 : vector<24x64xf32>
    %38 = arith.mulf %22, %27 : vector<24x64xf32>
    %39 = arith.mulf %22, %30 : vector<24x64xf32>
    %40 = tpu.concatenate %37, %38, %39 in 1 : vector<24x64xf32>, vector<24x64xf32>, vector<24x64xf32> -> vector<24x192xf32>
    %c0_11 = arith.constant 0 : index
    %c0_12 = arith.constant 0 : index
    %41 = vector.load %arg14[%c0_11, %c0_12] : memref<192x24xf32, #tpu.memory_space<vmem>>, vector<192x24xf32>
    %cst_13 = arith.constant dense<0.000000e+00> : vector<24x24xf32>
    %42 = tpu.matmul %40, %41, %cst_13 {dimension_numbers = #tpu.dot_dimension_numbers<[1], [0], [0], [1], [0, 0, 1, 1], [], []>} : vector<24x192xf32>, vector<192x24xf32>, vector<24x24xf32> -> vector<24x24xf32>
    %cst_14 = arith.constant 0.353553385 : f32
    %43 = vector.broadcast %cst_14 : f32 to vector<24x24xf32>
    %44 = arith.mulf %42, %43 : vector<24x24xf32>
    %45 = vector.extract_strided_slice %44 {offsets = [0, 0], sizes = [24, 8], strides = [1, 1]} : vector<24x24xf32> to vector<24x8xf32>
    %46 = vector.extract_strided_slice %44 {offsets = [0, 8], sizes = [24, 8], strides = [1, 1]} : vector<24x24xf32> to vector<24x8xf32>
    %47 = vector.extract_strided_slice %44 {offsets = [0, 16], sizes = [24, 8], strides = [1, 1]} : vector<24x24xf32> to vector<24x8xf32>
    %48 = arith.maximumf %45, %46 : vector<24x8xf32>
    %49 = arith.maximumf %48, %47 : vector<24x8xf32>
    %50 = arith.subf %45, %49 : vector<24x8xf32>
    %51 = math.exp %50 : vector<24x8xf32>
    %52 = arith.subf %46, %49 : vector<24x8xf32>
    %53 = math.exp %52 : vector<24x8xf32>
    %54 = arith.subf %47, %49 : vector<24x8xf32>
    %55 = math.exp %54 : vector<24x8xf32>
    %56 = arith.addf %51, %53 : vector<24x8xf32>
    %57 = arith.addf %56, %55 : vector<24x8xf32>
    %cst_15 = arith.constant 1.000000e+00 : f32
    %58 = vector.broadcast %cst_15 : f32 to vector<24x8xf32>
    %59 = arith.divf %58, %57 : vector<24x8xf32>
    %60 = arith.mulf %51, %59 : vector<24x8xf32>
    %61 = arith.mulf %53, %59 : vector<24x8xf32>
    %62 = arith.mulf %55, %59 : vector<24x8xf32>
    %63 = tpu.concatenate %60, %61, %62 in 1 : vector<24x8xf32>, vector<24x8xf32>, vector<24x8xf32> -> vector<24x24xf32>
    %c0_16 = arith.constant 0 : index
    %c0_17 = arith.constant 0 : index
    %64 = vector.load %arg15[%c0_16, %c0_17] : memref<24x192xf32, #tpu.memory_space<vmem>>, vector<24x192xf32>
    %cst_18 = arith.constant dense<0.000000e+00> : vector<24x192xf32>
    %65 = tpu.matmul %63, %64, %cst_18 {dimension_numbers = #tpu.dot_dimension_numbers<[1], [0], [0], [1], [0, 0, 1, 1], [], []>} : vector<24x24xf32>, vector<24x192xf32>, vector<24x192xf32> -> vector<24x192xf32>
    %66 = vector.extract_strided_slice %65 {offsets = [0, 0], sizes = [24, 64], strides = [1, 1]} : vector<24x192xf32> to vector<24x64xf32>
    %67 = arith.mulf %66, %24 : vector<24x64xf32>
    %68 = vector.extract_strided_slice %65 {offsets = [0, 64], sizes = [24, 64], strides = [1, 1]} : vector<24x192xf32> to vector<24x64xf32>
    %69 = arith.mulf %68, %33 : vector<24x64xf32>
    %70 = arith.addf %67, %69 : vector<24x64xf32>
    %71 = vector.extract_strided_slice %65 {offsets = [0, 128], sizes = [24, 64], strides = [1, 1]} : vector<24x192xf32> to vector<24x64xf32>
    %72 = arith.mulf %71, %36 : vector<24x64xf32>
    %73 = arith.addf %70, %72 : vector<24x64xf32>
    %c0_19 = arith.constant 0 : index
    %c0_20 = arith.constant 0 : index
    %74 = vector.load %arg7[%c0_19, %c0_20] : memref<8x64xf32, #tpu.memory_space<vmem>>, vector<1x64xf32>
    %c1 = arith.constant 1 : index
    %c0_21 = arith.constant 0 : index
    %75 = vector.load %arg7[%c1, %c0_21] : memref<8x64xf32, #tpu.memory_space<vmem>>, vector<1x64xf32>
    %c2 = arith.constant 2 : index
    %c0_22 = arith.constant 0 : index
    %76 = vector.load %arg7[%c2, %c0_22] : memref<8x64xf32, #tpu.memory_space<vmem>>, vector<1x64xf32>
    %c3 = arith.constant 3 : index
    %c0_23 = arith.constant 0 : index
    %77 = vector.load %arg7[%c3, %c0_23] : memref<8x64xf32, #tpu.memory_space<vmem>>, vector<1x64xf32>
    %c4 = arith.constant 4 : index
    %c0_24 = arith.constant 0 : index
    %78 = vector.load %arg7[%c4, %c0_24] : memref<8x64xf32, #tpu.memory_space<vmem>>, vector<1x64xf32>
    %c5 = arith.constant 5 : index
    %c0_25 = arith.constant 0 : index
    %79 = vector.load %arg7[%c5, %c0_25] : memref<8x64xf32, #tpu.memory_space<vmem>>, vector<1x64xf32>
    %c0_26 = arith.constant 0 : index
    %c0_27 = arith.constant 0 : index
    %80 = vector.load %arg6[%c0_26, %c0_27] : memref<64x64xf32, #tpu.memory_space<vmem>>, vector<64x64xf32>
    %cst_28 = arith.constant dense<0.000000e+00> : vector<24x64xf32>
    %81 = tpu.matmul %73, %80, %cst_28 {dimension_numbers = #tpu.dot_dimension_numbers<[1], [0], [0], [1], [0, 0, 1, 1], [], []>} : vector<24x64xf32>, vector<64x64xf32>, vector<24x64xf32> -> vector<24x64xf32>
    %82 = vector.broadcast %74 : vector<1x64xf32> to vector<24x64xf32>
    %83 = arith.addf %81, %82 : vector<24x64xf32>
    %84 = arith.addf %16, %83 : vector<24x64xf32>
    %cst_29 = arith.constant dense<0.000000e+00> : vector<24xf32>
    %85 = vector.multi_reduction <add>, %84, %cst_29 [1] : vector<24x64xf32> to vector<24xf32>
    %86 = vector.shape_cast %85 : vector<24xf32> to vector<24x1xf32>
    %cst_30 = arith.constant 6.400000e+01 : f32
    %87 = vector.broadcast %cst_30 : f32 to vector<24x1xf32>
    %88 = arith.divf %86, %87 : vector<24x1xf32>
    %89 = vector.broadcast %88 : vector<24x1xf32> to vector<24x64xf32>
    %90 = arith.subf %84, %89 : vector<24x64xf32>
    %91 = arith.mulf %90, %90 : vector<24x64xf32>
    %cst_31 = arith.constant dense<0.000000e+00> : vector<24xf32>
    %92 = vector.multi_reduction <add>, %91, %cst_31 [1] : vector<24x64xf32> to vector<24xf32>
    %93 = vector.shape_cast %92 : vector<24xf32> to vector<24x1xf32>
    %cst_32 = arith.constant 6.400000e+01 : f32
    %94 = vector.broadcast %cst_32 : f32 to vector<24x1xf32>
    %95 = arith.divf %93, %94 : vector<24x1xf32>
    %96 = vector.broadcast %88 : vector<24x1xf32> to vector<24x64xf32>
    %97 = arith.subf %84, %96 : vector<24x64xf32>
    %cst_33 = arith.constant 9.99999974E-6 : f32
    %98 = vector.broadcast %cst_33 : f32 to vector<24x1xf32>
    %99 = arith.addf %95, %98 : vector<24x1xf32>
    %100 = math.rsqrt %99 : vector<24x1xf32>
    %101 = vector.broadcast %100 : vector<24x1xf32> to vector<24x64xf32>
    %102 = arith.mulf %97, %101 : vector<24x64xf32>
    %103 = vector.broadcast %75 : vector<1x64xf32> to vector<24x64xf32>
    %104 = arith.mulf %102, %103 : vector<24x64xf32>
    %105 = vector.broadcast %76 : vector<1x64xf32> to vector<24x64xf32>
    %106 = arith.addf %104, %105 : vector<24x64xf32>
    %107 = arith.truncf %106 : vector<24x64xf32> to vector<24x64xbf16>
    %c0_34 = arith.constant 0 : index
    %c0_35 = arith.constant 0 : index
    %108 = vector.load %arg8[%c0_34, %c0_35] : memref<64x2048xbf16, #tpu.memory_space<vmem>>, vector<64x2048xbf16>
    %cst_36 = arith.constant dense<0.000000e+00> : vector<24x2048xf32>
    %109 = tpu.matmul %107, %108, %cst_36 {dimension_numbers = #tpu.dot_dimension_numbers<[1], [0], [0], [1], [0, 0, 1, 1], [], []>} : vector<24x64xbf16>, vector<64x2048xbf16>, vector<24x2048xf32> -> vector<24x2048xf32>
    %c0_37 = arith.constant 0 : index
    %c0_38 = arith.constant 0 : index
    %110 = vector.load %arg9[%c0_37, %c0_38] : memref<1x2048xf32, #tpu.memory_space<vmem>>, vector<1x2048xf32>
    %111 = vector.broadcast %110 : vector<1x2048xf32> to vector<24x2048xf32>
    %112 = arith.addf %109, %111 : vector<24x2048xf32>
    %cst_39 = arith.constant 0.000000e+00 : f32
    %113 = vector.broadcast %cst_39 : f32 to vector<24x2048xf32>
    %114 = arith.maximumf %112, %113 : vector<24x2048xf32>
    %115 = arith.truncf %114 : vector<24x2048xf32> to vector<24x2048xbf16>
    %c0_40 = arith.constant 0 : index
    %c0_41 = arith.constant 0 : index
    %116 = vector.load %arg10[%c0_40, %c0_41] : memref<2048x64xbf16, #tpu.memory_space<vmem>>, vector<2048x64xbf16>
    %cst_42 = arith.constant dense<0.000000e+00> : vector<24x64xf32>
    %117 = tpu.matmul %115, %116, %cst_42 {dimension_numbers = #tpu.dot_dimension_numbers<[1], [0], [0], [1], [0, 0, 1, 1], [], []>} : vector<24x2048xbf16>, vector<2048x64xbf16>, vector<24x64xf32> -> vector<24x64xf32>
    %118 = vector.broadcast %79 : vector<1x64xf32> to vector<24x64xf32>
    %119 = arith.addf %117, %118 : vector<24x64xf32>
    %120 = arith.addf %106, %119 : vector<24x64xf32>
    %cst_43 = arith.constant dense<0.000000e+00> : vector<24xf32>
    %121 = vector.multi_reduction <add>, %120, %cst_43 [1] : vector<24x64xf32> to vector<24xf32>
    %122 = vector.shape_cast %121 : vector<24xf32> to vector<24x1xf32>
    %cst_44 = arith.constant 6.400000e+01 : f32
    %123 = vector.broadcast %cst_44 : f32 to vector<24x1xf32>
    %124 = arith.divf %122, %123 : vector<24x1xf32>
    %125 = vector.broadcast %124 : vector<24x1xf32> to vector<24x64xf32>
    %126 = arith.subf %120, %125 : vector<24x64xf32>
    %127 = arith.mulf %126, %126 : vector<24x64xf32>
    %cst_45 = arith.constant dense<0.000000e+00> : vector<24xf32>
    %128 = vector.multi_reduction <add>, %127, %cst_45 [1] : vector<24x64xf32> to vector<24xf32>
    %129 = vector.shape_cast %128 : vector<24xf32> to vector<24x1xf32>
    %cst_46 = arith.constant 6.400000e+01 : f32
    %130 = vector.broadcast %cst_46 : f32 to vector<24x1xf32>
    %131 = arith.divf %129, %130 : vector<24x1xf32>
    %132 = vector.broadcast %124 : vector<24x1xf32> to vector<24x64xf32>
    %133 = arith.subf %120, %132 : vector<24x64xf32>
    %cst_47 = arith.constant 9.99999974E-6 : f32
    %134 = vector.broadcast %cst_47 : f32 to vector<24x1xf32>
    %135 = arith.addf %131, %134 : vector<24x1xf32>
    %136 = math.rsqrt %135 : vector<24x1xf32>
    %137 = vector.broadcast %136 : vector<24x1xf32> to vector<24x64xf32>
    %138 = arith.mulf %133, %137 : vector<24x64xf32>
    %139 = vector.broadcast %77 : vector<1x64xf32> to vector<24x64xf32>
    %140 = arith.mulf %138, %139 : vector<24x64xf32>
    %141 = vector.broadcast %78 : vector<1x64xf32> to vector<24x64xf32>
    %142 = arith.addf %140, %141 : vector<24x64xf32>
    %143 = vector.extract_strided_slice %142 {offsets = [0, 0], sizes = [8, 64], strides = [1, 1]} : vector<24x64xf32> to vector<8x64xf32>
    %c0_48 = arith.constant 0 : index
    %c0_49 = arith.constant 0 : index
    %144 = vector.load %arg11[%c0_48, %c0_49] : memref<192x128xf32, #tpu.memory_space<vmem>>, vector<64x128xf32>
    %cst_50 = arith.constant dense<0.000000e+00> : vector<8x128xf32>
    %145 = tpu.matmul %143, %144, %cst_50 {dimension_numbers = #tpu.dot_dimension_numbers<[1], [0], [0], [1], [0, 0, 1, 1], [], []>} : vector<8x64xf32>, vector<64x128xf32>, vector<8x128xf32> -> vector<8x128xf32>
    %146 = vector.extract_strided_slice %142 {offsets = [8, 0], sizes = [8, 64], strides = [1, 1]} : vector<24x64xf32> to vector<8x64xf32>
    %c64 = arith.constant 64 : index
    %c0_51 = arith.constant 0 : index
    %147 = vector.load %arg11[%c64, %c0_51] : memref<192x128xf32, #tpu.memory_space<vmem>>, vector<64x128xf32>
    %cst_52 = arith.constant dense<0.000000e+00> : vector<8x128xf32>
    %148 = tpu.matmul %146, %147, %cst_52 {dimension_numbers = #tpu.dot_dimension_numbers<[1], [0], [0], [1], [0, 0, 1, 1], [], []>} : vector<8x64xf32>, vector<64x128xf32>, vector<8x128xf32> -> vector<8x128xf32>
    %149 = arith.addf %145, %148 : vector<8x128xf32>
    %150 = vector.extract_strided_slice %142 {offsets = [16, 0], sizes = [8, 64], strides = [1, 1]} : vector<24x64xf32> to vector<8x64xf32>
    %c128 = arith.constant 128 : index
    %c0_53 = arith.constant 0 : index
    %151 = vector.load %arg11[%c128, %c0_53] : memref<192x128xf32, #tpu.memory_space<vmem>>, vector<64x128xf32>
    %cst_54 = arith.constant dense<0.000000e+00> : vector<8x128xf32>
    %152 = tpu.matmul %150, %151, %cst_54 {dimension_numbers = #tpu.dot_dimension_numbers<[1], [0], [0], [1], [0, 0, 1, 1], [], []>} : vector<8x64xf32>, vector<64x128xf32>, vector<8x128xf32> -> vector<8x128xf32>
    %153 = arith.addf %149, %152 : vector<8x128xf32>
    %c0_55 = arith.constant 0 : index
    %c0_56 = arith.constant 0 : index
    %154 = vector.load %arg13[%c0_55, %c0_56] : memref<8x128xf32, #tpu.memory_space<vmem>>, vector<1x128xf32>
    %155 = vector.broadcast %154 : vector<1x128xf32> to vector<8x128xf32>
    %156 = arith.addf %153, %155 : vector<8x128xf32>
    %cst_57 = arith.constant 0.000000e+00 : f32
    %157 = vector.broadcast %cst_57 : f32 to vector<8x128xf32>
    %158 = arith.maximumf %156, %157 : vector<8x128xf32>
    %c0_58 = arith.constant 0 : index
    %c0_59 = arith.constant 0 : index
    %159 = vector.load %arg12[%c0_58, %c0_59] : memref<128x128xf32, #tpu.memory_space<vmem>>, vector<128x128xf32>
    %cst_60 = arith.constant dense<0.000000e+00> : vector<8x128xf32>
    %160 = tpu.matmul %158, %159, %cst_60 {dimension_numbers = #tpu.dot_dimension_numbers<[1], [0], [0], [1], [0, 0, 1, 1], [], []>} : vector<8x128xf32>, vector<128x128xf32>, vector<8x128xf32> -> vector<8x128xf32>
    %c1_61 = arith.constant 1 : index
    %c0_62 = arith.constant 0 : index
    %161 = vector.load %arg13[%c1_61, %c0_62] : memref<8x128xf32, #tpu.memory_space<vmem>>, vector<1x128xf32>
    %162 = vector.broadcast %161 : vector<1x128xf32> to vector<8x128xf32>
    %163 = arith.addf %160, %162 : vector<8x128xf32>
    %c0_63 = arith.constant 0 : index
    %c0_64 = arith.constant 0 : index
    %164 = vector.load %arg16[%c0_63, %c0_64] : memref<8x128xf32, #tpu.memory_space<vmem>>, vector<8x128xf32>
    tpu.vector_store %arg16[%c0_63, %c0_64], %163 {strides = array<i32>} : memref<8x128xf32, #tpu.memory_space<vmem>>, vector<8x128xf32>,
    return
  }
  func.func @transform_0(%arg0: i32) -> (i32, i32) {
    %c0_i32 = arith.constant 0 : i32
    %c0_i32_0 = arith.constant 0 : i32
    %c0_i32_1 = arith.constant 0 : i32
    return %c0_i32, %c0_i32_0 : i32, i32
  }
  func.func @transform_1(%arg0: i32) -> (i32, i32) {
    %c0_i32 = arith.constant 0 : i32
    %c0_i32_0 = arith.constant 0 : i32
    return %arg0, %c0_i32 : i32, i32
  }
  func.func @transform_2(%arg0: i32) -> (i32, i32) {
    %c0_i32 = arith.constant 0 : i32
    %c0_i32_0 = arith.constant 0 : i32
    %c0_i32_1 = arith.constant 0 : i32
    return %c0_i32, %c0_i32_0 : i32, i32
  }
  func.func @transform_3(%arg0: i32) -> (i32, i32) {
    %c0_i32 = arith.constant 0 : i32
    %c0_i32_0 = arith.constant 0 : i32
    %c0_i32_1 = arith.constant 0 : i32
    return %c0_i32, %c0_i32_0 : i32, i32
  }
  func.func @transform_4(%arg0: i32) -> (i32, i32) {
    %c0_i32 = arith.constant 0 : i32
    %c0_i32_0 = arith.constant 0 : i32
    %c0_i32_1 = arith.constant 0 : i32
    return %c0_i32, %c0_i32_0 : i32, i32
  }
  func.func @transform_5(%arg0: i32) -> (i32, i32) {
    %c0_i32 = arith.constant 0 : i32
    %c0_i32_0 = arith.constant 0 : i32
    %c0_i32_1 = arith.constant 0 : i32
    return %c0_i32, %c0_i32_0 : i32, i32
  }
  func.func @transform_6(%arg0: i32) -> (i32, i32) {
    %c0_i32 = arith.constant 0 : i32
    %c0_i32_0 = arith.constant 0 : i32
    %c0_i32_1 = arith.constant 0 : i32
    return %c0_i32, %c0_i32_0 : i32, i32
  }
  func.func @transform_7(%arg0: i32) -> (i32, i32) {
    %c0_i32 = arith.constant 0 : i32
    %c0_i32_0 = arith.constant 0 : i32
    %c0_i32_1 = arith.constant 0 : i32
    return %c0_i32, %c0_i32_0 : i32, i32
  }
  func.func @transform_8(%arg0: i32) -> (i32, i32) {
    %c0_i32 = arith.constant 0 : i32
    %c0_i32_0 = arith.constant 0 : i32
    %c0_i32_1 = arith.constant 0 : i32
    return %c0_i32, %c0_i32_0 : i32, i32
  }
  func.func @transform_9(%arg0: i32) -> (i32, i32) {
    %c0_i32 = arith.constant 0 : i32
    %c0_i32_0 = arith.constant 0 : i32
    %c0_i32_1 = arith.constant 0 : i32
    return %c0_i32, %c0_i32_0 : i32, i32
  }
  func.func @transform_10(%arg0: i32) -> (i32, i32) {
    %c0_i32 = arith.constant 0 : i32
    %c0_i32_0 = arith.constant 0 : i32
    %c0_i32_1 = arith.constant 0 : i32
    return %c0_i32, %c0_i32_0 : i32, i32
  }
  func.func @transform_11(%arg0: i32) -> (i32, i32) {
    %c0_i32 = arith.constant 0 : i32
    %c0_i32_0 = arith.constant 0 : i32
    %c0_i32_1 = arith.constant 0 : i32
    return %c0_i32, %c0_i32_0 : i32, i32
  }
  func.func @transform_12(%arg0: i32) -> (i32, i32) {
    %c0_i32 = arith.constant 0 : i32
    %c0_i32_0 = arith.constant 0 : i32
    %c0_i32_1 = arith.constant 0 : i32
    return %c0_i32, %c0_i32_0 : i32, i32
  }
  func.func @transform_13(%arg0: i32) -> (i32, i32) {
    %c0_i32 = arith.constant 0 : i32
    %c0_i32_0 = arith.constant 0 : i32
    %c0_i32_1 = arith.constant 0 : i32
    return %c0_i32, %c0_i32_0 : i32, i32
  }
  func.func @transform_14(%arg0: i32) -> (i32, i32) {
    %c0_i32 = arith.constant 0 : i32
    %c0_i32_0 = arith.constant 0 : i32
    %c0_i32_1 = arith.constant 0 : i32
    return %c0_i32, %c0_i32_0 : i32, i32
  }
  func.func @transform_15(%arg0: i32) -> (i32, i32) {
    %c0_i32 = arith.constant 0 : i32
    %c0_i32_0 = arith.constant 0 : i32
    return %arg0, %c0_i32 : i32, i32
  }
}

</mosaic_0001>

<bundles_post_ra>
// kernel: _lambda_.2
= control target key start
LH: loop header
LB: loop body
LE: loop exit
PB: predicated region body
PF: predicated region fallthrough
CT: control target
= control target key end

     0   :  { %15 = vsyncpa [#allocation3], 0  ;;  %s3276_s0 = inlined_call_operand.hbm [shape: f32[8,1024], index: 0, kind: input, shape index: {}]   ;;  %s3277_s1 = inlined_call_operand.hbm [shape: f32[8,1024], index: 1, kind: input, shape index: {}]   ;;  %s3278_s2 = inlined_call_operand.hbm [shape: bf16[1024,64], index: 2, kind: input, shape index: {}]   ;;  %s3279_s3 = inlined_call_operand.hbm [shape: bf16[1024,64], index: 3, kind: input, shape index: {}]   ;;  %s3280_s4 = inlined_call_operand.hbm [shape: f32[8,128], index: 4, kind: input, shape index: {}]   ;;  %s3281_s5 = inlined_call_operand.hbm [shape: f32[128,128], index: 5, kind: input, shape index: {}]   ;;  %s3282_s6 = inlined_call_operand.hbm [shape: f32[128,128], index: 6, kind: input, shape index: {}]   ;;  %s3283_s7 = inlined_call_operand.hbm [shape: f32[128,128], index: 7, kind: input, shape index: {}]   ;;  %s3284_s8 = inlined_call_operand.hbm [shape: f32[8,256], index: 8, kind: output, shape index: {0}]   ;;  %s3285_s9 = inlined_call_operand.hbm [shape: f32[8,128], index: 9, kind: output, shape index: {1}]  }
   0x1   :  { %16 = vsyncpa [#allocation6], 0 }
   0x2   :  { %17 = vsyncpa [#allocation9], 0 }
   0x3   :  { %18 = vsyncpa [#allocation12], 0 }
   0x4   :  { %19 = vsyncpa [#allocation15], 0 }
   0x5   :  { %20 = vsyncpa [#allocation4], 0 }
   0x6   :  { %21 = vsyncpa [#allocation18], 0  ;;  %s3020_s30 = smov [#allocation5]   ;;  %s2786_s13 = scalar_lea.hbm %s3277_s1, 1024 }
   0x7   :  { %s38_s10 = sshll.u32 %s3020_s30, 4  ;;  %p2787_p0 = scmp.ne.s32.totalorder %s3277_s1, %s2786_s13  ;;  %s39_s10 = int_to_ptr.vmem [resolvable:$true] %s38_s10 }
   0x8   :  { %p2790_p1 = scmp.lt.u32.totalorder %s2786_s13, %s3277_s1 }
   0xa   :  { %p2792_p2 = pnand %p2790_p1, %p2787_p0 }
   0xc   :  { %2795 = shalt.err (!%p2792_p2)
}
   0xd   :  { %s2796_s18 = scalar_lea.vmem %s39_s10, 1024  ;;  %p2801_p4 = scmp.lt.s32.totalorder %s39_s10, %s39_s10 }
   0xe   :  { %p2797_p3 = scmp.ne.s32.totalorder %s39_s10, %s2796_s18  ;;  %p2802_p5 = scmp.lt.s32.totalorder %s2796_s18, %s2796_s18 }
  0x10   :  { %p2803_p6 = por %p2802_p5, %p2801_p4 }
  0x12   :  { %p2804_p7 = pnand %p2803_p6, %p2797_p3 }
  0x14   :  { %2807 = shalt.err (!%p2804_p7)
}
  0x15   :  { %41 = dma.hbm_to_vmem [thread:$0]  %s3277_s1, 1024, %s39_s10, [#allocation6]  }
  0x16   :  { %s3021_s21 = smov [#allocation8]   ;;  %s3022_s23 = smov [#allocation11]  }
  0x17   :  { %s59_s22 = sshll.u32 %s3021_s21, 4  ;;  %s81_s24 = sshll.u32 %s3022_s23, 4  ;;  %s60_s22 = int_to_ptr.vmem [resolvable:$true] %s59_s22  ;;  %s82_s24 = int_to_ptr.vmem [resolvable:$true] %s81_s24 }
  0x18   :  { %s2808_s27 = scalar_lea.hbm %s3279_s3, 8192 }
  0x19   :  { %p2809_p8 = scmp.ne.s32.totalorder %s3279_s3, %s2808_s27  ;;  %p2812_p9 = scmp.lt.u32.totalorder %s2808_s27, %s3279_s3 }
  0x1b   :  { %p2814_p10 = pnand %p2812_p9, %p2809_p8 }
  0x1d   :  { %2817 = shalt.err (!%p2814_p10)
}
  0x1e   :  { %s2818_s1 = scalar_lea.vmem %s60_s22, 8192  ;;  %p2823_p12 = scmp.lt.s32.totalorder %s60_s22, %s60_s22 }
  0x1f   :  { %p2819_p11 = scmp.ne.s32.totalorder %s60_s22, %s2818_s1  ;;  %p2824_p13 = scmp.lt.s32.totalorder %s2818_s1, %s2818_s1 }
  0x21   :  { %p2825_p0 = por %p2824_p13, %p2823_p12 }
  0x23   :  { %p2826_p1 = pnand %p2825_p0, %p2819_p11 }
  0x25   :  { %2829 = shalt.err (!%p2826_p1)
}
  0x26   :  { %s3023_s10 = smov 64   ;;  %s3024_s12 = smov 4  }
  0x27   :  { %65 = dma.hbm_to_vmem [thread:$0]  %s3279_s3, 8192, %s60_s22, [#allocation9], %s3023_s10, %s3023_s10, %s3024_s12  }
  0x28   :  { %s2830_s17 = scalar_lea.hbm %s3281_s5, 2048 }
  0x29   :  { %p2831_p2 = scmp.ne.s32.totalorder %s3281_s5, %s2830_s17  ;;  %p2834_p3 = scmp.lt.u32.totalorder %s2830_s17, %s3281_s5 }
  0x2b   :  { %p2836_p4 = pnand %p2834_p3, %p2831_p2 }
  0x2d   :  { %2839 = shalt.err (!%p2836_p4)
}
  0x2e   :  { %s2840_s23 = scalar_lea.vmem %s82_s24, 2048  ;;  %p2845_p6 = scmp.lt.s32.totalorder %s82_s24, %s82_s24 }
  0x2f   :  { %p2841_p5 = scmp.ne.s32.totalorder %s82_s24, %s2840_s23  ;;  %p2846_p7 = scmp.lt.s32.totalorder %s2840_s23, %s2840_s23 }
  0x31   :  { %p2847_p8 = por %p2846_p7, %p2845_p6 }
  0x33   :  { %p2848_p9 = pnand %p2847_p8, %p2841_p5 }
  0x35   :  { %2851 = shalt.err (!%p2848_p9)
}
  0x36   :  { %s3025_s3 = smov 128   ;;  %s3026_s22 = smov 8  }
  0x37   :  { %87 = dma.hbm_to_vmem [thread:$0]  %s3281_s5, 2048, %s82_s24, [#allocation12], %s3025_s3, %s3025_s3, %s3026_s22  }
  0x38   :  { %s3027_s27 = smov [#allocation2]   ;;  %s3028_s29 = smov [#allocation7]  }
  0x39   :  { %s28_s28 = sshll.u32 %s3027_s27, 4  ;;  %s47_s30 = sshll.u32 %s3028_s29, 4  ;;  %s29_s28 = int_to_ptr.vmem [resolvable:$true] %s28_s28  ;;  %s48_s30 = int_to_ptr.vmem [resolvable:$true] %s47_s30 }
  0x3a   :  { %s2852_s13 = scalar_lea.hbm %s3276_s0, 1024 }
  0x3b   :  { %p2853_p10 = scmp.ne.s32.totalorder %s3276_s0, %s2852_s13  ;;  %p2856_p11 = scmp.lt.u32.totalorder %s2852_s13, %s3276_s0 }
  0x3d   :  { %p2858_p12 = pnand %p2856_p11, %p2853_p10 }
  0x3f   :  { %2861 = shalt.err (!%p2858_p12)
}
  0x40   :  { %s2862_s5 = scalar_lea.vmem %s29_s28, 1024  ;;  %p2867_p0 = scmp.lt.s32.totalorder %s29_s28, %s29_s28 }
  0x41   :  { %p2863_p13 = scmp.ne.s32.totalorder %s29_s28, %s2862_s5  ;;  %p2868_p1 = scmp.lt.s32.totalorder %s2862_s5, %s2862_s5 }
  0x43   :  { %p2869_p2 = por %p2868_p1, %p2867_p0 }
  0x45   :  { %p2870_p3 = pnand %p2869_p2, %p2863_p13 }
  0x47   :  { %2873 = shalt.err (!%p2870_p3)
}
  0x48   :  { %31 = dma.hbm_to_vmem [thread:$0]  %s3276_s0, 1024, %s29_s28, [#allocation3]  }
  0x49   :  { %s2874_s21 = scalar_lea.hbm %s3278_s2, 8192 }
  0x4a   :  { %p2875_p4 = scmp.ne.s32.totalorder %s3278_s2, %s2874_s21  ;;  %p2878_p5 = scmp.lt.u32.totalorder %s2874_s21, %s3278_s2 }
  0x4c   :  { %p2880_p6 = pnand %p2878_p5, %p2875_p4 }
  0x4e   :  { %2883 = shalt.err (!%p2880_p6)
}
  0x4f   :  { %s2884_s29 = scalar_lea.vmem %s48_s30, 8192  ;;  %p2889_p8 = scmp.lt.s32.totalorder %s48_s30, %s48_s30 }
  0x50   :  { %p2885_p7 = scmp.ne.s32.totalorder %s48_s30, %s2884_s29  ;;  %p2890_p9 = scmp.lt.s32.totalorder %s2884_s29, %s2884_s29 }
  0x52   :  { %p2891_p10 = por %p2890_p9, %p2889_p8 }
  0x54   :  { %p2892_p11 = pnand %p2891_p10, %p2885_p7 }
  0x56   :  { %2895 = shalt.err (!%p2892_p11)
}
  0x57   :  { %53 = dma.hbm_to_vmem [thread:$0]  %s3278_s2, 8192, %s48_s30, [#allocation6], %s3023_s10, %s3023_s10, %s3024_s12  }
  0x58   :  { %s3029_s11 = smov [#allocation10]   ;;  %s3030_s13 = smov [#allocation13]  }
  0x59   :  { %s72_s1 = sshll.u32 %s3029_s11, 4  ;;  %s93_s14 = sshll.u32 %s3030_s13, 4  ;;  %s73_s1 = int_to_ptr.vmem [resolvable:$true] %s72_s1  ;;  %s94_s14 = int_to_ptr.vmem [resolvable:$true] %s93_s14 }
  0x5a   :  { %s2896_s17 = scalar_lea.hbm %s3280_s4, 128 }
  0x5b   :  { %p2897_p12 = scmp.ne.s32.totalorder %s3280_s4, %s2896_s17  ;;  %p2900_p13 = scmp.lt.u32.totalorder %s2896_s17, %s3280_s4 }
  0x5d   :  { %p2902_p0 = pnand %p2900_p13, %p2897_p12 }
  0x5f   :  { %2905 = shalt.err (!%p2902_p0)
}
  0x60   :  { %s2906_s2 = scalar_lea.vmem %s73_s1, 128  ;;  %p2911_p2 = scmp.lt.s32.totalorder %s73_s1, %s73_s1 }
  0x61   :  { %p2907_p1 = scmp.ne.s32.totalorder %s73_s1, %s2906_s2  ;;  %p2912_p3 = scmp.lt.s32.totalorder %s2906_s2, %s2906_s2 }
  0x63   :  { %p2913_p4 = por %p2912_p3, %p2911_p2 }
  0x65   :  { %p2914_p5 = pnand %p2913_p4, %p2907_p1 }
  0x67   :  { %2917 = shalt.err (!%p2914_p5)
}
  0x68   :  { %75 = dma.hbm_to_vmem [thread:$0]  %s3280_s4, 128, %s73_s1, [#allocation9]  }
  0x69   :  { %s2918_s23 = scalar_lea.hbm %s3282_s6, 2048 }
  0x6a   :  { %p2919_p6 = scmp.ne.s32.totalorder %s3282_s6, %s2918_s23  ;;  %p2922_p7 = scmp.lt.u32.totalorder %s2918_s23, %s3282_s6 }
  0x6c   :  { %p2924_p8 = pnand %p2922_p7, %p2919_p6 }
  0x6e   :  { %2927 = shalt.err (!%p2924_p8)
}
  0x6f   :  { %s2928_s0 = scalar_lea.vmem %s94_s14, 2048  ;;  %p2933_p10 = scmp.lt.s32.totalorder %s94_s14, %s94_s14 }
  0x70   :  { %p2929_p9 = scmp.ne.s32.totalorder %s94_s14, %s2928_s0  ;;  %p2934_p11 = scmp.lt.s32.totalorder %s2928_s0, %s2928_s0 }
  0x72   :  { %p2935_p12 = por %p2934_p11, %p2933_p10 }
  0x74   :  { %p2936_p13 = pnand %p2935_p12, %p2929_p9 }
  0x76   :  { %2939 = shalt.err (!%p2936_p13)
}
  0x77   :  { %99 = dma.hbm_to_vmem [thread:$0]  %s3282_s6, 2048, %s94_s14, [#allocation12], %s3025_s3, %s3025_s3, %s3026_s22  }
  0x78   :  { %s3031_s11 = smov [#allocation14]   ;;  %s2940_s16 = scalar_lea.hbm %s3283_s7, 2048 }
  0x79   :  { %s105_s1 = sshll.u32 %s3031_s11, 4  ;;  %p2941_p0 = scmp.ne.s32.totalorder %s3283_s7, %s2940_s16  ;;  %s106_s1 = int_to_ptr.vmem [resolvable:$true] %s105_s1 }
  0x7a   :  { %p2944_p1 = scmp.lt.u32.totalorder %s2940_s16, %s3283_s7 }
  0x7c   :  { %p2946_p2 = pnand %p2944_p1, %p2941_p0 }
  0x7e   :  { %2949 = shalt.err (!%p2946_p2)
}
  0x7f   :  { %s2950_s19 = scalar_lea.vmem %s106_s1, 2048  ;;  %p2955_p4 = scmp.lt.s32.totalorder %s106_s1, %s106_s1 }
  0x80   :  { %p2951_p3 = scmp.ne.s32.totalorder %s106_s1, %s2950_s19  ;;  %p2956_p5 = scmp.lt.s32.totalorder %s2950_s19, %s2950_s19 }
  0x82   :  { %p2957_p6 = por %p2956_p5, %p2955_p4 }
  0x84   :  { %p2958_p7 = pnand %p2957_p6, %p2951_p3 }
  0x86   :  { %2961 = shalt.err (!%p2958_p7)
}
  0x87   :  { %111 = dma.hbm_to_vmem [thread:$0]  %s3283_s7, 2048, %s106_s1, [#allocation15], %s3025_s3, %s3025_s3, %s3026_s22  }
  0x88   :  { %3006 = dma.done.wait [#allocation3], 1024  }
  0x89   :  { %3007 = vsyncadd [#allocation3], 4294966272 }
  0x8a   :  { %3008 = dma.done.wait [#allocation6], 9216  }
  0x8b   :  { %3009 = vsyncadd [#allocation6], 4294958080 }
  0x8c   :  { %3010 = dma.done.wait [#allocation9], 8320  }
  0x8d   :  { %3011 = vsyncadd [#allocation9], 4294958976 }
  0x8e   :  { %3012 = dma.done.wait [#allocation12], 4096  }
  0x8f   :  { %3013 = vsyncadd [#allocation12], 4294963200 }
  0x90   :  { %3014 = dma.done.wait [#allocation15], 2048  }
  0x91   :  { %3015 = vsyncadd [#allocation15], 4294965248  ;;  %v2632_v0 = vld [vmem:[#allocation7 + $0x40] sm:$0xff]   ;;  %v2636_v4 = vld [vmem:[#allocation7 + $0x48] sm:$0xff]   ;;  %vm3033_vm0 = vmmov 0   ;;  %vm1522_vm1 = vcmask 523264  }
  0x92   :  { %v2633_v1 = vld [vmem:[#allocation7 + $0xc0] sm:$0xff]   ;;  %2135 = vmatprep.subr.bf16.mxu0 %v2632_v0  ;;  %v2637_v5 = vld [vmem:[#allocation7 + $0xc8] sm:$0xff]   ;;  %v2640_v8 = vld [vmem:[#allocation7 + $0x50] sm:$0xff]   ;;  %vm1906_vm2 = vcmask 1048064   ;;  %s3035_s7 = smov [#allocation16]  }
  0x93   :  { %v2634_v2 = vld [vmem:[#allocation7] sm:$0xff]   ;;  %2157 = vmatprep.subr.bf16.mxu1 %v2633_v1  ;;  %v2638_v6 = vld [vmem:[#allocation7 + $0x8] sm:$0xff]   ;;  %v2641_v9 = vld [vmem:[#allocation7 + $0xd0] sm:$0xff]   ;;  %s1973_s3 = sshll.u32 %s3035_s7, 4  ;;  %s1974_s3 = int_to_ptr.vmem [resolvable:$true] %s1973_s3 }
  0x94   :  { %v2635_v3 = vld [vmem:[#allocation7 + $0x80] sm:$0xff]   ;;  %2136 = vmatpush3.bf16.msra.mxu0 %v2634_v2  ;;  %v2639_v7 = vld [vmem:[#allocation7 + $0x88] sm:$0xff]   ;;  %v2642_v10 = vld [vmem:[#allocation7 + $0x10] sm:$0xff]   ;;  %p2967_p9 = scmp.lt.s32.totalorder %s1974_s3, %s1974_s3 }
  0x95   :  { %2158 = vmatpush3.bf16.msra.mxu1 %v2635_v3  ;;  %2137 = vmatprep.subr.bf16.mxu0 %v2636_v4  ;;  %v2643_v11 = vld [vmem:[#allocation7 + $0x90] sm:$0xff]   ;;  %v2644_v12 = vld [vmem:[#allocation7 + $0x58] sm:$0xff]   ;;  %v2648_v16 = vld [vmem:[#allocation7 + $0x60] sm:$0xff]  }
  0x96   :  { %2159 = vmatprep.subr.bf16.mxu1 %v2637_v5  ;;  %v2645_v13 = vld [vmem:[#allocation7 + $0xd8] sm:$0xff]   ;;  %v2649_v17 = vld [vmem:[#allocation7 + $0xe0] sm:$0xff]   ;;  %v2652_v20 = vld [vmem:[#allocation7 + $0x68] sm:$0xff]  }
  0x97   :  { %v2646_v14 = vld [vmem:[#allocation7 + $0x18] sm:$0xff]   ;;  %v2650_v18 = vld [vmem:[#allocation7 + $0x20] sm:$0xff]   ;;  %v2653_v21 = vld [vmem:[#allocation7 + $0xe8] sm:$0xff]  }
  0x98   :  { %2138 = vmatpush3.bf16.msra.mxu0 %v2638_v6  ;;  %v2647_v15 = vld [vmem:[#allocation7 + $0x98] sm:$0xff]   ;;  %v2651_v19 = vld [vmem:[#allocation7 + $0xa0] sm:$0xff]   ;;  %v2654_v22 = vld [vmem:[#allocation7 + $0x28] sm:$0xff]  }
  0x99   :  { %2160 = vmatpush3.bf16.msra.mxu1 %v2639_v7  ;;  %2139 = vmatprep.subr.bf16.mxu0 %v2640_v8  ;;  %v2655_v23 = vld [vmem:[#allocation7 + $0xa8] sm:$0xff]   ;;  %v2656_v24 = vld [vmem:[#allocation7 + $0x70] sm:$0xff]   ;;  %v2660_v28 = vld [vmem:[#allocation7 + $0x78] sm:$0xff]  }
  0x9a   :  { %2161 = vmatprep.subr.bf16.mxu1 %v2641_v9  ;;  %v2657_v25 = vld [vmem:[#allocation7 + $0xf0] sm:$0xff]   ;;  %v2661_v29 = vld [vmem:[#allocation7 + $0xf8] sm:$0xff]   ;;  %v143_v32 = vld [vmem:[#allocation2 + $0x8] sm:$0xff] }
  0x9b   :  { %v2658_v26 = vld [vmem:[#allocation7 + $0x30] sm:$0xff]   ;;  %v2662_v30 = vld [vmem:[#allocation7 + $0x38] sm:$0xff]   ;;  %v142_v34 = vld [vmem:[#allocation2] sm:$0xff]  ;;  %v151_v35 = vpack.c.bf16 %v143_v32, %v143_v32 }
  0x9c   :  { %2140 = vmatpush3.bf16.msra.mxu0 %v2642_v10  ;;  %v2659_v27 = vld [vmem:[#allocation7 + $0xb0] sm:$0xff]   ;;  %v2663_v31 = vld [vmem:[#allocation7 + $0xb8] sm:$0xff]   ;;  %v150_v37 = vpack.c.bf16 %v142_v34, %v142_v34  ;;  %v2664_v40 = vld [vmem:[#allocation7 + $0x140] sm:$0xff]  }
  0x9d   :  { %2162 = vmatpush3.bf16.msra.mxu1 %v2643_v11  ;;  %2141 = vmatprep.subr.bf16.mxu0 %v2644_v12  ;;  %v145_v33 = vld [vmem:[#allocation2 + $0x18] sm:$0xff]  ;;  %v144_v38 = vld [vmem:[#allocation2 + $0x10] sm:$0xff]  ;;  %v2665_v41 = vld [vmem:[#allocation7 + $0x1c0] sm:$0xff]  }
  0x9e   :  { %2163 = vmatprep.subr.bf16.mxu1 %v2645_v13  ;;  %v153_v36 = vpack.c.bf16 %v145_v33, %v145_v33  ;;  %v152_v39 = vpack.c.bf16 %v144_v38, %v144_v38  ;;  %702 = vmatprep.mubr.bf16.mxu0 %v151_v35  ;;  %v2666_v42 = vld [vmem:[#allocation7 + $0x100] sm:$0xff]   ;;  %v2668_v44 = vld [vmem:[#allocation7 + $0x148] sm:$0xff]   ;;  %v2672_v48 = vld [vmem:[#allocation7 + $0x150] sm:$0xff]  }
  0x9f   :  { %v2667_v43 = vld [vmem:[#allocation7 + $0x180] sm:$0xff]   ;;  %v2669_v45 = vld [vmem:[#allocation7 + $0x1c8] sm:$0xff]   ;;  %v2673_v49 = vld [vmem:[#allocation7 + $0x1d0] sm:$0xff]  }
  0xa0   :  { %2142 = vmatpush3.bf16.msra.mxu0 %v2646_v14  ;;  %742 = vmatprep.mubr.bf16.mxu1 %v153_v36  ;;  %v2670_v46 = vld [vmem:[#allocation7 + $0x108] sm:$0xff]   ;;  %v2674_v50 = vld [vmem:[#allocation7 + $0x110] sm:$0xff]   ;;  %v2676_v52 = vld [vmem:[#allocation7 + $0x158] sm:$0xff]  }
  0xa1   :  { %2164 = vmatpush3.bf16.msra.mxu1 %v2647_v15  ;;  %2143 = vmatprep.subr.bf16.mxu0 %v2648_v16  ;;  %v2671_v47 = vld [vmem:[#allocation7 + $0x188] sm:$0xff]   ;;  %v2675_v51 = vld [vmem:[#allocation7 + $0x190] sm:$0xff]   ;;  %v2677_v53 = vld [vmem:[#allocation7 + $0x1d8] sm:$0xff]  }
  0xa2   :  { %2165 = vmatprep.subr.bf16.mxu1 %v2649_v17  ;;  %v2678_v54 = vld [vmem:[#allocation7 + $0x118] sm:$0xff]   ;;  %v2680_v56 = vld [vmem:[#allocation7 + $0x160] sm:$0xff]   ;;  %v2684_v60 = vld [vmem:[#allocation7 + $0x168] sm:$0xff]  }
  0xa3   :  { %v2679_v55 = vld [vmem:[#allocation7 + $0x198] sm:$0xff]   ;;  %v2681_v57 = vld [vmem:[#allocation7 + $0x1e0] sm:$0xff]   ;;  %v2685_v61 = vld [vmem:[#allocation7 + $0x1e8] sm:$0xff]  }
  0xa4   :  { %2144 = vmatpush3.bf16.msra.mxu0 %v2650_v18  ;;  %v2682_v58 = vld [vmem:[#allocation7 + $0x120] sm:$0xff]   ;;  %v2686_v62 = vld [vmem:[#allocation7 + $0x128] sm:$0xff]   ;;  %v2688_v0 = vld [vmem:[#allocation7 + $0x170] sm:$0xff]  }
  0xa5   :  { %2166 = vmatpush3.bf16.msra.mxu1 %v2651_v19  ;;  %2145 = vmatprep.subr.bf16.mxu0 %v2652_v20  ;;  %v2683_v59 = vld [vmem:[#allocation7 + $0x1a0] sm:$0xff]   ;;  %v2687_v63 = vld [vmem:[#allocation7 + $0x1a8] sm:$0xff]   ;;  %v2689_v1 = vld [vmem:[#allocation7 + $0x1f0] sm:$0xff]  }
  0xa6   :  { %2167 = vmatprep.subr.bf16.mxu1 %v2653_v21  ;;  %v2690_v2 = vld [vmem:[#allocation7 + $0x130] sm:$0xff]   ;;  %v2692_v4 = vld [vmem:[#allocation7 + $0x178] sm:$0xff]   ;;  %v147_v8 = vld [vmem:[#allocation2 + $0x28] sm:$0xff] }
  0xa7   :  { %v2691_v3 = vld [vmem:[#allocation7 + $0x1b0] sm:$0xff]   ;;  %v2693_v5 = vld [vmem:[#allocation7 + $0x1f8] sm:$0xff]   ;;  %v155_v10 = vpack.c.bf16 %v147_v8, %v147_v8  ;;  %v146_v12 = vld [vmem:[#allocation2 + $0x20] sm:$0xff] }
  0xa8   :  { %2146 = vmatpush3.bf16.msra.mxu0 %v2654_v22  ;;  %v2694_v6 = vld [vmem:[#allocation7 + $0x138] sm:$0xff]   ;;  %v148_v13 = vld [vmem:[#allocation2 + $0x30] sm:$0xff]  ;;  %v154_v14 = vpack.c.bf16 %v146_v12, %v146_v12  ;;  %v2696_v16 = vld [vmem:[#allocation8 + $0x40] sm:$0xff]  }
  0xa9   :  { %2168 = vmatpush3.bf16.msra.mxu1 %v2655_v23  ;;  %2147 = vmatprep.subr.bf16.mxu0 %v2656_v24  ;;  %v2695_v7 = vld [vmem:[#allocation7 + $0x1b8] sm:$0xff]   ;;  %v156_v15 = vpack.c.bf16 %v148_v13, %v148_v13  ;;  %v2697_v17 = vld [vmem:[#allocation8 + $0xc0] sm:$0xff]   ;;  %v2700_v20 = vld [vmem:[#allocation8 + $0x48] sm:$0xff]  }
  0xaa   :  { %2169 = vmatprep.subr.bf16.mxu1 %v2657_v25  ;;  %v149_v9 = vld [vmem:[#allocation2 + $0x38] sm:$0xff]  ;;  %v2698_v18 = vld [vmem:[#allocation8] sm:$0xff]   ;;  %v2701_v21 = vld [vmem:[#allocation8 + $0xc8] sm:$0xff]  }
  0xab   :  { %v157_v11 = vpack.c.bf16 %v149_v9, %v149_v9  ;;  %v2699_v19 = vld [vmem:[#allocation8 + $0x80] sm:$0xff]   ;;  %v2702_v22 = vld [vmem:[#allocation8 + $0x8] sm:$0xff]   ;;  %v2704_v24 = vld [vmem:[#allocation8 + $0x50] sm:$0xff]  }
  0xac   :  { %2148 = vmatpush3.bf16.msra.mxu0 %v2658_v26  ;;  %v2703_v23 = vld [vmem:[#allocation8 + $0x88] sm:$0xff]   ;;  %v2705_v25 = vld [vmem:[#allocation8 + $0xd0] sm:$0xff]   ;;  %v2712_v32 = vld [vmem:[#allocation8 + $0x60] sm:$0xff]  }
  0xad   :  { %2170 = vmatpush3.bf16.msra.mxu1 %v2659_v27  ;;  %2149 = vmatprep.subr.bf16.mxu0 %v2660_v28  ;;  %v2706_v26 = vld [vmem:[#allocation8 + $0x10] sm:$0xff]   ;;  %v2708_v28 = vld [vmem:[#allocation8 + $0x58] sm:$0xff]   ;;  %v2713_v33 = vld [vmem:[#allocation8 + $0xe0] sm:$0xff]  }
  0xae   :  { %2171 = vmatprep.subr.bf16.mxu1 %v2661_v29  ;;  %v2707_v27 = vld [vmem:[#allocation8 + $0x90] sm:$0xff]   ;;  %v2709_v29 = vld [vmem:[#allocation8 + $0xd8] sm:$0xff]   ;;  %v2714_v34 = vld [vmem:[#allocation8 + $0x20] sm:$0xff]  }
  0xaf   :  { %v2715_v35 = vld [vmem:[#allocation8 + $0xa0] sm:$0xff]   ;;  %v2716_v36 = vld [vmem:[#allocation8 + $0x68] sm:$0xff]  }
  0xb0   :  { %2150 = vmatpush3.bf16.msra.mxu0 %v2662_v30  ;;  %v2710_v30 = vld [vmem:[#allocation8 + $0x18] sm:$0xff]   ;;  %v2718_v38 = vld [vmem:[#allocation8 + $0x28] sm:$0xff]   ;;  %v2744_v8 = vld [vmem:[#allocation8 + $0x160] sm:$0xff]  }
  0xb1   :  { %2172 = vmatpush3.bf16.msra.mxu1 %v2663_v31  ;;  %2179 = vmatprep.subr.bf16.mxu0 %v2664_v40  ;;  %v2711_v31 = vld [vmem:[#allocation8 + $0x98] sm:$0xff]   ;;  %v2720_v40 = vld [vmem:[#allocation8 + $0x70] sm:$0xff]   ;;  %v2745_v9 = vld [vmem:[#allocation8 + $0x1e0] sm:$0xff]  }
  0xb2   :  { %2201 = vmatprep.subr.bf16.mxu1 %v2665_v41  ;;  %v2721_v41 = vld [vmem:[#allocation8 + $0xf0] sm:$0xff]   ;;  %v2748_v12 = vld [vmem:[#allocation8 + $0x168] sm:$0xff]  }
  0xb3   :  { %703 = vmatmul.mubr.bf16.vlgmr.msra.gmra.mrb[0].mxu0 %v150_v37  ;;  %v2717_v37 = vld [vmem:[#allocation8 + $0xe8] sm:$0xff]  }
  0xb4   :  { %743 = vmatmul.mubr.bf16.vlgmr.msra.gmra.mrb[0].mxu1 %v152_v39  ;;  %2180 = vmatpush3.bf16.msra.mxu0 %v2666_v42  ;;  %v2719_v39 = vld [vmem:[#allocation8 + $0xa8] sm:$0xff]   ;;  %v2722_v42 = vld [vmem:[#allocation8 + $0x30] sm:$0xff]  }
  0xb5   :  { %2202 = vmatpush3.bf16.msra.mxu1 %v2667_v43  ;;  %2181 = vmatprep.subr.bf16.mxu0 %v2668_v44  ;;  %v2723_v43 = vld [vmem:[#allocation8 + $0xb0] sm:$0xff]   ;;  %v2724_v44 = vld [vmem:[#allocation8 + $0x78] sm:$0xff]   ;;  %v2749_v13 = vld [vmem:[#allocation8 + $0x1e8] sm:$0xff]  }
  0xb6   :  { %2203 = vmatprep.subr.bf16.mxu1 %v2669_v45  ;;  %782 = vmatprep.mubr.bf16.mxu0 %v155_v10  ;;  %v2725_v45 = vld [vmem:[#allocation8 + $0xf8] sm:$0xff]   ;;  %v2746_v10 = vld [vmem:[#allocation8 + $0x120] sm:$0xff]  }
  0xb7   :  { %822 = vmatprep.mubr.bf16.mxu1 %v157_v11  ;;  %v2747_v11 = vld [vmem:[#allocation8 + $0x1a0] sm:$0xff]  }
  0xb8   :  { %2182 = vmatpush3.bf16.msra.mxu0 %v2670_v46  ;;  %v2726_v46 = vld [vmem:[#allocation8 + $0x38] sm:$0xff]  }
  0xb9   :  { %2204 = vmatpush3.bf16.msra.mxu1 %v2671_v47  ;;  %2183 = vmatprep.subr.bf16.mxu0 %v2672_v48  ;;  %v2727_v47 = vld [vmem:[#allocation8 + $0xb8] sm:$0xff]   ;;  %v831_v48 = vld [vmem:[#allocation5 + $0x8] sm:$0xff] }
  0xba   :  { %2205 = vmatprep.subr.bf16.mxu1 %v2673_v49  ;;  %v839_v49 = vpack.c.bf16 %v831_v48, %v831_v48  ;;  %v1540_v48 = vld [vmem:[#allocation11 + $0x50] sm:$0xff] }
  0xbc   :  { %2184 = vmatpush3.bf16.msra.mxu0 %v2674_v50  ;;  %v833_v50 = vld [vmem:[#allocation5 + $0x18] sm:$0xff] }
  0xbd   :  { %2206 = vmatpush3.bf16.msra.mxu1 %v2675_v51  ;;  %2185 = vmatprep.subr.bf16.mxu0 %v2676_v52  ;;  %v830_v51 = vld [vmem:[#allocation5] sm:$0xff]  ;;  %v832_v52 = vld [vmem:[#allocation5 + $0x10] sm:$0xff] }
  0xbe   :  { %2207 = vmatprep.subr.bf16.mxu1 %v2677_v53  ;;  %v841_v53 = vpack.c.bf16 %v833_v50, %v833_v50 }
  0xc0   :  { %2186 = vmatpush3.bf16.msra.mxu0 %v2678_v54  ;;  %v838_v54 = vpack.c.bf16 %v830_v51, %v830_v51 }
  0xc1   :  { %2208 = vmatpush3.bf16.msra.mxu1 %v2679_v55  ;;  %2187 = vmatprep.subr.bf16.mxu0 %v2680_v56  ;;  %v840_v55 = vpack.c.bf16 %v832_v52, %v832_v52  ;;  %v2728_v56 = vld [vmem:[#allocation8 + $0x140] sm:$0xff]  }
  0xc2   :  { %2209 = vmatprep.subr.bf16.mxu1 %v2681_v57  ;;  %v2729_v57 = vld [vmem:[#allocation8 + $0x1c0] sm:$0xff]  }
  0xc4   :  { %2188 = vmatpush3.bf16.msra.mxu0 %v2682_v58  ;;  %v2730_v58 = vld [vmem:[#allocation8 + $0x100] sm:$0xff]  }
  0xc5   :  { %2210 = vmatpush3.bf16.msra.mxu1 %v2683_v59  ;;  %2189 = vmatprep.subr.bf16.mxu0 %v2684_v60  ;;  %v2731_v59 = vld [vmem:[#allocation8 + $0x180] sm:$0xff]   ;;  %v2732_v60 = vld [vmem:[#allocation8 + $0x148] sm:$0xff]  }
  0xc6   :  { %2211 = vmatprep.subr.bf16.mxu1 %v2685_v61  ;;  %v2733_v61 = vld [vmem:[#allocation8 + $0x1c8] sm:$0xff]  }
  0xc8   :  { %2190 = vmatpush3.bf16.msra.mxu0 %v2686_v62  ;;  %v2734_v62 = vld [vmem:[#allocation8 + $0x108] sm:$0xff]  }
  0xc9   :  { %2212 = vmatpush3.bf16.msra.mxu1 %v2687_v63  ;;  %2191 = vmatprep.subr.bf16.mxu0 %v2688_v0  ;;  %v2735_v63 = vld [vmem:[#allocation8 + $0x188] sm:$0xff]   ;;  %v2736_v0 = vld [vmem:[#allocation8 + $0x150] sm:$0xff]  }
  0xca   :  { %2213 = vmatprep.subr.bf16.mxu1 %v2689_v1  ;;  %v2737_v1 = vld [vmem:[#allocation8 + $0x1d0] sm:$0xff]  }
  0xcc   :  { %2192 = vmatpush3.bf16.msra.mxu0 %v2690_v2  ;;  %v2738_v2 = vld [vmem:[#allocation8 + $0x110] sm:$0xff]  }
  0xcd   :  { %2214 = vmatpush3.bf16.msra.mxu1 %v2691_v3  ;;  %2193 = vmatprep.subr.bf16.mxu0 %v2692_v4  ;;  %v2739_v3 = vld [vmem:[#allocation8 + $0x190] sm:$0xff]   ;;  %v2740_v4 = vld [vmem:[#allocation8 + $0x158] sm:$0xff]  }
  0xce   :  { %2215 = vmatprep.subr.bf16.mxu1 %v2693_v5  ;;  %v2741_v5 = vld [vmem:[#allocation8 + $0x1d8] sm:$0xff]  }
  0xd0   :  { %2194 = vmatpush3.bf16.msra.mxu0 %v2694_v6  ;;  %v2742_v6 = vld [vmem:[#allocation8 + $0x118] sm:$0xff]  }
  0xd1   :  { %2216 = vmatpush3.bf16.msra.mxu1 %v2695_v7  ;;  %2223 = vmatprep.subr.bf16.mxu0 %v2696_v16  ;;  %v2743_v7 = vld [vmem:[#allocation8 + $0x198] sm:$0xff]   ;;  %v2752_v16 = vld [vmem:[#allocation8 + $0x170] sm:$0xff]  }
  0xd2   :  { %2245 = vmatprep.subr.bf16.mxu1 %v2697_v17  ;;  %v2753_v17 = vld [vmem:[#allocation8 + $0x1f0] sm:$0xff]  }
  0xd3   :  { %783 = vmatmul.mubr.bf16.vlgmr.msra.gmra.mrb[4].mxu0 %v154_v14  ;;  %v2750_v14 = vld [vmem:[#allocation8 + $0x128] sm:$0xff]  }
  0xd4   :  { %823 = vmatmul.mubr.bf16.vlgmr.msra.gmra.mrb[4].mxu1 %v156_v15  ;;  %2224 = vmatpush3.bf16.msra.mxu0 %v2698_v18  ;;  %v2751_v15 = vld [vmem:[#allocation8 + $0x1a8] sm:$0xff]   ;;  %v2754_v18 = vld [vmem:[#allocation8 + $0x130] sm:$0xff]  }
  0xd5   :  { %2246 = vmatpush3.bf16.msra.mxu1 %v2699_v19  ;;  %2225 = vmatprep.subr.bf16.mxu0 %v2700_v20  ;;  %v2755_v19 = vld [vmem:[#allocation8 + $0x1b0] sm:$0xff]   ;;  %v2756_v20 = vld [vmem:[#allocation8 + $0x178] sm:$0xff]  }
  0xd6   :  { %2247 = vmatprep.subr.bf16.mxu1 %v2701_v21  ;;  %1390 = vmatprep.mubr.bf16.mxu0 %v839_v49  ;;  %v2757_v21 = vld [vmem:[#allocation8 + $0x1f8] sm:$0xff]   ;;  %v1541_v49 = vld [vmem:[#allocation11 + $0x58] sm:$0xff] }
  0xd7   :  { %1430 = vmatprep.mubr.bf16.mxu1 %v841_v53  ;;  %v2535_v50 = vpack.c.bf16 %v1541_v49, %v1540_v48  ;;  %v1542_v53 = vld [vmem:[#allocation11 + $0x60] sm:$0xff]  ;;  %v1702_v49 = vld [vmem:[#allocation13 + $0x10] sm:$0xff] }
  0xd8   :  { %2226 = vmatpush3.bf16.msra.mxu0 %v2702_v22  ;;  %v2758_v22 = vld [vmem:[#allocation8 + $0x138] sm:$0xff]  }
  0xd9   :  { %2248 = vmatpush3.bf16.msra.mxu1 %v2703_v23  ;;  %2227 = vmatprep.subr.bf16.mxu0 %v2704_v24  ;;  %v2759_v23 = vld [vmem:[#allocation8 + $0x1b8] sm:$0xff]   ;;  %v835_v24 = vld [vmem:[#allocation5 + $0x28] sm:$0xff] }
  0xda   :  { %2249 = vmatprep.subr.bf16.mxu1 %v2705_v25  ;;  %v837_v25 = vld [vmem:[#allocation5 + $0x38] sm:$0xff] }
  0xdc   :  { %2228 = vmatpush3.bf16.msra.mxu0 %v2706_v26  ;;  %v834_v26 = vld [vmem:[#allocation5 + $0x20] sm:$0xff] }
  0xdd   :  { %2250 = vmatpush3.bf16.msra.mxu1 %v2707_v27  ;;  %2229 = vmatprep.subr.bf16.mxu0 %v2708_v28  ;;  %v843_v27 = vpack.c.bf16 %v835_v24, %v835_v24  ;;  %v845_v28 = vpack.c.bf16 %v837_v25, %v837_v25  ;;  %v1544_v24 = vld [vmem:[#allocation11 + $0x70] sm:$0xff]  ;;  %v1545_v25 = vld [vmem:[#allocation11 + $0x78] sm:$0xff] }
  0xde   :  { %2251 = vmatprep.subr.bf16.mxu1 %v2709_v29  ;;  %v842_v29 = vpack.c.bf16 %v834_v26, %v834_v26  ;;  %v2541_v26 = vpack.c.bf16 %v1545_v25, %v1544_v24  ;;  %v1808_v24 = vld [vmem:[#allocation14 + $0x60] sm:$0xff]  ;;  %v1809_v25 = vld [vmem:[#allocation14 + $0x68] sm:$0xff] }
  0xe0   :  { %2230 = vmatpush3.bf16.msra.mxu0 %v2710_v30  ;;  %v836_v30 = vld [vmem:[#allocation5 + $0x30] sm:$0xff] }
  0xe1   :  { %2252 = vmatpush3.bf16.msra.mxu1 %v2711_v31  ;;  %2231 = vmatprep.subr.bf16.mxu0 %v2712_v32  ;;  %v844_v31 = vpack.c.bf16 %v836_v30, %v836_v30  ;;  %v1530_v32 = vld [vmem:[#allocation11] sm:$0xff] }
  0xe2   :  { %2253 = vmatprep.subr.bf16.mxu1 %v2713_v33  ;;  %v1531_v33 = vld [vmem:[#allocation11 + $0x8] sm:$0xff] }
  0xe4   :  { %2232 = vmatpush3.bf16.msra.mxu0 %v2714_v34  ;;  %v1532_v34 = vld [vmem:[#allocation11 + $0x10] sm:$0xff] }
  0xe5   :  { %2254 = vmatpush3.bf16.msra.mxu1 %v2715_v35  ;;  %2233 = vmatprep.subr.bf16.mxu0 %v2716_v36  ;;  %v3032_v35 = vmov 0.0|0.0   ;;  %v2520_v36 = vpack.c.bf16 %v1531_v33, %v1530_v32 }
  0xe6   :  { %2255 = vmatprep.subr.bf16.mxu1 %v2717_v37  ;;  %v1533_v37 = vld [vmem:[#allocation11 + $0x18] sm:$0xff] }
  0xe8   :  { %2234 = vmatpush3.bf16.msra.mxu0 %v2718_v38  ;;  %v2523_v38 = vpack.c.bf16 %v1533_v37, %v1532_v34 }
  0xe9   :  { %2256 = vmatpush3.bf16.msra.mxu1 %v2719_v39  ;;  %2235 = vmatprep.subr.bf16.mxu0 %v2720_v40  ;;  %v1534_v39 = vld [vmem:[#allocation11 + $0x20] sm:$0xff]  ;;  %v1535_v40 = vld [vmem:[#allocation11 + $0x28] sm:$0xff] }
  0xea   :  { %2257 = vmatprep.subr.bf16.mxu1 %v2721_v41  ;;  %v2526_v41 = vpack.c.bf16 %v1535_v40, %v1534_v39 }
  0xec   :  { %2236 = vmatpush3.bf16.msra.mxu0 %v2722_v42  ;;  %v1536_v42 = vld [vmem:[#allocation11 + $0x30] sm:$0xff] }
  0xed   :  { %2258 = vmatpush3.bf16.msra.mxu1 %v2723_v43  ;;  %2237 = vmatprep.subr.bf16.mxu0 %v2724_v44  ;;  %v1537_v43 = vld [vmem:[#allocation11 + $0x38] sm:$0xff] }
  0xee   :  { %2259 = vmatprep.subr.bf16.mxu1 %v2725_v45  ;;  %v2529_v44 = vpack.c.bf16 %v1537_v43, %v1536_v42  ;;  %v1538_v45 = vld [vmem:[#allocation11 + $0x40] sm:$0xff] }
  0xf0   :  { %2238 = vmatpush3.bf16.msra.mxu0 %v2726_v46  ;;  %v1539_v46 = vld [vmem:[#allocation11 + $0x48] sm:$0xff] }
  0xf1   :  { %2260 = vmatpush3.bf16.msra.mxu1 %v2727_v47  ;;  %2267 = vmatprep.subr.bf16.mxu0 %v2728_v56  ;;  %v2532_v47 = vpack.c.bf16 %v1539_v46, %v1538_v45  ;;  %v1700_v46 = vld [vmem:[#allocation13] sm:$0xff] }
  0xf2   :  { %2289 = vmatprep.subr.bf16.mxu1 %v2729_v57 }
  0xf3   :  { %1391 = vmatmul.mubr.bf16.vlgmr.msra.gmra.mrb[8].mxu0 %v838_v54  ;;  %v1543_v54 = vld [vmem:[#allocation11 + $0x68] sm:$0xff] }
  0xf4   :  { %1431 = vmatmul.mubr.bf16.vlgmr.msra.gmra.mrb[8].mxu1 %v840_v55  ;;  %2268 = vmatpush3.bf16.msra.mxu0 %v2730_v58 }
  0xf5   :  { %2290 = vmatpush3.bf16.msra.mxu1 %v2731_v59  ;;  %2269 = vmatprep.subr.bf16.mxu0 %v2732_v60 }
  0xf6   :  { %2291 = vmatprep.subr.bf16.mxu1 %v2733_v61  ;;  %1470 = vmatprep.mubr.bf16.mxu0 %v843_v27  ;;  %v3034_v27 = vmov 0.0  }
  0xf7   :  { %1510 = vmatprep.mubr.bf16.mxu1 %v845_v28 }
  0xf8   :  { %2270 = vmatpush3.bf16.msra.mxu0 %v2734_v62 }
  0xf9   :  { %2292 = vmatpush3.bf16.msra.mxu1 %v2735_v63  ;;  %2271 = vmatprep.subr.bf16.mxu0 %v2736_v0  ;;  %v2538_v63 = vpack.c.bf16 %v1543_v54, %v1542_v53  ;;  %v1705_v53 = vld [vmem:[#allocation13 + $0x28] sm:$0xff] }
  0xfa   :  { %2293 = vmatprep.subr.bf16.mxu1 %v2737_v1 }
  0xfc   :  { %2272 = vmatpush3.bf16.msra.mxu0 %v2738_v2 }
  0xfd   :  { %2294 = vmatpush3.bf16.msra.mxu1 %v2739_v3  ;;  %2273 = vmatprep.subr.bf16.mxu0 %v2740_v4 }
  0xfe   :  { %2295 = vmatprep.subr.bf16.mxu1 %v2741_v5 }
 0x100   :  { %2274 = vmatpush3.bf16.msra.mxu0 %v2742_v6 }
 0x101   :  { %2296 = vmatpush3.bf16.msra.mxu1 %v2743_v7  ;;  %2275 = vmatprep.subr.bf16.mxu0 %v2744_v8 }
 0x102   :  { %2297 = vmatprep.subr.bf16.mxu1 %v2745_v9 }
 0x104   :  { %2276 = vmatpush3.bf16.msra.mxu0 %v2746_v10 }
 0x105   :  { %2298 = vmatpush3.bf16.msra.mxu1 %v2747_v11  ;;  %2277 = vmatprep.subr.bf16.mxu0 %v2748_v12 }
 0x106   :  { %2299 = vmatprep.subr.bf16.mxu1 %v2749_v13 }
 0x108   :  { %2278 = vmatpush3.bf16.msra.mxu0 %v2750_v14 }
 0x109   :  { %2300 = vmatpush3.bf16.msra.mxu1 %v2751_v15  ;;  %2279 = vmatprep.subr.bf16.mxu0 %v2752_v16 }
 0x10a   :  { %2301 = vmatprep.subr.bf16.mxu1 %v2753_v17 }
 0x10c   :  { %2280 = vmatpush3.bf16.msra.mxu0 %v2754_v18 }
 0x10d   :  { %2302 = vmatpush3.bf16.msra.mxu1 %v2755_v19  ;;  %2281 = vmatprep.subr.bf16.mxu0 %v2756_v20 }
 0x10e   :  { %2303 = vmatprep.subr.bf16.mxu1 %v2757_v21 }
 0x110   :  { %2282 = vmatpush3.bf16.msra.mxu0 %v2758_v22 }
 0x111   :  { %2304 = vmatpush3.bf16.msra.mxu1 %v2759_v23  ;;  %2519 = vmatprep.subr.bf16.mxu0 %v3032_v35 }
 0x112   :  { %2543 = vmatprep.subr.bf16.mxu1 %v3032_v35 }
 0x113   :  { %1471 = vmatmul.mubr.bf16.vlgmr.msra.gmra.mrb[12].mxu0 %v842_v29 }
 0x114   :  { %1511 = vmatmul.mubr.bf16.vlgmr.msra.gmra.mrb[12].mxu1 %v844_v31  ;;  %2521 = vmatpush3.bf16.msra.mxu0 %v2520_v36 }
 0x115   :  { %2545 = vmatpush3.bf16.msra.mxu1 %v2520_v36  ;;  %2522 = vmatprep.subr.bf16.mxu0 %v3032_v35 }
 0x116   :  { %2546 = vmatprep.subr.bf16.mxu1 %v3032_v35  ;;  %2411 = vmatprep.mubr.msk.f32.mxu0 %vm3033_vm0, %v3034_v27 }
 0x117   :  { %2446 = vmatprep.mubr.msk.f32.mxu1 %vm3033_vm0, %v3034_v27 }
 0x118   :  { %2524 = vmatpush3.bf16.msra.mxu0 %v2523_v38 }
 0x119   :  { %2548 = vmatpush3.bf16.msra.mxu1 %v2523_v38  ;;  %2525 = vmatprep.subr.bf16.mxu0 %v3032_v35 }
 0x11a   :  { %2549 = vmatprep.subr.bf16.mxu1 %v3032_v35 }
 0x11c   :  { %2527 = vmatpush3.bf16.msra.mxu0 %v2526_v41 }
 0x11d   :  { %2551 = vmatpush3.bf16.msra.mxu1 %v2526_v41  ;;  %2528 = vmatprep.subr.bf16.mxu0 %v3032_v35  ;;  %v2128_v41 = vld [vmem:[#allocation10] ss:$0 sm:$0xff] }
 0x11e   :  { %2552 = vmatprep.subr.bf16.mxu1 %v3032_v35 }
 0x120   :  { %2530 = vmatpush3.bf16.msra.mxu0 %v2529_v44 }
 0x121   :  { %2554 = vmatpush3.bf16.msra.mxu1 %v2529_v44  ;;  %2531 = vmatprep.subr.bf16.mxu0 %v3032_v35 }
 0x122   :  { %2555 = vmatprep.subr.bf16.mxu1 %v3032_v35 }
 0x124   :  { %2533 = vmatpush3.bf16.msra.mxu0 %v2532_v47 }
 0x125   :  { %2557 = vmatpush3.bf16.msra.mxu1 %v2532_v47  ;;  %2534 = vmatprep.subr.bf16.mxu0 %v3032_v35  ;;  %v1701_v47 = vld [vmem:[#allocation13 + $0x8] sm:$0xff] }
 0x126   :  { %2558 = vmatprep.subr.bf16.mxu1 %v3032_v35  ;;  %v2568_v48 = vpack.c.bf16 %v1701_v47, %v1700_v46 }
 0x128   :  { %2536 = vmatpush3.bf16.msra.mxu0 %v2535_v50 }
 0x129   :  { %2560 = vmatpush3.bf16.msra.mxu1 %v2535_v50  ;;  %2537 = vmatprep.subr.bf16.mxu0 %v3032_v35  ;;  %v1703_v50 = vld [vmem:[#allocation13 + $0x18] sm:$0xff] }
 0x12a   :  { %2561 = vmatprep.subr.bf16.mxu1 %v3032_v35 }
 0x12c   :  { %2539 = vmatpush3.bf16.msra.mxu0 %v2538_v63 }
 0x12d   :  { %2563 = vmatpush3.bf16.msra.mxu1 %v2538_v63  ;;  %2540 = vmatprep.subr.bf16.mxu0 %v3032_v35  ;;  %v1799_v63 = vld [vmem:[#allocation14 + $0x18] sm:$0xff] }
 0x12e   :  { %2564 = vmatprep.subr.bf16.mxu1 %v3032_v35 }
 0x130   :  { %2542 = vmatpush3.bf16.msra.mxu0 %v2541_v26 }
 0x131   :  { %2566 = vmatpush3.bf16.msra.mxu1 %v2541_v26  ;;  %2567 = vmatprep.subr.bf16.mxu0 %v3032_v35 }
 0x132   :  { %2591 = vmatprep.subr.bf16.mxu1 %v3032_v35 }
 0x186   :  { %v2151_v51 = vpop.f32.mrb[0].mxu0 }
 0x187   :  { %v2173_v52 = vpop.f32.mrb[0].mxu1  ;;  %v2152_v55 = vpop.f32.mrb[1].mxu0 }
 0x188   :  { %v2174_v56 = vpop.f32.mrb[1].mxu1  ;;  %v2153_v57 = vadd.f32 %v2152_v55, %v2151_v51  ;;  %v2154_v59 = vpop.f32.mrb[2].mxu0  ;;  %v2571_v51 = vpack.c.bf16 %v1703_v50, %v1702_v49  ;;  %v1796_v55 = vld [vmem:[#allocation14] sm:$0xff] }
 0x189   :  { %v2175_v58 = vadd.f32 %v2174_v56, %v2173_v52  ;;  %v2176_v60 = vpop.f32.mrb[2].mxu1  ;;  %v2155_v61 = vpop.f32.mrb[3].mxu0  ;;  %v1704_v52 = vld [vmem:[#allocation13 + $0x20] sm:$0xff]  ;;  %v1797_v56 = vld [vmem:[#allocation14 + $0x8] sm:$0xff] }
 0x18a   :  { %v2177_v62 = vpop.f32.mrb[3].mxu1  ;;  %v2574_v54 = vpack.c.bf16 %v1705_v53, %v1704_v52  ;;  %v2592_v60 = vpack.c.bf16 %v1797_v56, %v1796_v55 }
 0x18b   :  { %v745_v0 = vadd.f32 %v2175_v58, %v2153_v57  ;;  %v1798_v62 = vld [vmem:[#allocation14 + $0x10] sm:$0xff] }
 0x1a6   :  { %v2195_v1 = vpop.f32.mrb[4].mxu0 }
 0x1a7   :  { %v2217_v2 = vpop.f32.mrb[4].mxu1  ;;  %v2196_v3 = vpop.f32.mrb[5].mxu0 }
 0x1a8   :  { %v2197_v4 = vadd.f32 %v2196_v3, %v2195_v1  ;;  %v2218_v5 = vpop.f32.mrb[5].mxu1  ;;  %v2198_v6 = vpop.f32.mrb[6].mxu0  ;;  %v1800_v1 = vld [vmem:[#allocation14 + $0x20] sm:$0xff] }
 0x1a9   :  { %v2219_v7 = vadd.f32 %v2218_v5, %v2217_v2  ;;  %v2220_v8 = vpop.f32.mrb[6].mxu1  ;;  %v2199_v9 = vpop.f32.mrb[7].mxu0  ;;  %v1801_v2 = vld [vmem:[#allocation14 + $0x28] sm:$0xff]  ;;  %v1707_v5 = vld [vmem:[#allocation13 + $0x38] sm:$0xff]  ;;  %v1802_v6 = vld [vmem:[#allocation14 + $0x30] sm:$0xff] }
 0x1aa   :  { %v785_v10 = vadd.f32 %v2197_v4, %v745_v0  ;;  %v2221_v11 = vpop.f32.mrb[7].mxu1  ;;  %v2595_v0 = vpack.c.bf16 %v1799_v63, %v1798_v62  ;;  %v2598_v3 = vpack.c.bf16 %v1801_v2, %v1800_v1  ;;  %v1706_v4 = vld [vmem:[#allocation13 + $0x30] sm:$0xff]  ;;  %v1803_v8 = vld [vmem:[#allocation14 + $0x38] sm:$0xff] }
 0x1ab   :  { %v2601_v9 = vpack.c.bf16 %v1803_v8, %v1802_v6  ;;  %v1709_v11 = vld [vmem:[#allocation13 + $0x48] sm:$0xff] }
 0x1ac   :  { %v825_v12 = vadd.f32 %v2219_v7, %v785_v10  ;;  %v2577_v7 = vpack.c.bf16 %v1707_v5, %v1706_v4  ;;  %v1708_v10 = vld [vmem:[#allocation13 + $0x40] sm:$0xff] }
 0x1c6   :  { %v2239_v13 = vpop.f32.mrb[8].mxu0 }
 0x1c7   :  { %v2261_v14 = vpop.f32.mrb[8].mxu1  ;;  %v2240_v15 = vpop.f32.mrb[9].mxu0 }
 0x1c8   :  { %v2241_v16 = vadd.f32 %v2240_v15, %v2239_v13  ;;  %v2262_v17 = vpop.f32.mrb[9].mxu1  ;;  %v2242_v18 = vpop.f32.mrb[10].mxu0  ;;  %v2580_v13 = vpack.c.bf16 %v1709_v11, %v1708_v10  ;;  %v1710_v15 = vld [vmem:[#allocation13 + $0x50] sm:$0xff] }
 0x1c9   :  { %v2263_v19 = vadd.f32 %v2262_v17, %v2261_v14  ;;  %v2264_v20 = vpop.f32.mrb[10].mxu1  ;;  %v2243_v21 = vpop.f32.mrb[11].mxu0  ;;  %v1805_v14 = vld [vmem:[#allocation14 + $0x48] sm:$0xff]  ;;  %v1806_v18 = vld [vmem:[#allocation14 + $0x50] sm:$0xff] }
 0x1ca   :  { %v2265_v22 = vpop.f32.mrb[11].mxu1 }
 0x1cb   :  { %v1433_v23 = vadd.f32 %v2263_v19, %v2241_v16  ;;  %v1711_v16 = vld [vmem:[#allocation13 + $0x58] sm:$0xff]  ;;  %v1712_v22 = vld [vmem:[#allocation13 + $0x60] sm:$0xff] }
 0x1cc   :  { %v1807_v19 = vld [vmem:[#allocation14 + $0x58] sm:$0xff]  ;;  %v2583_v20 = vpack.c.bf16 %v1711_v16, %v1710_v15 }
 0x1cd   :  { %v2607_v21 = vpack.c.bf16 %v1807_v19, %v1806_v18 }
 0x1e6   :  { %v2283_v28 = vpop.f32.mrb[12].mxu0 }
 0x1e7   :  { %v2305_v29 = vpop.f32.mrb[12].mxu1  ;;  %v2284_v30 = vpop.f32.mrb[13].mxu0 }
 0x1e8   :  { %v2306_v31 = vpop.f32.mrb[13].mxu1  ;;  %v2285_v32 = vadd.f32 %v2284_v30, %v2283_v28  ;;  %v2286_v34 = vpop.f32.mrb[14].mxu0  ;;  %v1714_v28 = vld [vmem:[#allocation13 + $0x70] sm:$0xff] }
 0x1e9   :  { %v2307_v33 = vadd.f32 %v2306_v31, %v2305_v29  ;;  %v2308_v36 = vpop.f32.mrb[14].mxu1  ;;  %v2287_v37 = vpop.f32.mrb[15].mxu0  ;;  %v1715_v29 = vld [vmem:[#allocation13 + $0x78] sm:$0xff]  ;;  %v1810_v30 = vld [vmem:[#allocation14 + $0x70] sm:$0xff] }
 0x1ea   :  { %v2309_v38 = vpop.f32.mrb[15].mxu1  ;;  %v1473_v39 = vadd.f32 %v2285_v32, %v1433_v23  ;;  %v1713_v23 = vld [vmem:[#allocation13 + $0x68] sm:$0xff]  ;;  %v1811_v31 = vld [vmem:[#allocation14 + $0x78] sm:$0xff]  ;;  %v2589_v32 = vpack.c.bf16 %v1715_v29, %v1714_v28 }
 0x1eb   :  { %v2586_v26 = vpack.c.bf16 %v1713_v23, %v1712_v22 }
 0x1ec   :  { %v1513_v40 = vadd.f32 %v2307_v33, %v1473_v39  ;;  %v2613_v33 = vpack.c.bf16 %v1811_v31, %v1810_v30  ;;  %v2129_v39 = vld [vmem:[#allocation10 + $0x1] ss:$0 sm:$0xff] }
 0x1ee   :  { %1519 = vrot.lane.b32.xlu0 %v1513_v40, %s3023_s10 }
 0x260   :  { %v1520_v42 = vpop.permute.xlu0 %1519 }
 0x261   :  { %v1523_v43 = vsel %vm1522_vm1, %v825_v12, %v1520_v42  ;;  %v1804_v12 = vld [vmem:[#allocation14 + $0x40] sm:$0xff] }
 0x262   :  { %v1528_v44 = vadd.f32 %v2128_v41, %v1523_v43  ;;  %v2604_v17 = vpack.c.bf16 %v1805_v14, %v1804_v12  ;;  %v2130_v41 = vld [vmem:[#allocation10 + $0x2] ss:$0 sm:$0xff] }
 0x264   :  { %v1529_v45 = vmax.f32 %v1528_v44, 0.0  ;;  %v2131_v44 = vld [vmem:[#allocation10 + $0x3] ss:$0 sm:$0xff] }
 0x266   :  { %2412 = vmatmul.mubr.f32.vlgmr.msra.gmra.mrb[16].mxu0 %v1529_v45 }
 0x267   :  { %2481 = vmatprep.mubr.msk.f32.mxu0 %vm3033_vm0, %v3034_v27  ;;  %2569 = vmatpush3.bf16.msra.mxu0 %v2568_v48 }
 0x268   :  { %2570 = vmatprep.subr.bf16.mxu0 %v3032_v35 }
 0x26b   :  { %2572 = vmatpush3.bf16.msra.mxu0 %v2571_v51 }
 0x26c   :  { %2573 = vmatprep.subr.bf16.mxu0 %v3032_v35 }
 0x26f   :  { %2575 = vmatpush3.bf16.msra.mxu0 %v2574_v54 }
 0x270   :  { %2576 = vmatprep.subr.bf16.mxu0 %v3032_v35 }
 0x273   :  { %2578 = vmatpush3.bf16.msra.mxu0 %v2577_v7 }
 0x274   :  { %2579 = vmatprep.subr.bf16.mxu0 %v3032_v35 }
 0x277   :  { %2581 = vmatpush3.bf16.msra.mxu0 %v2580_v13 }
 0x278   :  { %2582 = vmatprep.subr.bf16.mxu0 %v3032_v35 }
 0x27b   :  { %2584 = vmatpush3.bf16.msra.mxu0 %v2583_v20 }
 0x27c   :  { %2585 = vmatprep.subr.bf16.mxu0 %v3032_v35 }
 0x27f   :  { %2587 = vmatpush3.bf16.msra.mxu0 %v2586_v26 }
 0x280   :  { %2588 = vmatprep.subr.bf16.mxu0 %v3032_v35 }
 0x283   :  { %2590 = vmatpush3.bf16.msra.mxu0 %v2589_v32 }
 0x339   :  { %v1612_v57 = vpop.f32.mrb[16].mxu0 }
 0x33a   :  { %v3224_v58 = vsub.f32 %v1529_v45, %v1612_v57  ;;  %v2413_v59 = vpop.f32.mrb[17].mxu0  ;;  %v2133_v45 = vld [vmem:[#allocation10 + $0x4] ss:$0 sm:$0xff] }
 0x33c   :  { %v1617_v61 = vmul.f32 %v3224_v58, %v3224_v58 }
 0x33e   :  { %2447 = vmatmul.mubr.f32.vlgmr.msra.gmra.mrb[16].mxu1 %v1617_v61 }
 0x33f   :  { %2593 = vmatpush3.bf16.msra.mxu1 %v2592_v60  ;;  %2516 = vmatprep.mubr.msk.f32.mxu1 %vm3033_vm0, %v3034_v27  ;;  %v2610_v27 = vpack.c.bf16 %v1809_v25, %v1808_v24 }
 0x340   :  { %2594 = vmatprep.subr.bf16.mxu1 %v3032_v35 }
 0x343   :  { %2596 = vmatpush3.bf16.msra.mxu1 %v2595_v0 }
 0x344   :  { %2597 = vmatprep.subr.bf16.mxu1 %v3032_v35 }
 0x347   :  { %2599 = vmatpush3.bf16.msra.mxu1 %v2598_v3 }
 0x348   :  { %2600 = vmatprep.subr.bf16.mxu1 %v3032_v35 }
 0x34b   :  { %2602 = vmatpush3.bf16.msra.mxu1 %v2601_v9 }
 0x34c   :  { %2603 = vmatprep.subr.bf16.mxu1 %v3032_v35 }
 0x34f   :  { %2605 = vmatpush3.bf16.msra.mxu1 %v2604_v17 }
 0x350   :  { %2606 = vmatprep.subr.bf16.mxu1 %v3032_v35 }
 0x353   :  { %2608 = vmatpush3.bf16.msra.mxu1 %v2607_v21 }
 0x354   :  { %2609 = vmatprep.subr.bf16.mxu1 %v3032_v35 }
 0x357   :  { %2611 = vmatpush3.bf16.msra.mxu1 %v2610_v27 }
 0x358   :  { %2612 = vmatprep.subr.bf16.mxu1 %v3032_v35 }
 0x35b   :  { %2614 = vmatpush3.bf16.msra.mxu1 %v2613_v33 }
 0x411   :  { %v1684_v34 = vpop.f32.mrb[16].mxu1 }
 0x412   :  { %v1685_v36 = vadd.f32 1e-05, %v1684_v34  ;;  %v2448_v37 = vpop.f32.mrb[17].mxu1 }
 0x414   :  { %2760 = vrsqrt.f32 %v1685_v36 }
 0x41e   :  { %v2761_v38 = vpop.eup %2760 }
 0x41f   :  { %v1689_v40 = vmul.f32 %v2761_v38, %v3224_v58 }
 0x421   :  { %v1694_v42 = vmul.f32 %v2129_v39, %v1689_v40 }
 0x423   :  { %v1699_v43 = vadd.f32 %v2130_v41, %v1694_v42 }
 0x425   :  { %2482 = vmatmul.mubr.f32.vlgmr.msra.gmra.mrb[18].mxu0 %v1699_v43  ;;  %2517 = vmatmul.mubr.f32.vlgmr.msra.gmra.mrb[18].mxu1 %v1699_v43 }
 0x4f8   :  { %v1786_v46 = vpop.f32.mrb[18].mxu0  ;;  %v1882_v47 = vpop.f32.mrb[18].mxu1 }
 0x4f9   :  { %v1787_v35 = vadd.f32 %v2131_v44, %v1786_v46  ;;  %v1883_v48 = vadd.f32 %v2133_v45, %v1882_v47  ;;  %v2483_v49 = vpop.f32.mrb[19].mxu0  ;;  %v2518_v50 = vpop.f32.mrb[19].mxu1 }
 0x4fb   :  { %v2132_v51 = vmul.f32 -1.442695, %v1787_v35  ;;  %v2134_v52 = vmul.f32 -1.442695, %v1883_v48 }
 0x4fd   :  { %2762 = vpow2.f32 %v2132_v51 }
 0x4fe   :  { %2764 = vpow2.f32 %v2134_v52 }
 0x507   :  { %v2763_v53 = vpop.eup %2762 }
 0x508   :  { %v2765_v54 = vpop.eup %2764  ;;  %v1793_v55 = vadd.f32 1.0, %v2763_v53 }
 0x509   :  { %v1889_v56 = vadd.f32 1.0, %v2765_v54 }
 0x50a   :  { %2766 = vrcp.f32 %v1793_v55 }
 0x50b   :  { %2768 = vrcp.f32 %v1889_v56 }
 0x514   :  { %v2767_v57 = vpop.eup %2766 }
 0x515   :  { %v2769_v58 = vpop.eup %2768  ;;  %1892 = vst [vmem:[#allocation16] sm:$0xff] %v2767_v57 }
 0x516   :  { %1893 = vst [vmem:[#allocation16 + $0x8] sm:$0xff] %v2769_v58  ;;  %1924 = vrot.lane.b32.xlu0 %v2769_v58, %s3023_s10  ;;  %v1907_v59 = vsel %vm1906_vm2, %v2769_v58, -inf  ;;  %v1894_v4 = vsel %vm1522_vm1, %v2769_v58, -inf }
 0x517   :  { %1908 = vmax.xlane.f32.xlu1 %v1907_v59 }
 0x588   :  { %v1925_v60 = vpop.permute.xlu0 %1924 }
 0x589   :  { %v1927_v61 = vadd.f32 %v2769_v58, %v1925_v60 }
 0x58b   :  { %v1928_v62 = vmul.f32 0.5, %v1927_v61 }
 0x58d   :  { %v1929_v63 = vsel %vm1522_vm1, %v1928_v62, -inf }
 0x58e   :  { %1930 = vmax.xlane.f32.xlu1 %v1929_v63 }
 0x5a4   :  { %v1909_v0 = vpop.xlane.xlu1 %1908 }
 0x5a5   :  { %v1910_v1 = vsub.f32 %v2769_v58, %v1909_v0 }
 0x5a7   :  { %v1911_v2 = vmul.f32 1.442695, %v1910_v1 }
 0x5a9   :  { %2770 = vpow2.f32 %v1911_v2 }
 0x5b3   :  { %v2771_v3 = vpop.eup %2770 }
 0x5b4   :  { %1914 = vrot.lane.b32.xlu0 %v2771_v3, %s3023_s10 }
 0x5d3   :  { %1895 = vmax.xlane.f32.xlu0 %v1894_v4 }
 0x61b   :  { %v1931_v5 = vpop.xlane.xlu1 %1930 }
 0x61c   :  { %v1932_v6 = vsub.f32 %v1928_v62, %v1931_v5 }
 0x61e   :  { %v1933_v7 = vmul.f32 1.442695, %v1932_v6 }
 0x620   :  { %2772 = vpow2.f32 %v1933_v7 }
 0x626   :  { %v1915_v10 = vpop.permute.xlu0 %1914 }
 0x627   :  { %v1917_v11 = vsel %vm1522_vm1, %v1915_v10, 0.0 }
 0x62a   :  { %v2773_v8 = vpop.eup %2772 }
 0x62b   :  { %v1935_v9 = vsel %vm1522_vm1, %v2773_v8, 0.0 }
 0x62c   :  { %1936 = vadd.xlane.f32.xlu1 %v1935_v9 }
 0x630   :  { %1918 = vadd.xlane.f32.xlu1 %v1917_v11 }
 0x660   :  { %v1896_v16 = vpop.xlane.xlu0 %1895 }
 0x661   :  { %v1897_v17 = vsub.f32 %v2769_v58, %v1896_v16 }
 0x663   :  { %v1898_v18 = vmul.f32 1.442695, %v1897_v17 }
 0x6b9   :  { %v1937_v12 = vpop.xlane.xlu1 %1936 }
 0x6ba   :  { %2774 = vlog2.f32 %v1937_v12 }
 0x6bb   :  { %2776 = vpow2.f32 %v1898_v18 }
 0x6bd   :  { %v1919_v21 = vpop.xlane.xlu1 %1918 }
 0x6be   :  { %2778 = vlog2.f32 %v1919_v21 }
 0x6c4   :  { %v2775_v13 = vpop.eup %2774 }
 0x6c5   :  { %v1939_v14 = vmul.f32 0.6931472, %v2775_v13  ;;  %v2777_v19 = vpop.eup %2776 }
 0x6c6   :  { %v1900_v20 = vsel %vm1522_vm1, %v2777_v19, 0.0 }
 0x6c7   :  { %v1940_v15 = vsub.f32 %v1932_v6, %v1939_v14 }
 0x6c8   :  { %v2779_v22 = vpop.eup %2778 }
 0x6c9   :  { %1952 = vrot.lane.b32.xlu1 %v1940_v15, %s3023_s10  ;;  %v1921_v23 = vmul.f32 0.6931472, %v2779_v22 }
 0x6cb   :  { %v1922_v24 = vsub.f32 %v1910_v1, %v1921_v23 }
 0x6cd   :  { %v1949_v25 = vmul.f32 1.442695, %v1922_v24 }
 0x6cf   :  { %2780 = vpow2.f32 %v1949_v25 }
 0x6d9   :  { %v2781_v28 = vpop.eup %2780 }
 0x6ed   :  { %1901 = vadd.xlane.f32.xlu1 %v1900_v20 }
 0x73b   :  { %v1953_v26 = vpop.permute.xlu1 %1952 }
 0x73c   :  { %v1955_v27 = vsub.f32 %v1922_v24, %v1953_v26 }
 0x73e   :  { %v1956_v29 = vmul.f32 %v2781_v28, %v1955_v27 }
 0x740   :  { %1958 = vrot.lane.b32.xlu0 %v1956_v29, %s3023_s10  ;;  %s2962_s10 = scalar_lea.vmem %s1974_s3, 256 }
 0x741   :  { %p2963_p8 = scmp.ne.s32.totalorder %s1974_s3, %s2962_s10  ;;  %p2968_p10 = scmp.lt.s32.totalorder %s2962_s10, %s2962_s10 }
 0x743   :  { %p2969_p11 = por %p2968_p10, %p2967_p9 }
 0x745   :  { %p2970_p12 = pnand %p2969_p11, %p2963_p8 }
 0x77a   :  { %v1902_v30 = vpop.xlane.xlu1 %1901 }
 0x77b   :  { %2782 = vlog2.f32 %v1902_v30 }
 0x785   :  { %v2783_v31 = vpop.eup %2782 }
 0x786   :  { %v1904_v32 = vmul.f32 0.6931472, %v2783_v31 }
 0x788   :  { %v1905_v33 = vsub.f32 %v1897_v17, %v1904_v32 }
 0x78a   :  { %v1941_v34 = vmul.f32 1.442695, %v1905_v33  ;;  %v1943_v36 = vsub.f32 %v1905_v33, %v1940_v15 }
 0x78c   :  { %2784 = vpow2.f32 %v1941_v34 }
 0x796   :  { %v2785_v37 = vpop.eup %2784 }
 0x797   :  { %v1944_v38 = vmul.f32 %v2785_v37, %v1943_v36 }
 0x799   :  { %v1945_v39 = vsel %vm1522_vm1, %v1944_v38, 0.0 }
 0x79a   :  { %1946 = vadd.xlane.f32.xlu0 %v1945_v39 }
 0x7b2   :  { %v1959_v40 = vpop.permute.xlu0 %1958 }
 0x7b3   :  { %v1961_v41 = vsel %vm1522_vm1, %v1959_v40, 0.0 }
 0x7b4   :  { %1962 = vadd.xlane.f32.xlu1 %v1961_v41 }
 0x7b5   :  { %2973 = shalt.err (!%p2970_p12)
}
 0x7b6   :  { %s2974_s12 = scalar_lea.hbm %s3284_s8, 256 }
 0x7b7   :  { %p2975_p13 = scmp.ne.s32.totalorder %s3284_s8, %s2974_s12  ;;  %p2978_p0 = scmp.lt.u32.totalorder %s2974_s12, %s3284_s8 }
 0x7b9   :  { %p2980_p1 = pnand %p2978_p0, %p2975_p13 }
 0x7bb   :  { %2983 = shalt.err (!%p2980_p1)
}
 0x7bc   :  { %1976 = dma.vmem_to_hbm [thread:$0]  %s1974_s3, 256, %s3284_s8, [#allocation4]  }
 0x7bd   :  { %s3036_s27 = smov [#allocation17]  }
 0x7be   :  { %s1983_s29 = sshll.u32 %s3036_s27, 4  ;;  %s1984_s29 = int_to_ptr.vmem [resolvable:$true] %s1983_s29 }
 0x7bf   :  { %s2984_s0 = scalar_lea.vmem %s1984_s29, 128  ;;  %p2989_p3 = scmp.lt.s32.totalorder %s1984_s29, %s1984_s29 }
 0x7c0   :  { %p2985_p2 = scmp.ne.s32.totalorder %s1984_s29, %s2984_s0  ;;  %p2990_p4 = scmp.lt.s32.totalorder %s2984_s0, %s2984_s0 }
 0x7c2   :  { %p2991_p5 = por %p2990_p4, %p2989_p3 }
 0x7c4   :  { %p2992_p6 = pnand %p2991_p5, %p2985_p2 }
 0x827   :  { %v1947_v42 = vpop.xlane.xlu0 %1946 }
 0x828   :  { %v1948_v44 = vmul.f32 0.5, %v1947_v42 }
 0x841   :  { %v1963_v43 = vpop.xlane.xlu1 %1962 }
 0x842   :  { %v1964_v45 = vmul.f32 0.5, %v1963_v43 }
 0x844   :  { %v1965_v46 = vadd.f32 %v1964_v45, %v1948_v44 }
 0x846   :  { %1966 = vst [vmem:[#allocation17] sm:$0xff] %v1965_v46 }
 0x847   :  { %2995 = shalt.err (!%p2992_p6)
}
 0x848   :  { %s2996_s8 = scalar_lea.hbm %s3285_s9, 128 }
 0x849   :  { %p2997_p7 = scmp.ne.s32.totalorder %s3285_s9, %s2996_s8  ;;  %p3000_p8 = scmp.lt.u32.totalorder %s2996_s8, %s3285_s9 }
 0x84b   :  { %p3002_p9 = pnand %p3000_p8, %p2997_p7 }
 0x84d   :  { %3005 = shalt.err (!%p3002_p9)
}
 0x84e   :  { %1986 = dma.vmem_to_hbm [thread:$0]  %s1984_s29, 128, %s3285_s9, [#allocation18]  }
 0x84f   :  { %3016 = dma.done.wait [#allocation4], 256  }
 0x850   :  { %3017 = vsyncadd [#allocation4], 4294967040 }
 0x851   :  { %3018 = dma.done.wait [#allocation18], 128  }
 0x852   :  { %3019 = vsyncadd [#allocation18], 4294967168 }
 0x853   :  { %1993 = vsyncpa [#allocation3], 1 }
 0x854   :  { %1994 = vsyncpa [#allocation6], 1 }
 0x855   :  { %1995 = vsyncpa [#allocation9], 1 }
 0x856   :  { %1996 = vsyncpa [#allocation12], 1 }
 0x857   :  { %1997 = vsyncpa [#allocation15], 1 }
 0x858   :  { %1998 = vsyncpa [#allocation4], 1 }
 0x859   :  { %1999 = vsyncpa [#allocation18], 1 }

// kernel: _lambda_.3
= control target key start
LH: loop header
LB: loop body
LE: loop exit
PB: predicated region body
PF: predicated region fallthrough
CT: control target
= control target key end

     0   :  { %s6040_s0 = inlined_call_operand.<no memory space> [shape: f32[1,1], index: 0, kind: input, shape index: {}]   ;;  %s6041_s1 = inlined_call_operand.hbm [shape: f32[8,256], index: 1, kind: input, shape index: {}]   ;;  %s6042_s2 = inlined_call_operand.hbm [shape: f32[128,64], index: 2, kind: input, shape index: {}]   ;;  %s6043_s3 = inlined_call_operand.hbm [shape: f32[64,192], index: 3, kind: input, shape index: {}]   ;;  %s6044_s4 = inlined_call_operand.hbm [shape: f32[1,192], index: 4, kind: input, shape index: {}]   ;;  %s6045_s5 = inlined_call_operand.hbm [shape: f32[64,64], index: 5, kind: input, shape index: {}]   ;;  %s6046_s6 = inlined_call_operand.hbm [shape: f32[8,64], index: 6, kind: input, shape index: {}]   ;;  %s6047_s7 = inlined_call_operand.hbm [shape: bf16[64,2048], index: 7, kind: input, shape index: {}]   ;;  %s6048_s8 = inlined_call_operand.hbm [shape: f32[1,2048], index: 8, kind: input, shape index: {}]   ;;  %s6049_s9 = inlined_call_operand.hbm [shape: bf16[2048,64], index: 9, kind: input, shape index: {}]   ;;  %s6050_s10 = inlined_call_operand.hbm [shape: f32[192,128], index: 10, kind: input, shape index: {}]   ;;  %s6051_s11 = inlined_call_operand.hbm [shape: f32[128,128], index: 11, kind: input, shape index: {}]   ;;  %s6052_s12 = inlined_call_operand.hbm [shape: f32[8,128], index: 12, kind: input, shape index: {}]   ;;  %s6053_s13 = inlined_call_operand.hbm [shape: f32[192,24], index: 13, kind: input, shape index: {}]   ;;  %s6054_s14 = inlined_call_operand.hbm [shape: f32[24,192], index: 14, kind: input, shape index: {}]   ;;  %s6055_s15 = inlined_call_operand.hbm [shape: f32[8,128], index: 15, kind: output, shape index: {}]  }
   0x1   :  { %6057 = sst [smem:[#allocation36_spill]] %s6055_s15 }
   0x2   :  { %21 = vsyncpa [#allocation4], 0 }
   0x3   :  { %22 = vsyncpa [#allocation7], 0 }
   0x4   :  { %23 = vsyncpa [#allocation10], 0 }
   0x5   :  { %24 = vsyncpa [#allocation13], 0 }
   0x6   :  { %25 = vsyncpa [#allocation16], 0 }
   0x7   :  { %26 = vsyncpa [#allocation19], 0 }
   0x8   :  { %27 = vsyncpa [#allocation22], 0 }
   0x9   :  { %28 = vsyncpa [#allocation25], 0 }
   0xa   :  { %29 = vsyncpa [#allocation5], 0  ;;  %s5228_s18 = smov [#allocation6]   ;;  %s4880_s22 = scalar_lea.hbm %s6042_s2, 2048 }
   0xb   :  { %s47_s19 = sshll.u32 %s5228_s18, 4  ;;  %p4881_p0 = scmp.ne.s32.totalorder %s6042_s2, %s4880_s22  ;;  %s48_s19 = int_to_ptr.vmem [resolvable:$true] %s47_s19 }
   0xc   :  { %p4884_p1 = scmp.lt.u32.totalorder %s4880_s22, %s6042_s2 }
   0xe   :  { %p4886_p2 = pnand %p4884_p1, %p4881_p0 }
  0x10   :  { %4889 = shalt.err (!%p4886_p2)
}
  0x11   :  { %s4890_s27 = scalar_lea.vmem %s48_s19, 2048  ;;  %p4895_p4 = scmp.lt.s32.totalorder %s48_s19, %s48_s19 }
  0x12   :  { %p4891_p3 = scmp.ne.s32.totalorder %s48_s19, %s4890_s27  ;;  %p4896_p5 = scmp.lt.s32.totalorder %s4890_s27, %s4890_s27 }
  0x14   :  { %p4897_p6 = por %p4896_p5, %p4895_p4 }
  0x16   :  { %p4898_p7 = pnand %p4897_p6, %p4891_p3 }
  0x18   :  { %4901 = shalt.err (!%p4898_p7)
}
  0x19   :  { %s5229_s28 = smov 128   ;;  %s5230_s29 = smov 8  }
  0x1a   :  { %53 = dma.hbm_to_vmem [thread:$0]  %s6042_s2, 2048, %s48_s19, [#allocation7], %s5229_s28, %s5229_s28, %s5230_s29  }
  0x1b   :  { %s5231_s17 = smov [#allocation9]   ;;  %s5232_s20 = smov [#allocation12]  }
  0x1c   :  { %s72_s18 = sshll.u32 %s5231_s17, 4  ;;  %s94_s21 = sshll.u32 %s5232_s20, 4  ;;  %s73_s18 = int_to_ptr.vmem [resolvable:$true] %s72_s18  ;;  %s95_s21 = int_to_ptr.vmem [resolvable:$true] %s94_s21 }
  0x1d   :  { %s4902_s24 = scalar_lea.hbm %s6044_s4, 32 }
  0x1e   :  { %p4903_p8 = scmp.ne.s32.totalorder %s6044_s4, %s4902_s24  ;;  %p4906_p9 = scmp.lt.u32.totalorder %s4902_s24, %s6044_s4 }
  0x20   :  { %p4908_p10 = pnand %p4906_p9, %p4903_p8 }
  0x22   :  { %4911 = shalt.err (!%p4908_p10)
}
  0x23   :  { %s4912_s2 = scalar_lea.vmem %s73_s18, 32  ;;  %p4917_p12 = scmp.lt.s32.totalorder %s73_s18, %s73_s18 }
  0x24   :  { %p4913_p11 = scmp.ne.s32.totalorder %s73_s18, %s4912_s2  ;;  %p4918_p13 = scmp.lt.s32.totalorder %s4912_s2, %s4912_s2 }
  0x26   :  { %p4919_p0 = por %p4918_p13, %p4917_p12 }
  0x28   :  { %p4920_p1 = pnand %p4919_p0, %p4913_p11 }
  0x2a   :  { %4923 = shalt.err (!%p4920_p1)
}
  0x2b   :  { %75 = dma.hbm_to_vmem [thread:$0]  %s6044_s4, 32, %s73_s18, [#allocation10]  }
  0x2c   :  { %s4924_s20 = scalar_lea.hbm %s6046_s6, 128 }
  0x2d   :  { %p4925_p2 = scmp.ne.s32.totalorder %s6046_s6, %s4924_s20  ;;  %p4928_p3 = scmp.lt.u32.totalorder %s4924_s20, %s6046_s6 }
  0x2f   :  { %p4930_p4 = pnand %p4928_p3, %p4925_p2 }
  0x31   :  { %4933 = shalt.err (!%p4930_p4)
}
  0x32   :  { %s4934_s25 = scalar_lea.vmem %s95_s21, 128  ;;  %p4939_p6 = scmp.lt.s32.totalorder %s95_s21, %s95_s21 }
  0x33   :  { %p4935_p5 = scmp.ne.s32.totalorder %s95_s21, %s4934_s25  ;;  %p4940_p7 = scmp.lt.s32.totalorder %s4934_s25, %s4934_s25 }
  0x35   :  { %p4941_p8 = por %p4940_p7, %p4939_p6 }
  0x37   :  { %p4942_p9 = pnand %p4941_p8, %p4935_p5 }
  0x39   :  { %4945 = shalt.err (!%p4942_p9)
}
  0x3a   :  { %97 = dma.hbm_to_vmem [thread:$0]  %s6046_s6, 128, %s95_s21, [#allocation13]  }
  0x3b   :  { %s5233_s26 = smov [#allocation15]   ;;  %s5234_s2 = smov [#allocation18]  }
  0x3c   :  { %s116_s27 = sshll.u32 %s5233_s26, 4  ;;  %s137_s19 = sshll.u32 %s5234_s2, 4  ;;  %s117_s27 = int_to_ptr.vmem [resolvable:$true] %s116_s27  ;;  %s138_s19 = int_to_ptr.vmem [resolvable:$true] %s137_s19 }
  0x3d   :  { %s4946_s17 = scalar_lea.hbm %s6048_s8, 256 }
  0x3e   :  { %p4947_p10 = scmp.ne.s32.totalorder %s6048_s8, %s4946_s17  ;;  %p4950_p11 = scmp.lt.u32.totalorder %s4946_s17, %s6048_s8 }
  0x40   :  { %p4952_p12 = pnand %p4950_p11, %p4947_p10 }
  0x42   :  { %4955 = shalt.err (!%p4952_p12)
}
  0x43   :  { %s4956_s6 = scalar_lea.vmem %s117_s27, 256  ;;  %p4961_p0 = scmp.lt.s32.totalorder %s117_s27, %s117_s27 }
  0x44   :  { %p4957_p13 = scmp.ne.s32.totalorder %s117_s27, %s4956_s6  ;;  %p4962_p1 = scmp.lt.s32.totalorder %s4956_s6, %s4956_s6 }
  0x46   :  { %p4963_p2 = por %p4962_p1, %p4961_p0 }
  0x48   :  { %p4964_p3 = pnand %p4963_p2, %p4957_p13 }
  0x4a   :  { %4967 = shalt.err (!%p4964_p3)
}
  0x4b   :  { %119 = dma.hbm_to_vmem [thread:$0]  %s6048_s8, 256, %s117_s27, [#allocation16]  }
  0x4c   :  { %s4968_s18 = scalar_lea.hbm %s6050_s10, 3072 }
  0x4d   :  { %p4969_p4 = scmp.ne.s32.totalorder %s6050_s10, %s4968_s18  ;;  %p4972_p5 = scmp.lt.u32.totalorder %s4968_s18, %s6050_s10 }
  0x4f   :  { %p4974_p6 = pnand %p4972_p5, %p4969_p4 }
  0x51   :  { %4977 = shalt.err (!%p4974_p6)
}
  0x52   :  { %s4978_s17 = scalar_lea.vmem %s138_s19, 3072  ;;  %p4983_p8 = scmp.lt.s32.totalorder %s138_s19, %s138_s19 }
  0x53   :  { %p4979_p7 = scmp.ne.s32.totalorder %s138_s19, %s4978_s17  ;;  %p4984_p9 = scmp.lt.s32.totalorder %s4978_s17, %s4978_s17 }
  0x55   :  { %p4985_p10 = por %p4984_p9, %p4983_p8 }
  0x57   :  { %p4986_p11 = pnand %p4985_p10, %p4979_p7 }
  0x59   :  { %4989 = shalt.err (!%p4986_p11)
}
  0x5a   :  { %143 = dma.hbm_to_vmem [thread:$0]  %s6050_s10, 3072, %s138_s19, [#allocation19], %s5229_s28, %s5229_s28, %s5230_s29  }
  0x5b   :  { %s5235_s20 = smov [#allocation21]   ;;  %s5236_s22 = smov [#allocation3]  }
  0x5c   :  { %s162_s15 = sshll.u32 %s5235_s20, 4  ;;  %s38_s23 = sshll.u32 %s5236_s22, 4  ;;  %s163_s15 = int_to_ptr.vmem [resolvable:$true] %s162_s15  ;;  %s39_s23 = int_to_ptr.vmem [resolvable:$true] %s38_s23 }
  0x5d   :  { %s4990_s24 = scalar_lea.hbm %s6052_s12, 128 }
  0x5e   :  { %p4991_p12 = scmp.ne.s32.totalorder %s6052_s12, %s4990_s24  ;;  %p4994_p13 = scmp.lt.u32.totalorder %s4990_s24, %s6052_s12 }
  0x60   :  { %p4996_p0 = pnand %p4994_p13, %p4991_p12 }
  0x62   :  { %4999 = shalt.err (!%p4996_p0)
}
  0x63   :  { %s5000_s10 = scalar_lea.vmem %s163_s15, 128  ;;  %p5005_p2 = scmp.lt.s32.totalorder %s163_s15, %s163_s15 }
  0x64   :  { %p5001_p1 = scmp.ne.s32.totalorder %s163_s15, %s5000_s10  ;;  %p5006_p3 = scmp.lt.s32.totalorder %s5000_s10, %s5000_s10 }
  0x66   :  { %p5007_p4 = por %p5006_p3, %p5005_p2 }
  0x68   :  { %p5008_p5 = pnand %p5007_p4, %p5001_p1 }
  0x6a   :  { %5011 = shalt.err (!%p5008_p5)
}
  0x6b   :  { %165 = dma.hbm_to_vmem [thread:$0]  %s6052_s12, 128, %s163_s15, [#allocation22]  }
  0x6c   :  { %s5012_s17 = scalar_lea.hbm %s6041_s1, 256 }
  0x6d   :  { %p5013_p6 = scmp.ne.s32.totalorder %s6041_s1, %s5012_s17  ;;  %p5016_p7 = scmp.lt.u32.totalorder %s5012_s17, %s6041_s1 }
  0x6f   :  { %p5018_p8 = pnand %p5016_p7, %p5013_p6 }
  0x71   :  { %5021 = shalt.err (!%p5018_p8)
}
  0x72   :  { %s5022_s6 = scalar_lea.vmem %s39_s23, 256  ;;  %p5027_p10 = scmp.lt.s32.totalorder %s39_s23, %s39_s23 }
  0x73   :  { %p5023_p9 = scmp.ne.s32.totalorder %s39_s23, %s5022_s6  ;;  %p5028_p11 = scmp.lt.s32.totalorder %s5022_s6, %s5022_s6 }
  0x75   :  { %p5029_p12 = por %p5028_p11, %p5027_p10 }
  0x77   :  { %p5030_p13 = pnand %p5029_p12, %p5023_p9 }
  0x79   :  { %5033 = shalt.err (!%p5030_p13)
}
  0x7a   :  { %41 = dma.hbm_to_vmem [thread:$0]  %s6041_s1, 256, %s39_s23, [#allocation4]  }
  0x7b   :  { %s5237_s21 = smov [#allocation8]   ;;  %s5034_s18 = scalar_lea.hbm %s6043_s3, 2048 }
  0x7c   :  { %s59_s24 = sshll.u32 %s5237_s21, 4  ;;  %p5035_p0 = scmp.ne.s32.totalorder %s6043_s3, %s5034_s18  ;;  %s60_s24 = int_to_ptr.vmem [resolvable:$true] %s59_s24 }
  0x7d   :  { %p5038_p1 = scmp.lt.u32.totalorder %s5034_s18, %s6043_s3 }
  0x7f   :  { %p5040_p2 = pnand %p5038_p1, %p5035_p0 }
  0x81   :  { %5043 = shalt.err (!%p5040_p2)
}
  0x82   :  { %s5044_s30 = scalar_lea.vmem %s60_s24, 2048  ;;  %p5049_p4 = scmp.lt.s32.totalorder %s60_s24, %s60_s24 }
  0x83   :  { %p5045_p3 = scmp.ne.s32.totalorder %s60_s24, %s5044_s30  ;;  %p5050_p5 = scmp.lt.s32.totalorder %s5044_s30, %s5044_s30 }
  0x85   :  { %p5051_p6 = por %p5050_p5, %p5049_p4 }
  0x87   :  { %p5052_p7 = pnand %p5051_p6, %p5045_p3 }
  0x89   :  { %5055 = shalt.err (!%p5052_p7)
}
  0x8a   :  { %s5238_s1 = smov 256   ;;  %s5239_s23 = smov 16  }
  0x8b   :  { %65 = dma.hbm_to_vmem [thread:$0]  %s6043_s3, 2048, %s60_s24, [#allocation7], %s5238_s1, %s5238_s1, %s5239_s23  }
  0x8c   :  { %s5240_s8 = smov [#allocation11]   ;;  %s5241_s20 = smov [#allocation14]  }
  0x8d   :  { %s81_s27 = sshll.u32 %s5240_s8, 4  ;;  %s103_s22 = sshll.u32 %s5241_s20, 4  ;;  %s82_s27 = int_to_ptr.vmem [resolvable:$true] %s81_s27  ;;  %s5441_s22 = int_to_ptr.vmem [resolvable:$true] %s103_s22 }
  0x8e   :  { %s5056_s15 = scalar_lea.hbm %s6045_s5, 1024 }
  0x8f   :  { %p5057_p8 = scmp.ne.s32.totalorder %s6045_s5, %s5056_s15  ;;  %p5060_p9 = scmp.lt.u32.totalorder %s5056_s15, %s6045_s5 }
  0x91   :  { %p5062_p10 = pnand %p5060_p9, %p5057_p8 }
  0x93   :  { %5065 = shalt.err (!%p5062_p10)
}
  0x94   :  { %s5066_s3 = scalar_lea.vmem %s82_s27, 1024  ;;  %p5071_p12 = scmp.lt.s32.totalorder %s82_s27, %s82_s27 }
  0x95   :  { %p5067_p11 = scmp.ne.s32.totalorder %s82_s27, %s5066_s3  ;;  %p5072_p13 = scmp.lt.s32.totalorder %s5066_s3, %s5066_s3 }
  0x97   :  { %p5073_p0 = por %p5072_p13, %p5071_p12 }
  0x99   :  { %p5074_p1 = pnand %p5073_p0, %p5067_p11 }
  0x9b   :  { %5077 = shalt.err (!%p5074_p1)
}
  0x9c   :  { %87 = dma.hbm_to_vmem [thread:$0]  %s6045_s5, 1024, %s82_s27, [#allocation10], %s5229_s28, %s5229_s28, %s5230_s29  }
  0x9d   :  { %s5078_s2 = scalar_lea.hbm %s6047_s7, 8192 }
  0x9e   :  { %p5079_p2 = scmp.ne.s32.totalorder %s6047_s7, %s5078_s2  ;;  %p5082_p3 = scmp.lt.u32.totalorder %s5078_s2, %s6047_s7 }
  0xa0   :  { %p5084_p4 = pnand %p5082_p3, %p5079_p2 }
  0xa2   :  { %5087 = shalt.err (!%p5084_p4)
}
  0xa3   :  { %s5088_s20 = scalar_lea.vmem %s5441_s22, 8192  ;;  %p5093_p6 = scmp.lt.s32.totalorder %s5441_s22, %s5441_s22 }
  0xa4   :  { %p5089_p5 = scmp.ne.s32.totalorder %s5441_s22, %s5088_s20  ;;  %p5094_p7 = scmp.lt.s32.totalorder %s5088_s20, %s5088_s20 }
  0xa6   :  { %p5095_p8 = por %p5094_p7, %p5093_p6 }
  0xa8   :  { %p5096_p9 = pnand %p5095_p8, %p5089_p5 }
  0xaa   :  { %5099 = shalt.err (!%p5096_p9)
}
  0xab   :  { %s5242_s5 = smov 1024   ;;  %s5243_s27 = smov 64  }
  0xac   :  { %109 = dma.hbm_to_vmem [thread:$0]  %s6047_s7, 8192, %s5441_s22, [#allocation13], %s5242_s5, %s5242_s5, %s5243_s27  }
  0xad   :  { %s5244_s15 = smov [#allocation17]   ;;  %s5245_s25 = smov [#allocation20]  }
  0xae   :  { %s125_s21 = sshll.u32 %s5244_s15, 4  ;;  %s149_s4 = sshll.u32 %s5245_s25, 4  ;;  %s126_s21 = int_to_ptr.vmem [resolvable:$true] %s125_s21  ;;  %s150_s4 = int_to_ptr.vmem [resolvable:$true] %s149_s4 }
  0xaf   :  { %s5100_s24 = scalar_lea.hbm %s6049_s9, 16384 }
  0xb0   :  { %p5101_p10 = scmp.ne.s32.totalorder %s6049_s9, %s5100_s24  ;;  %p5104_p11 = scmp.lt.u32.totalorder %s5100_s24, %s6049_s9 }
  0xb2   :  { %p5106_p12 = pnand %p5104_p11, %p5101_p10 }
  0xb4   :  { %5109 = shalt.err (!%p5106_p12)
}
  0xb5   :  { %s5110_s7 = scalar_lea.vmem %s126_s21, 16384  ;;  %p5115_p0 = scmp.lt.s32.totalorder %s126_s21, %s126_s21 }
  0xb6   :  { %p5111_p13 = scmp.ne.s32.totalorder %s126_s21, %s5110_s7  ;;  %p5116_p1 = scmp.lt.s32.totalorder %s5110_s7, %s5110_s7 }
  0xb8   :  { %p5117_p2 = por %p5116_p1, %p5115_p0 }
  0xba   :  { %p5118_p3 = pnand %p5117_p2, %p5111_p13 }
  0xbc   :  { %5121 = shalt.err (!%p5118_p3)
}
  0xbd   :  { %s5246_s22 = smov 4   ;;  %s5122_s20 = scalar_lea.hbm %s6051_s11, 2048 }
  0xbe   :  { %131 = dma.hbm_to_vmem [thread:$0]  %s6049_s9, 16384, %s126_s21, [#allocation16], %s5243_s27, %s5243_s27, %s5246_s22  }
  0xbf   :  { %p5123_p4 = scmp.ne.s32.totalorder %s6051_s11, %s5122_s20  ;;  %p5126_p5 = scmp.lt.u32.totalorder %s5122_s20, %s6051_s11 }
  0xc1   :  { %p5128_p6 = pnand %p5126_p5, %p5123_p4 }
  0xc3   :  { %5131 = shalt.err (!%p5128_p6)
}
  0xc4   :  { %s5132_s25 = scalar_lea.vmem %s150_s4, 2048  ;;  %p5137_p8 = scmp.lt.s32.totalorder %s150_s4, %s150_s4 }
  0xc5   :  { %p5133_p7 = scmp.ne.s32.totalorder %s150_s4, %s5132_s25  ;;  %p5138_p9 = scmp.lt.s32.totalorder %s5132_s25, %s5132_s25 }
  0xc7   :  { %p5139_p10 = por %p5138_p9, %p5137_p8 }
  0xc9   :  { %p5140_p11 = pnand %p5139_p10, %p5133_p7 }
  0xcb   :  { %5143 = shalt.err (!%p5140_p11)
}
  0xcc   :  { %155 = dma.hbm_to_vmem [thread:$0]  %s6051_s11, 2048, %s150_s4, [#allocation19], %s5229_s28, %s5229_s28, %s5230_s29  }
  0xcd   :  { %s5247_s18 = smov [#allocation23]   ;;  %s5248_s24 = smov [#allocation24]  }
  0xce   :  { %s171_s3 = sshll.u32 %s5247_s18, 4  ;;  %s183_s26 = sshll.u32 %s5248_s24, 4  ;;  %s172_s3 = int_to_ptr.vmem [resolvable:$true] %s171_s3  ;;  %s184_s26 = int_to_ptr.vmem [resolvable:$true] %s183_s26 }
  0xcf   :  { %s5144_s2 = scalar_lea.hbm %s6053_s13, 3072 }
  0xd0   :  { %p5145_p12 = scmp.ne.s32.totalorder %s6053_s13, %s5144_s2  ;;  %p5148_p13 = scmp.lt.u32.totalorder %s5144_s2, %s6053_s13 }
  0xd2   :  { %p5150_p0 = pnand %p5148_p13, %p5145_p12 }
  0xd4   :  { %5153 = shalt.err (!%p5150_p0)
}
  0xd5   :  { %s5154_s11 = scalar_lea.vmem %s172_s3, 3072  ;;  %p5159_p2 = scmp.lt.s32.totalorder %s172_s3, %s172_s3 }
  0xd6   :  { %p5155_p1 = scmp.ne.s32.totalorder %s172_s3, %s5154_s11  ;;  %p5160_p3 = scmp.lt.s32.totalorder %s5154_s11, %s5154_s11 }
  0xd8   :  { %p5161_p4 = por %p5160_p3, %p5159_p2 }
  0xda   :  { %p5162_p5 = pnand %p5161_p4, %p5155_p1 }
  0xdc   :  { %5165 = shalt.err (!%p5162_p5)
}
  0xdd   :  { %177 = dma.hbm_to_vmem [thread:$0]  %s6053_s13, 3072, %s172_s3, [#allocation22], %s5229_s28, %s5229_s28, %s5230_s29  }
  0xde   :  { %s5166_s5 = scalar_lea.hbm %s6054_s14, 768 }
  0xdf   :  { %p5167_p6 = scmp.ne.s32.totalorder %s6054_s14, %s5166_s5  ;;  %p5170_p7 = scmp.lt.u32.totalorder %s5166_s5, %s6054_s14 }
  0xe1   :  { %p5172_p8 = pnand %p5170_p7, %p5167_p6 }
  0xe3   :  { %5175 = shalt.err (!%p5172_p8)
}
  0xe4   :  { %s5176_s9 = scalar_lea.vmem %s184_s26, 768  ;;  %p5181_p10 = scmp.lt.s32.totalorder %s184_s26, %s184_s26 }
  0xe5   :  { %p5177_p9 = scmp.ne.s32.totalorder %s184_s26, %s5176_s9  ;;  %p5182_p11 = scmp.lt.s32.totalorder %s5176_s9, %s5176_s9 }
  0xe7   :  { %p5183_p12 = por %p5182_p11, %p5181_p10 }
  0xe9   :  { %p5184_p13 = pnand %p5183_p12, %p5177_p9 }
  0xeb   :  { %5187 = shalt.err (!%p5184_p13)
}
  0xec   :  { %189 = dma.hbm_to_vmem [thread:$0]  %s6054_s14, 768, %s184_s26, [#allocation25], %s5238_s1, %s5238_s1, %s5239_s23  }
  0xed   :  { %5210 = dma.done.wait [#allocation4], 256  }
  0xee   :  { %5211 = vsyncadd [#allocation4], 4294967040 }
  0xef   :  { %5212 = dma.done.wait [#allocation7], 4096  }
  0xf0   :  { %5213 = vsyncadd [#allocation7], 4294963200 }
  0xf1   :  { %5214 = dma.done.wait [#allocation10], 1056  }
  0xf2   :  { %5215 = vsyncadd [#allocation10], 4294966240 }
  0xf3   :  { %5216 = dma.done.wait [#allocation13], 8320  }
  0xf4   :  { %5217 = vsyncadd [#allocation13], 4294958976 }
  0xf5   :  { %5218 = dma.done.wait [#allocation16], 16640  }
  0xf6   :  { %5219 = vsyncadd [#allocation16], 4294950656 }
  0xf7   :  { %5220 = dma.done.wait [#allocation19], 5120  }
  0xf8   :  { %5221 = vsyncadd [#allocation19], 4294962176 }
  0xf9   :  { %5222 = dma.done.wait [#allocation22], 3200  }
  0xfa   :  { %5223 = vsyncadd [#allocation22], 4294964096 }
  0xfb   :  { %5224 = dma.done.wait [#allocation25], 768  }
  0xfc   :  { %5225 = vsyncadd [#allocation25], 4294966528  ;;  %v5249_v0 = vmov 0.0|0.0   ;;  %vm5250_vm0 = vmmov 0   ;;  %v5251_v1 = vmov 0.0   ;;  %v236_v2 = vld [vmem:[#allocation6] sm:$0xff]  ;;  %v355_v54 = vlaneseq }
  0xfd   :  { %4535 = vmatprep.subr.bf16.mxu0 %v5249_v0  ;;  %4415 = vmatprep.mubr.msk.f32.mxu0 %vm5250_vm0, %v5251_v1  ;;  %v237_v3 = vld [vmem:[#allocation6 + $0x8] sm:$0xff]  ;;  %v238_v4 = vld [vmem:[#allocation6 + $0x10] sm:$0xff]  ;;  %v239_v6 = vld [vmem:[#allocation6 + $0x18] sm:$0xff]  ;;  %vm365_vm1 = vcmask 523264   ;;  %s322_s21 = ssub.f32 1.0, %s6040_s0  ;;  %s5253_s24 = smov 120  }
  0xfe   :  { %437 = vmatprep.mubr.f32.mxu1 %v5251_v1  ;;  %v4536_v5 = vpack.c.bf16 %v237_v3, %v236_v2  ;;  %v5539_v7 = vld [vmem:[#allocation3 + $0x8] sm:$0xff]  ;;  %v4539_v8 = vpack.c.bf16 %v239_v6, %v238_v4  ;;  %v5543_v9 = vld [vmem:[#allocation3] sm:$0xff]  ;;  %v240_v10 = vld [vmem:[#allocation6 + $0x20] sm:$0xff]  ;;  %v5565_v55 = vshrl.u32 %v355_v54, 7  ;;  %v330_v4 = vstv %s6040_s0  ;;  %s5252_s0 = smov 112  }
  0xff   :  { %326 = vrot.lane.b32.xlu0 %v5539_v7, %s5243_s27  ;;  %v241_v11 = vld [vmem:[#allocation6 + $0x28] sm:$0xff]  ;;  %v242_v12 = vld [vmem:[#allocation6 + $0x30] sm:$0xff]  ;;  %v243_v13 = vld [vmem:[#allocation6 + $0x38] sm:$0xff]  ;;  %vm749_vm2 = vcmask 64512   ;;  %vm753_vm3 = vcmask 130048   ;;  %vm763_vm4 = vcmask 195584  }
 0x100   :  { %4537 = vmatpush3.bf16.msra.mxu0 %v4536_v5  ;;  %v338_v14 = vld [vmem:[#allocation8 + $0x8] sm:$0xff]  ;;  %v340_v15 = vld [vmem:[#allocation8 + $0x18] sm:$0xff]  ;;  %v337_v16 = vld [vmem:[#allocation8] sm:$0xff]  ;;  %v4542_v17 = vpack.c.bf16 %v241_v11, %v240_v10  ;;  %v4545_v34 = vpack.c.bf16 %v243_v13, %v242_v12  ;;  %v5568_v56 = vsub.s32 0, %v5565_v55  ;;  %v5571_v58 = vsub.s32 1, %v5565_v55 }
 0x101   :  { %4538 = vmatprep.subr.bf16.mxu0 %v5249_v0  ;;  %v4559_v18 = vpack.c.bf16 %v340_v15, %v338_v14  ;;  %v339_v19 = vld [vmem:[#allocation8 + $0x10] sm:$0xff]  ;;  %v342_v20 = vld [vmem:[#allocation8 + $0x28] sm:$0xff]  ;;  %v344_v21 = vld [vmem:[#allocation8 + $0x38] sm:$0xff]  ;;  %v323_v5 = vstv %s322_s21 }
 0x102   :  { %v4561_v22 = vpack.c.bf16 %v339_v19, %v337_v16  ;;  %v4563_v23 = vpack.c.bf16 %v344_v21, %v342_v20  ;;  %v341_v24 = vld [vmem:[#allocation8 + $0x20] sm:$0xff]  ;;  %v343_v25 = vld [vmem:[#allocation8 + $0x30] sm:$0xff]  ;;  %v346_v26 = vld [vmem:[#allocation8 + $0x48] sm:$0xff] }
 0x103   :  { %334 = vrot.lane.b32.xlu0 %v5543_v9, %s5243_s27  ;;  %4560 = vmatprep.subr.bf16.mxu1 %v4559_v18  ;;  %v348_v27 = vld [vmem:[#allocation8 + $0x58] sm:$0xff]  ;;  %v244_v28 = vld [vmem:[#allocation6 + $0x40] sm:$0xff]  ;;  %v245_v29 = vld [vmem:[#allocation6 + $0x48] sm:$0xff]  ;;  %v4565_v30 = vpack.c.bf16 %v343_v25, %v341_v24 }
 0x104   :  { %4540 = vmatpush3.bf16.msra.mxu0 %v4539_v8  ;;  %4562 = vmatpush1.bf16.msra.mxu1 %v4561_v22  ;;  %v345_v31 = vld [vmem:[#allocation8 + $0x40] sm:$0xff]  ;;  %v347_v32 = vld [vmem:[#allocation8 + $0x50] sm:$0xff]  ;;  %v350_v33 = vld [vmem:[#allocation8 + $0x68] sm:$0xff]  ;;  %v4567_v35 = vpack.c.bf16 %v348_v27, %v346_v26  ;;  %v4548_v42 = vpack.c.bf16 %v245_v29, %v244_v28 }
 0x105   :  { %4541 = vmatprep.subr.bf16.mxu0 %v5249_v0  ;;  %4564 = vmatprep.subr.bf16.mxu1 %v4563_v23  ;;  %v352_v36 = vld [vmem:[#allocation8 + $0x78] sm:$0xff]  ;;  %v349_v37 = vld [vmem:[#allocation8 + $0x60] sm:$0xff]  ;;  %v351_v38 = vld [vmem:[#allocation8 + $0x70] sm:$0xff]  ;;  %v4569_v41 = vpack.c.bf16 %v347_v32, %v345_v31 }
 0x106   :  { %v246_v39 = vld [vmem:[#allocation6 + $0x50] sm:$0xff]  ;;  %v247_v40 = vld [vmem:[#allocation6 + $0x58] sm:$0xff]  ;;  %v4571_v43 = vpack.c.bf16 %v352_v36, %v350_v33  ;;  %v248_v44 = vld [vmem:[#allocation6 + $0x60] sm:$0xff]  ;;  %v4573_v46 = vpack.c.bf16 %v351_v38, %v349_v37 }
 0x107   :  { %v249_v45 = vld [vmem:[#allocation6 + $0x68] sm:$0xff]  ;;  %v4551_v47 = vpack.c.bf16 %v247_v40, %v246_v39  ;;  %v250_v48 = vld [vmem:[#allocation6 + $0x70] sm:$0xff]  ;;  %v251_v49 = vld [vmem:[#allocation6 + $0x78] sm:$0xff] }
 0x108   :  { %4543 = vmatpush3.bf16.msra.mxu0 %v4542_v17  ;;  %4566 = vmatpush1.bf16.msra.mxu1 %v4565_v30  ;;  %v4554_v50 = vpack.c.bf16 %v249_v45, %v248_v44  ;;  %v4557_v51 = vpack.c.bf16 %v251_v49, %v250_v48  ;;  %v353_v57 = vld [vmem:[#allocation9] sm:$0x3]  ;;  %v492_v15 = vld [vmem:[#allocation23] sm:$0xff]  ;;  %v493_v16 = vld [vmem:[#allocation23 + $0x8] sm:$0xff] }
 0x109   :  { %4544 = vmatprep.subr.bf16.mxu0 %v5249_v0  ;;  %4568 = vmatprep.subr.bf16.mxu1 %v4567_v35  ;;  %v5574_v59 = vrot.slane %v353_v57, %v5568_v56  ;;  %v5577_v60 = vrot.slane %v353_v57, %v5571_v58  ;;  %v494_v17 = vld [vmem:[#allocation23 + $0x10] sm:$0xff]  ;;  %v4576_v18 = vpack.c.bf16 %v493_v16, %v492_v15  ;;  %v495_v19 = vld [vmem:[#allocation23 + $0x18] sm:$0xff]  ;;  %v496_v21 = vld [vmem:[#allocation23 + $0x20] sm:$0xff] }
 0x10a   :  { %v4579_v20 = vpack.c.bf16 %v495_v19, %v494_v17  ;;  %v497_v22 = vld [vmem:[#allocation23 + $0x28] sm:$0xff]  ;;  %v498_v24 = vld [vmem:[#allocation23 + $0x30] sm:$0xff]  ;;  %v499_v25 = vld [vmem:[#allocation23 + $0x38] sm:$0xff] }
 0x10b   :  { %v4582_v23 = vpack.c.bf16 %v497_v22, %v496_v21  ;;  %v4585_v26 = vpack.c.bf16 %v499_v25, %v498_v24  ;;  %v500_v27 = vld [vmem:[#allocation23 + $0x40] sm:$0xff]  ;;  %v501_v28 = vld [vmem:[#allocation23 + $0x48] sm:$0xff]  ;;  %v502_v30 = vld [vmem:[#allocation23 + $0x50] sm:$0xff] }
 0x10c   :  { %4546 = vmatpush3.bf16.msra.mxu0 %v4545_v34  ;;  %4570 = vmatpush1.bf16.msra.mxu1 %v4569_v41  ;;  %v4588_v29 = vpack.c.bf16 %v501_v28, %v500_v27  ;;  %v503_v31 = vld [vmem:[#allocation23 + $0x58] sm:$0xff]  ;;  %v504_v33 = vld [vmem:[#allocation23 + $0x60] sm:$0xff]  ;;  %v505_v34 = vld [vmem:[#allocation23 + $0x68] sm:$0xff] }
 0x10d   :  { %4547 = vmatprep.subr.bf16.mxu0 %v5249_v0  ;;  %4572 = vmatprep.subr.bf16.mxu1 %v4571_v43  ;;  %v4591_v32 = vpack.c.bf16 %v503_v31, %v502_v30  ;;  %v4594_v35 = vpack.c.bf16 %v505_v34, %v504_v33  ;;  %v506_v36 = vld [vmem:[#allocation23 + $0x70] sm:$0xff]  ;;  %v507_v37 = vld [vmem:[#allocation23 + $0x78] sm:$0xff]  ;;  %v508_v39 = vld [vmem:[#allocation23 + $0x80] sm:$0xff] }
 0x10e   :  { %v4597_v38 = vpack.c.bf16 %v507_v37, %v506_v36  ;;  %v509_v40 = vld [vmem:[#allocation23 + $0x88] sm:$0xff]  ;;  %v511_v43 = vld [vmem:[#allocation23 + $0x98] sm:$0xff]  ;;  %v512_v45 = vld [vmem:[#allocation23 + $0xa0] sm:$0xff] }
 0x10f   :  { %v4600_v41 = vpack.c.bf16 %v509_v40, %v508_v39  ;;  %v514_v48 = vld [vmem:[#allocation23 + $0xb0] sm:$0xff]  ;;  %v515_v49 = vld [vmem:[#allocation23 + $0xb8] sm:$0xff] }
 0x110   :  { %4549 = vmatpush3.bf16.msra.mxu0 %v4548_v42  ;;  %4574 = vmatpush1.bf16.msra.mxu1 %v4573_v46  ;;  %v510_v42 = vld [vmem:[#allocation23 + $0x90] sm:$0xff]  ;;  %v513_v46 = vld [vmem:[#allocation23 + $0xa8] sm:$0xff] }
 0x111   :  { %4550 = vmatprep.subr.bf16.mxu0 %v5249_v0  ;;  %4575 = vmatprep.subr.bf16.mxu1 %v5249_v0  ;;  %v4603_v44 = vpack.c.bf16 %v511_v43, %v510_v42 }
 0x113   :  { %3856 = vmatmul.mubr.msk.f32.vlgmr.msra.gmra.mrb[0].mxu1 %vm365_vm1, %v5543_v9 }
 0x114   :  { %4552 = vmatpush3.bf16.msra.mxu0 %v4551_v47  ;;  %443 = vmatprep.mubr.f32.mxu1 %v5251_v1  ;;  %v4606_v47 = vpack.c.bf16 %v513_v46, %v512_v45 }
 0x115   :  { %4553 = vmatprep.subr.bf16.mxu0 %v5249_v0  ;;  %4577 = vmatpush1.bf16.msra.mxu1 %v4576_v18 }
 0x116   :  { %4578 = vmatprep.subr.bf16.mxu1 %v5249_v0 }
 0x118   :  { %4555 = vmatpush3.bf16.msra.mxu0 %v4554_v50  ;;  %v4609_v50 = vpack.c.bf16 %v515_v49, %v514_v48 }
 0x119   :  { %4556 = vmatprep.subr.bf16.mxu0 %v5249_v0  ;;  %4580 = vmatpush1.bf16.msra.mxu1 %v4579_v20 }
 0x11a   :  { %4581 = vmatprep.subr.bf16.mxu1 %v5249_v0 }
 0x11c   :  { %4558 = vmatpush3.bf16.msra.mxu0 %v4557_v51 }
 0x11d   :  { %4583 = vmatpush1.bf16.msra.mxu1 %v4582_v23 }
 0x11e   :  { %4584 = vmatprep.subr.bf16.mxu1 %v5249_v0 }
 0x11f   :  { %4416 = vmatmul.mubr.f32.vlgmr.msra.gmra.mrb[0].mxu0 %v5539_v7 }
 0x120   :  { %837 = vmatprep.mubr.f32.mxu0 %v5251_v1 }
 0x121   :  { %4586 = vmatpush1.bf16.msra.mxu1 %v4585_v26 }
 0x122   :  { %4587 = vmatprep.subr.bf16.mxu1 %v5249_v0 }
 0x125   :  { %4589 = vmatpush1.bf16.msra.mxu1 %v4588_v29 }
 0x126   :  { %4590 = vmatprep.subr.bf16.mxu1 %v5249_v0 }
 0x129   :  { %4592 = vmatpush1.bf16.msra.mxu1 %v4591_v32 }
 0x12a   :  { %4593 = vmatprep.subr.bf16.mxu1 %v5249_v0 }
 0x12d   :  { %4595 = vmatpush1.bf16.msra.mxu1 %v4594_v35 }
 0x12e   :  { %4596 = vmatprep.subr.bf16.mxu1 %v5249_v0 }
 0x131   :  { %4598 = vmatpush1.bf16.msra.mxu1 %v4597_v38 }
 0x132   :  { %4599 = vmatprep.subr.bf16.mxu1 %v5249_v0 }
 0x135   :  { %4601 = vmatpush1.bf16.msra.mxu1 %v4600_v41 }
 0x136   :  { %4602 = vmatprep.subr.bf16.mxu1 %v5249_v0 }
 0x139   :  { %4604 = vmatpush1.bf16.msra.mxu1 %v4603_v44 }
 0x13a   :  { %4605 = vmatprep.subr.bf16.mxu1 %v5249_v0 }
 0x13d   :  { %4607 = vmatpush1.bf16.msra.mxu1 %v4606_v47 }
 0x13e   :  { %4608 = vmatprep.subr.bf16.mxu1 %v5249_v0 }
 0x141   :  { %4610 = vmatpush1.bf16.msra.mxu1 %v4609_v50 }
 0x171   :  { %v327_v52 = vpop.permute.xlu0 %326 }
 0x172   :  { %v329_v3 = vadd.f32 %v327_v52, %v5539_v7 }
 0x174   :  { %v331_v8 = vmul.f32 %v330_v4, %v329_v3 }
 0x175   :  { %v5560_v53 = vpop.permute.xlu0 %334 }
 0x176   :  { %3857 = vmatmul.mubr.msk.f32.gmra.mrb[2].mxu1 %vm365_vm1, %v5560_v53 }
 0x177   :  { %449 = vmatprep.mubr.f32.mxu1 %v5251_v1 }
 0x1e6   :  { %v439_v61 = vpop.f32.mrb[0].mxu1 }
 0x1e7   :  { %v5580_v62 = vadd.f32 %v439_v61, %v5574_v59  ;;  %v441_v63 = vpop.f32.mrb[1].mxu1 }
 0x1e8   :  { %v5583_v2 = vadd.f32 %v441_v63, %v5577_v60 }
 0x1e9   :  { %459 = vrot.lane.b32.xlu0 %v5580_v62, %s5243_s27 }
 0x1f2   :  { %v318_v6 = vpop.f32.mrb[0].mxu0 }
 0x1f3   :  { %v324_v9 = vmul.f32 %v323_v5, %v318_v6  ;;  %v4417_v10 = vpop.f32.mrb[1].mxu0 }
 0x1f5   :  { %v5594_v11 = vadd.f32 %v331_v8, %v324_v9 }
 0x1f7   :  { %3858 = vmatmul.mubr.msk.f32.gmra.mrb[4].mxu1 %vm365_vm1, %v5594_v11 }
 0x249   :  { %v445_v12 = vpop.f32.mrb[2].mxu1 }
 0x24a   :  { %v5599_v13 = vadd.f32 %v445_v12, %v5574_v59  ;;  %v447_v14 = vpop.f32.mrb[3].mxu1 }
 0x24b   :  { %v5602_v7 = vadd.f32 %v447_v14, %v5577_v60 }
 0x24c   :  { %461 = vrot.lane.b32.xlu1 %v5599_v13, %s5243_s27 }
 0x25b   :  { %v460_v3 = vpop.permute.xlu0 %459 }
 0x25c   :  { %v468_v8 = vmul.f32 %v460_v3, %v5580_v62  ;;  %v475_v9 = vmul.f32 %v460_v3, %v5599_v13 }
 0x2be   :  { %v462_v57 = vpop.permute.xlu1 %461 }
 0x2bf   :  { %v471_v63 = vmul.f32 %v462_v57, %v5580_v62  ;;  %v469_v12 = vmul.f32 %v462_v57, %v5599_v13 }
 0x2ca   :  { %v451_v51 = vpop.f32.mrb[4].mxu1 }
 0x2cb   :  { %v452_v52 = vadd.f32 %v451_v51, %v5574_v59  ;;  %v453_v54 = vpop.f32.mrb[5].mxu1 }
 0x2cc   :  { %v5619_v61 = vadd.f32 %v453_v54, %v5577_v60 }
 0x2cd   :  { %463 = vrot.lane.b32.xlu1 %v452_v52, %s5243_s27  ;;  %v473_v4 = vmul.f32 %v460_v3, %v452_v52  ;;  %v476_v16 = vmul.f32 %v462_v57, %v452_v52 }
 0x2d1   :  { %480 = vrot.lane.b32.xlu1 %v471_v63, %s5243_s27 }
 0x2d5   :  { %484 = vrot.lane.b32.xlu1 %v473_v4, %s5243_s27 }
 0x33f   :  { %v464_v5 = vpop.permute.xlu1 %463 }
 0x340   :  { %v474_v6 = vmul.f32 %v464_v5, %v5580_v62  ;;  %v472_v59 = vmul.f32 %v464_v5, %v5599_v13  ;;  %v470_v62 = vmul.f32 %v464_v5, %v452_v52 }
 0x342   :  { %482 = vrot.lane.b32.xlu0 %v472_v59, %s5243_s27  ;;  %3859 = vmatprep.mubr.msk.f32.mxu1 %vm365_vm1, %v474_v6 }
 0x343   :  { %v481_v60 = vpop.permute.xlu1 %480 }
 0x344   :  { %v489_v10 = vsel %vm365_vm1, %v468_v8, %v481_v60 }
 0x345   :  { %590 = vmatmul.mubr.f32.vlgmr.msra.gmra.mrb[6].mxu1 %v489_v10  ;;  %v758_v10 = vld [vmem:[#allocation24 + $0x8] sm:$0xff] }
 0x346   :  { %3860 = vmatprep.mubr.msk.f32.mxu1 %vm365_vm1, %v475_v9 }
 0x347   :  { %v485_v17 = vpop.permute.xlu1 %484 }
 0x348   :  { %v491_v18 = vsel %vm365_vm1, %v470_v62, %v485_v17  ;;  %v759_v17 = vld [vmem:[#allocation24 + $0x10] sm:$0xff] }
 0x3b4   :  { %v483_v14 = vpop.permute.xlu0 %482 }
 0x3b5   :  { %v490_v15 = vsel %vm365_vm1, %v469_v12, %v483_v14  ;;  %v760_v12 = vld [vmem:[#allocation24 + $0x18] sm:$0xff]  ;;  %v757_v14 = vld [vmem:[#allocation24] sm:$0xff] }
 0x3b6   :  { %595 = vmatmul.mubr.f32.gmra.mrb[8].mxu1 %v490_v15 }
 0x3b7   :  { %3861 = vmatprep.mubr.msk.f32.mxu1 %vm365_vm1, %v476_v16  ;;  %v4611_v16 = vpack.c.bf16 %v760_v12, %v758_v10 }
 0x3b9   :  { %4612 = vmatprep.subr.bf16.mxu0 %v4611_v16 }
 0x3ba   :  { %600 = vmatmul.mubr.f32.gmra.mrb[10].mxu1 %v491_v18 }
 0x418   :  { %v591_v19 = vpop.f32.mrb[6].mxu1 }
 0x419   :  { %v605_v20 = vmul.f32 0.35355338, %v591_v19  ;;  %v593_v21 = vpop.f32.mrb[7].mxu1  ;;  %v4613_v19 = vpack.c.bf16 %v759_v17, %v757_v14  ;;  %v904_v14 = vld [vmem:[#allocation11 + $0x18] sm:$0xff]  ;;  %v906_v17 = vld [vmem:[#allocation11 + $0x28] sm:$0xff] }
 0x41b   :  { %623 = vrot.lane.b32.xlu1 %v605_v20, %s5252_s0  ;;  %611 = vrot.lane.b32.xlu0 %v605_v20, %s5253_s24 }
 0x41c   :  { %4614 = vmatpush1.bf16.msra.mxu0 %v4613_v19  ;;  %v908_v19 = vld [vmem:[#allocation11 + $0x38] sm:$0xff] }
 0x489   :  { %v596_v13 = vpop.f32.mrb[8].mxu1 }
 0x48a   :  { %v5639_v22 = vmul.f32 0.35355338, %v596_v13  ;;  %v598_v23 = vpop.f32.mrb[9].mxu1 }
 0x48b   :  { %v762_v23 = vld [vmem:[#allocation24 + $0x28] sm:$0xff] }
 0x48c   :  { %625 = vrot.lane.b32.xlu1 %v5639_v22, %s5252_s0  ;;  %613 = vrot.lane.b32.xlu0 %v5639_v22, %s5253_s24 }
 0x48d   :  { %v612_v24 = vpop.permute.xlu0 %611  ;;  %v601_v25 = vpop.f32.mrb[10].mxu1  ;;  %777 = vmatprep.subr.mxu0 %v762_v23 }
 0x48e   :  { %v620_v26 = vmax.f32 %v605_v20, %v612_v24  ;;  %v5645_v27 = vmul.f32 0.35355338, %v601_v25  ;;  %v603_v28 = vpop.f32.mrb[11].mxu1  ;;  %v624_v29 = vpop.permute.xlu1 %623  ;;  %v761_v24 = vld [vmem:[#allocation24 + $0x20] sm:$0xff] }
 0x48f   :  { %778 = vmatpush1.msra.mxu0 %v761_v24 }
 0x490   :  { %627 = vrot.lane.b32.xlu1 %v5645_v27, %s5252_s0  ;;  %615 = vrot.lane.b32.xlu0 %v5645_v27, %s5253_s24  ;;  %v632_v30 = vmax.f32 %v620_v26, %v624_v29 }
 0x491   :  { %4615 = vmatprep.subr.bf16.mxu0 %v5249_v0 }
 0x492   :  { %v635_v47 = vsub.f32 %v605_v20, %v632_v30 }
 0x494   :  { %665 = vrot.lane.b32.xlu1 %v632_v30, %s5239_s23  ;;  %647 = vrot.lane.b32.xlu0 %v632_v30, %s5230_s29  ;;  %v638_v57 = vmul.f32 1.442695, %v635_v47 }
 0x4fe   :  { %v614_v31 = vpop.permute.xlu0 %613  ;;  %v626_v32 = vpop.permute.xlu1 %625 }
 0x4ff   :  { %v621_v33 = vmax.f32 %v5639_v22, %v614_v31 }
 0x501   :  { %v5654_v34 = vmax.f32 %v621_v33, %v626_v32 }
 0x502   :  { %v616_v35 = vpop.permute.xlu0 %615  ;;  %v628_v36 = vpop.permute.xlu1 %627 }
 0x503   :  { %v622_v37 = vmax.f32 %v5645_v27, %v616_v35  ;;  %667 = vrot.lane.b32.xlu1 %v5654_v34, %s5239_s23  ;;  %649 = vrot.lane.b32.xlu0 %v5654_v34, %s5230_s29  ;;  %v636_v28 = vsub.f32 %v5639_v22, %v5654_v34 }
 0x505   :  { %v5661_v38 = vmax.f32 %v622_v37, %v628_v36  ;;  %v640_v29 = vmul.f32 1.442695, %v636_v28 }
 0x506   :  { %v648_v39 = vpop.permute.xlu0 %647  ;;  %v666_v40 = vpop.permute.xlu1 %665 }
 0x507   :  { %v656_v41 = vsub.f32 %v605_v20, %v648_v39  ;;  %v674_v42 = vsub.f32 %v605_v20, %v666_v40  ;;  %669 = vrot.lane.b32.xlu1 %v5661_v38, %s5239_s23  ;;  %651 = vrot.lane.b32.xlu0 %v5661_v38, %s5230_s29  ;;  %v637_v30 = vsub.f32 %v5645_v27, %v5661_v38 }
 0x509   :  { %v659_v43 = vmul.f32 1.442695, %v656_v41  ;;  %v677_v44 = vmul.f32 1.442695, %v674_v42  ;;  %v642_v31 = vmul.f32 1.442695, %v637_v30 }
 0x50b   :  { %4843 = vpow2.f32 %v659_v43 }
 0x50c   :  { %4845 = vpow2.f32 %v677_v44 }
 0x515   :  { %v5667_v45 = vpop.eup %4843 }
 0x516   :  { %v5669_v46 = vpop.eup %4845  ;;  %686 = vrot.lane.b32.xlu0 %v5667_v45, %s5253_s24 }
 0x517   :  { %701 = vrot.lane.b32.xlu1 %v5669_v46, %s5252_s0 }
 0x575   :  { %v650_v48 = vpop.permute.xlu0 %649  ;;  %v668_v49 = vpop.permute.xlu1 %667 }
 0x576   :  { %v657_v50 = vsub.f32 %v5639_v22, %v650_v48  ;;  %v675_v51 = vsub.f32 %v5639_v22, %v668_v49 }
 0x578   :  { %v661_v52 = vmul.f32 1.442695, %v657_v50  ;;  %v679_v54 = vmul.f32 1.442695, %v675_v51 }
 0x579   :  { %v652_v63 = vpop.permute.xlu0 %651  ;;  %v670_v3 = vpop.permute.xlu1 %669 }
 0x57a   :  { %4847 = vpow2.f32 %v661_v52  ;;  %v658_v4 = vsub.f32 %v5645_v27, %v652_v63  ;;  %v676_v5 = vsub.f32 %v5645_v27, %v670_v3 }
 0x57b   :  { %4849 = vpow2.f32 %v679_v54 }
 0x57c   :  { %v663_v6 = vmul.f32 1.442695, %v658_v4  ;;  %v681_v59 = vmul.f32 1.442695, %v676_v5  ;;  %4851 = vpow2.f32 %v638_v57 }
 0x57e   :  { %4853 = vpow2.f32 %v663_v6 }
 0x57f   :  { %4855 = vpow2.f32 %v681_v59 }
 0x584   :  { %v5679_v8 = vpop.eup %4847 }
 0x585   :  { %v5681_v60 = vpop.eup %4849  ;;  %688 = vrot.lane.b32.xlu0 %v5679_v8, %s5253_s24 }
 0x586   :  { %703 = vrot.lane.b32.xlu1 %v5681_v60, %s5252_s0  ;;  %v4852_v9 = vpop.eup %4851 }
 0x588   :  { %v5687_v15 = vpop.eup %4853  ;;  %v687_v18 = vpop.permute.xlu0 %686 }
 0x589   :  { %v5689_v62 = vpop.eup %4855  ;;  %690 = vrot.lane.b32.xlu0 %v5687_v15, %s5253_s24  ;;  %v695_v20 = vadd.f32 %v4852_v9, %v687_v18  ;;  %v702_v21 = vpop.permute.xlu1 %701  ;;  %v907_v18 = vld [vmem:[#allocation11 + $0x30] sm:$0xff] }
 0x58a   :  { %705 = vrot.lane.b32.xlu1 %v5689_v62, %s5252_s0 }
 0x58b   :  { %v710_v13 = vadd.f32 %v702_v21, %v695_v20  ;;  %v4625_v20 = vpack.c.bf16 %v908_v19, %v907_v18 }
 0x58d   :  { %4857 = vrcp.f32 %v710_v13 }
 0x58e   :  { %4859 = vpow2.f32 %v640_v29 }
 0x58f   :  { %4861 = vpow2.f32 %v642_v31 }
 0x597   :  { %v4858_v25 = vpop.eup %4857 }
 0x598   :  { %737 = vrot.lane.b32.xlu1 %v4858_v25, %s5239_s23  ;;  %725 = vrot.lane.b32.xlu0 %v4858_v25, %s5230_s29  ;;  %v719_v26 = vmul.f32 %v4858_v25, %v4852_v9  ;;  %v4860_v32 = vpop.eup %4859 }
 0x599   :  { %v4862_v39 = vpop.eup %4861 }
 0x5f7   :  { %v689_v33 = vpop.permute.xlu0 %688 }
 0x5f8   :  { %v696_v35 = vadd.f32 %v4860_v32, %v689_v33  ;;  %v704_v36 = vpop.permute.xlu1 %703 }
 0x5fa   :  { %v711_v37 = vadd.f32 %v704_v36, %v696_v35 }
 0x5fb   :  { %v691_v40 = vpop.permute.xlu0 %690 }
 0x5fc   :  { %4863 = vrcp.f32 %v711_v37  ;;  %v697_v41 = vadd.f32 %v4862_v39, %v691_v40  ;;  %v706_v42 = vpop.permute.xlu1 %705 }
 0x5fe   :  { %v712_v43 = vadd.f32 %v706_v42, %v697_v41 }
 0x600   :  { %4865 = vrcp.f32 %v712_v43 }
 0x606   :  { %v4864_v22 = vpop.eup %4863 }
 0x607   :  { %739 = vrot.lane.b32.xlu1 %v4864_v22, %s5239_s23  ;;  %727 = vrot.lane.b32.xlu0 %v4864_v22, %s5230_s29  ;;  %v720_v27 = vmul.f32 %v4864_v22, %v4860_v32 }
 0x60a   :  { %v4866_v34 = vpop.eup %4865  ;;  %v726_v38 = vpop.permute.xlu0 %725 }
 0x60b   :  { %v738_v44 = vpop.permute.xlu1 %737  ;;  %741 = vrot.lane.b32.xlu1 %v4866_v34, %s5239_s23  ;;  %729 = vrot.lane.b32.xlu0 %v4866_v34, %s5230_s29  ;;  %v721_v47 = vmul.f32 %v4866_v34, %v4862_v39  ;;  %v734_v48 = vmul.f32 %v5667_v45, %v726_v38  ;;  %v901_v45 = vld [vmem:[#allocation11] sm:$0xff]  ;;  %s5255_s29 = smov [#allocation26]  }
 0x60c   :  { %v746_v49 = vmul.f32 %v5669_v46, %v738_v44  ;;  %v902_v46 = vld [vmem:[#allocation11 + $0x8] sm:$0xff]  ;;  %s3840_s23 = sshll.u32 %s5255_s29, 4  ;;  %s3841_s23 = int_to_ptr.vmem [resolvable:$true] %s3840_s23 }
 0x60d   :  { %v750_v50 = vsel %vm749_vm2, %v719_v26, %v734_v48  ;;  %v4616_v52 = vpack.c.bf16 %v902_v46, %v901_v45  ;;  %v4879_v45 = vld [vmem:[#allocation3] sm:$0xff]  ;;  %p5193_p1 = scmp.lt.s32.totalorder %s3841_s23, %s3841_s23 }
 0x60e   :  { %v754_v51 = vsel %vm753_vm3, %v750_v50, %v746_v49  ;;  %v3865_v49 = vld [vmem:[#allocation12] ss:$0 sm:$0xff] }
 0x60f   :  { %864 = vrot.lane.b32.xlu1 %v5619_v61, %s5243_s27  ;;  %862 = vrot.lane.b32.xlu0 %v5602_v7, %s5243_s27 }
 0x610   :  { %3862 = vmatmul.mubr.msk.f32.vlgmr.msra.gmra.mrb[2].mxu0 %vm763_vm4, %v754_v51 }
 0x611   :  { %843 = vmatprep.mubr.f32.mxu0 %v5251_v1  ;;  %4617 = vmatpush3.bf16.msra.mxu0 %v4616_v52 }
 0x612   :  { %4618 = vmatprep.subr.bf16.mxu0 %v5249_v0 }
 0x613   :  { %866 = vrot.lane.b32.xlu0 %v5583_v2, %s5243_s27 }
 0x679   :  { %v728_v54 = vpop.permute.xlu0 %727  ;;  %v740_v57 = vpop.permute.xlu1 %739 }
 0x67a   :  { %v735_v63 = vmul.f32 %v5679_v8, %v728_v54  ;;  %v747_v3 = vmul.f32 %v5681_v60, %v740_v57  ;;  %v903_v60 = vld [vmem:[#allocation11 + $0x10] sm:$0xff] }
 0x67b   :  { %v4619_v16 = vpack.c.bf16 %v904_v14, %v903_v60 }
 0x67c   :  { %v751_v4 = vsel %vm749_vm2, %v720_v27, %v735_v63 }
 0x67d   :  { %v730_v5 = vpop.permute.xlu0 %729  ;;  %v742_v6 = vpop.permute.xlu1 %741  ;;  %v755_v59 = vsel %vm753_vm3, %v751_v4, %v747_v3  ;;  %4620 = vmatpush3.bf16.msra.mxu0 %v4619_v16 }
 0x67e   :  { %v736_v9 = vmul.f32 %v5687_v15, %v730_v5  ;;  %v748_v10 = vmul.f32 %v5689_v62, %v742_v6  ;;  %3863 = vmatmul.mubr.msk.f32.gmra.mrb[4].mxu0 %vm763_vm4, %v755_v59  ;;  %4621 = vmatprep.subr.bf16.mxu0 %v5249_v0  ;;  %v905_v15 = vld [vmem:[#allocation11 + $0x20] sm:$0xff] }
 0x67f   :  { %849 = vmatprep.mubr.f32.mxu0 %v5251_v1  ;;  %v4622_v62 = vpack.c.bf16 %v906_v17, %v905_v15 }
 0x680   :  { %v752_v12 = vsel %vm749_vm2, %v721_v47, %v736_v9 }
 0x681   :  { %v756_v8 = vsel %vm753_vm3, %v752_v12, %v748_v10  ;;  %4623 = vmatpush3.bf16.msra.mxu0 %v4622_v62  ;;  %v863_v21 = vpop.permute.xlu0 %862  ;;  %v865_v25 = vpop.permute.xlu1 %864 }
 0x682   :  { %3864 = vmatmul.mubr.msk.f32.gmra.mrb[6].mxu0 %vm763_vm4, %v756_v8  ;;  %4624 = vmatprep.subr.bf16.mxu0 %v5249_v0 }
 0x683   :  { %4434 = vmatprep.mubr.msk.f32.mxu0 %vm5250_vm0, %v5251_v1 }
 0x685   :  { %4626 = vmatpush3.bf16.msra.mxu0 %v4625_v20  ;;  %v867_v30 = vpop.permute.xlu0 %866 }
 0x6e3   :  { %v839_v13 = vpop.f32.mrb[2].mxu0 }
 0x6e4   :  { %v841_v23 = vpop.f32.mrb[3].mxu0  ;;  %v871_v24 = vmul.f32 %v863_v21, %v839_v13  ;;  %v856_v35 = vmul.f32 %v839_v13, %v5583_v2  ;;  %v1061_v21 = vld [vmem:[#allocation14] sm:$0xff] }
 0x6e5   :  { %v889_v37 = vmul.f32 %v841_v23, %v5619_v61  ;;  %v1069_v13 = vld [vmem:[#allocation14 + $0x40] sm:$0xff]  ;;  %v1064_v23 = vld [vmem:[#allocation14 + $0x18] sm:$0xff] }
 0x6e6   :  { %877 = vrot.lane.b32.xlu1 %v871_v24, %s5243_s27  ;;  %v3872_v24 = vcombine.high %v1061_v21, %v1069_v13 }
 0x6e8   :  { %1535 = vmatprep.subr.bf16.mxu0 %v3872_v24 }
 0x751   :  { %v845_v26 = vpop.f32.mrb[4].mxu0 }
 0x752   :  { %v847_v28 = vpop.f32.mrb[5].mxu0  ;;  %v872_v29 = vmul.f32 %v865_v25, %v845_v26  ;;  %v857_v41 = vmul.f32 %v845_v26, %v5602_v7  ;;  %v1072_v25 = vld [vmem:[#allocation14 + $0x58] sm:$0xff]  ;;  %v3871_v26 = vcombine.low %v1061_v21, %v1069_v13 }
 0x753   :  { %v890_v43 = vmul.f32 %v847_v28, %v5583_v2  ;;  %v3877_v28 = vcombine.low %v1064_v23, %v1072_v25  ;;  %v3870_v21 = vld [vmem:[#allocation12 + $0x2] ss:$0 sm:$0xff] }
 0x754   :  { %879 = vrot.lane.b32.xlu0 %v872_v29, %s5243_s27  ;;  %v3878_v29 = vcombine.high %v1064_v23, %v1072_v25  ;;  %v1078_v23 = vld [vmem:[#allocation14 + $0x88] sm:$0xff] }
 0x755   :  { %v851_v31 = vpop.f32.mrb[6].mxu0  ;;  %v1086_v25 = vld [vmem:[#allocation14 + $0xc8] sm:$0xff] }
 0x756   :  { %v853_v32 = vpop.f32.mrb[7].mxu0  ;;  %v873_v33 = vmul.f32 %v867_v30, %v851_v31  ;;  %v858_v27 = vmul.f32 %v851_v31, %v5619_v61  ;;  %1688 = vmatprep.subr.bf16.mxu1 %v3878_v29  ;;  %v1077_v30 = vld [vmem:[#allocation14 + $0x80] sm:$0xff] }
 0x757   :  { %v891_v44 = vmul.f32 %v853_v32, %v5602_v7  ;;  %v1085_v31 = vld [vmem:[#allocation14 + $0xc0] sm:$0xff]  ;;  %v1080_v32 = vld [vmem:[#allocation14 + $0x98] sm:$0xff]  ;;  %1689 = vmatpush1.bf16.msra.mxu1 %v3877_v28  ;;  %v1090_v28 = vld [vmem:[#allocation14 + $0xe8] sm:$0xff] }
 0x758   :  { %v878_v36 = vpop.permute.xlu1 %877  ;;  %881 = vrot.lane.b32.xlu1 %v873_v33, %s5243_s27  ;;  %v3888_v33 = vcombine.high %v1077_v30, %v1085_v31  ;;  %s5188_s27 = scalar_lea.vmem %s3841_s23, 128 }
 0x759   :  { %v886_v39 = vadd.f32 %v878_v36, %v856_v35  ;;  %v1088_v35 = vld [vmem:[#allocation14 + $0xd8] sm:$0xff]  ;;  %v3887_v36 = vcombine.low %v1077_v30, %v1085_v31  ;;  %p5189_p0 = scmp.ne.s32.totalorder %s3841_s23, %s5188_s27  ;;  %p5194_p2 = scmp.lt.s32.totalorder %s5188_s27, %s5188_s27 }
 0x75b   :  { %v892_v40 = vadd.f32 %v889_v37, %v886_v39  ;;  %v3893_v37 = vcombine.low %v1080_v32, %v1088_v35  ;;  %v3894_v39 = vcombine.high %v1080_v32, %v1088_v35  ;;  %v1094_v35 = vld [vmem:[#allocation14 + $0x108] sm:$0xff]  ;;  %p5195_p3 = por %p5194_p2, %p5193_p1 }
 0x75d   :  { %4435 = vmatmul.mubr.msk.f32.vlgmr.msra.gmra.mrb[8].mxu0 %vm365_vm1, %v892_v40  ;;  %1690 = vmatprep.subr.bf16.mxu1 %v3894_v39  ;;  %v1093_v40 = vld [vmem:[#allocation14 + $0x100] sm:$0xff]  ;;  %v1106_v39 = vld [vmem:[#allocation14 + $0x168] sm:$0xff]  ;;  %p5196_p4 = pnand %p5195_p3, %p5189_p0 }
 0x75e   :  { %4437 = vmatprep.mubr.msk.f32.mxu0 %vm5250_vm0, %v5251_v1  ;;  %1536 = vmatpush1.bf16.msra.mxu0 %v3871_v26  ;;  %v1082_v26 = vld [vmem:[#allocation14 + $0xa8] sm:$0xff] }
 0x75f   :  { %1537 = vmatprep.subr.bf16.mxu0 %v3888_v33  ;;  %1691 = vmatpush1.bf16.msra.mxu1 %v3893_v37  ;;  %v3890_v33 = vcombine.high %v1078_v23, %v1086_v25  ;;  %v1098_v37 = vld [vmem:[#allocation14 + $0x128] sm:$0xff] }
 0x762   :  { %1538 = vmatpush1.bf16.msra.mxu0 %v3887_v36  ;;  %v1102_v36 = vld [vmem:[#allocation14 + $0x148] sm:$0xff] }
 0x7c6   :  { %v880_v42 = vpop.permute.xlu0 %879 }
 0x7c7   :  { %v887_v22 = vadd.f32 %v880_v42, %v857_v41  ;;  %v1101_v41 = vld [vmem:[#allocation14 + $0x140] sm:$0xff]  ;;  %v1096_v42 = vld [vmem:[#allocation14 + $0x118] sm:$0xff] }
 0x7c9   :  { %v893_v34 = vadd.f32 %v890_v43, %v887_v22  ;;  %v3904_v43 = vcombine.high %v1093_v40, %v1101_v41  ;;  %v1104_v22 = vld [vmem:[#allocation14 + $0x158] sm:$0xff] }
 0x7ca   :  { %v882_v38 = vpop.permute.xlu1 %881 }
 0x7cb   :  { %v888_v47 = vadd.f32 %v882_v38, %v858_v27  ;;  %4438 = vmatmul.mubr.msk.f32.gmra.mrb[10].mxu0 %vm365_vm1, %v893_v34  ;;  %v3903_v27 = vcombine.low %v1093_v40, %v1101_v41  ;;  %v3909_v34 = vcombine.low %v1096_v42, %v1104_v22  ;;  %v3910_v38 = vcombine.high %v1096_v42, %v1104_v22  ;;  %v1110_v22 = vld [vmem:[#allocation14 + $0x188] sm:$0xff] }
 0x7cc   :  { %4440 = vmatprep.mubr.msk.f32.mxu0 %vm5250_vm0, %v5251_v1  ;;  %1539 = vmatprep.subr.bf16.mxu0 %v3904_v43  ;;  %v3897_v40 = vcombine.low %v1082_v26, %v1090_v28  ;;  %v3906_v42 = vcombine.high %v1094_v35, %v1102_v36  ;;  %v3914_v43 = vcombine.high %v1098_v37, %v1106_v39 }
 0x7cd   :  { %v894_v48 = vadd.f32 %v891_v44, %v888_v47  ;;  %1540 = vmatpush1.bf16.msra.mxu0 %v3903_v27  ;;  %1692 = vmatprep.subr.bf16.mxu1 %v3910_v38  ;;  %v1109_v44 = vld [vmem:[#allocation14 + $0x180] sm:$0xff]  ;;  %v1118_v27 = vld [vmem:[#allocation14 + $0x1c8] sm:$0xff] }
 0x7ce   :  { %v1117_v47 = vld [vmem:[#allocation14 + $0x1c0] sm:$0xff]  ;;  %1693 = vmatpush1.bf16.msra.mxu1 %v3909_v34  ;;  %v1114_v34 = vld [vmem:[#allocation14 + $0x1a8] sm:$0xff] }
 0x7cf   :  { %4441 = vmatmul.mubr.msk.f32.gmra.mrb[12].mxu0 %vm365_vm1, %v894_v48  ;;  %v1112_v48 = vld [vmem:[#allocation14 + $0x198] sm:$0xff]  ;;  %v1122_v38 = vld [vmem:[#allocation14 + $0x1e8] sm:$0xff] }
 0x830   :  { %v988_v50 = vpop.f32.mrb[8].mxu0 }
 0x831   :  { %v989_v51 = vadd.f32 %v3865_v49, %v988_v50  ;;  %v4436_v2 = vpop.f32.mrb[9].mxu0  ;;  %v1120_v50 = vld [vmem:[#allocation14 + $0x1d8] sm:$0xff] }
 0x832   :  { %v3925_v2 = vcombine.low %v1112_v48, %v1120_v50 }
 0x833   :  { %v1002_v46 = vadd.f32 %v4879_v45, %v989_v51  ;;  %v3919_v51 = vcombine.low %v1109_v44, %v1117_v47  ;;  %v3926_v45 = vcombine.high %v1112_v48, %v1120_v50  ;;  %v3930_v50 = vcombine.high %v1114_v34, %v1122_v38 }
 0x835   :  { %v1005_v61 = vsel %vm365_vm1, %v1002_v46, 0.0  ;;  %1694 = vmatprep.subr.bf16.mxu1 %v3926_v45  ;;  %v1068_v45 = vld [vmem:[#allocation14 + $0x38] sm:$0xff] }
 0x836   :  { %1006 = vadd.xlane.f32.xlu0 %v1005_v61  ;;  %v1070_v61 = vld [vmem:[#allocation14 + $0x48] sm:$0xff]  ;;  %1695 = vmatpush1.bf16.msra.mxu1 %v3925_v2  ;;  %v1071_v2 = vld [vmem:[#allocation14 + $0x50] sm:$0xff] }
 0x89e   :  { %v993_v52 = vpop.f32.mrb[10].mxu0 }
 0x89f   :  { %v994_v7 = vadd.f32 %v3865_v49, %v993_v52  ;;  %v4439_v54 = vpop.f32.mrb[11].mxu0  ;;  %v1066_v52 = vld [vmem:[#allocation14 + $0x28] sm:$0xff] }
 0x8a0   :  { %v1074_v54 = vld [vmem:[#allocation14 + $0x68] sm:$0xff] }
 0x8a1   :  { %v1003_v57 = vadd.f32 %v994_v7, %v5560_v53 }
 0x8a2   :  { %v998_v63 = vpop.f32.mrb[12].mxu0 }
 0x8a3   :  { %v999_v3 = vadd.f32 %v3865_v49, %v998_v63  ;;  %v4442_v4 = vpop.f32.mrb[13].mxu0  ;;  %v1008_v5 = vsel %vm365_vm1, %v1003_v57, 0.0  ;;  %v3920_v49 = vcombine.high %v1109_v44, %v1117_v47  ;;  %v3905_v44 = vcombine.low %v1094_v35, %v1102_v36  ;;  %v4724_v35 = vld [vmem:[#allocation17 + $0xc0] sm:$0xff]   ;;  %v1081_v36 = vld [vmem:[#allocation14 + $0xa0] sm:$0xff] }
 0x8a4   :  { %1009 = vadd.xlane.f32.xlu1 %v1008_v5  ;;  %v3882_v4 = vcombine.high %v1066_v52, %v1074_v54  ;;  %v3913_v47 = vcombine.low %v1098_v37, %v1106_v39  ;;  %v1089_v37 = vld [vmem:[#allocation14 + $0xe0] sm:$0xff] }
 0x8a5   :  { %v1004_v6 = vadd.f32 %v999_v3, %v5594_v11  ;;  %1541 = vmatprep.subr.bf16.mxu0 %v3920_v49  ;;  %v3881_v3 = vcombine.low %v1066_v52, %v1074_v54  ;;  %v3922_v49 = vcombine.high %v1110_v22, %v1118_v27  ;;  %v3929_v52 = vcombine.low %v1114_v34, %v1122_v38  ;;  %v1113_v38 = vld [vmem:[#allocation14 + $0x1a0] sm:$0xff] }
 0x8a6   :  { %1542 = vmatpush1.bf16.msra.mxu0 %v3919_v51  ;;  %1790 = vmatprep.subr.bf16.mxu1 %v3882_v4  ;;  %v1063_v51 = vld [vmem:[#allocation14 + $0x10] sm:$0xff]  ;;  %v1084_v4 = vld [vmem:[#allocation14 + $0xb8] sm:$0xff] }
 0x8a7   :  { %v1011_v59 = vsel %vm365_vm1, %v1004_v6, 0.0 }
 0x8a8   :  { %1012 = vadd.xlane.f32.xlu0 %v1011_v59 }
 0x8c3   :  { %v1007_v9 = vpop.xlane.xlu0 %1006 }
 0x8c4   :  { %v1015_v10 = vmul.f32 0.015625, %v1007_v9 }
 0x8c6   :  { %v5755_v12 = vsub.f32 %v1002_v46, %v1015_v10  ;;  %v1062_v46 = vld [vmem:[#allocation14 + $0x8] sm:$0xff] }
 0x8c7   :  { %v3874_v7 = vcombine.high %v1062_v46, %v1070_v61  ;;  %v3873_v63 = vcombine.low %v1062_v46, %v1070_v61  ;;  %v1076_v46 = vld [vmem:[#allocation14 + $0x78] sm:$0xff]  ;;  %v3921_v61 = vcombine.low %v1110_v22, %v1118_v27  ;;  %v3895_v27 = vcombine.low %v1081_v36, %v1089_v37 }
 0x8c8   :  { %v1021_v8 = vmul.f32 %v5755_v12, %v5755_v12  ;;  %v3886_v54 = vcombine.high %v1068_v45, %v1076_v46  ;;  %v4728_v22 = vld [vmem:[#allocation17 + $0xc8] sm:$0xff]  }
 0x8c9   :  { %1586 = vmatprep.subr.bf16.mxu0 %v3874_v7  ;;  %v3876_v7 = vcombine.high %v1063_v51, %v1071_v2 }
 0x8ca   :  { %v1024_v53 = vsel %vm365_vm1, %v1021_v8, 0.0 }
 0x8cb   :  { %1025 = vadd.xlane.f32.xlu0 %v1024_v53 }
 0x931   :  { %v1010_v60 = vpop.xlane.xlu1 %1009 }
 0x932   :  { %v1016_v14 = vmul.f32 0.015625, %v1010_v60 }
 0x934   :  { %v5760_v16 = vsub.f32 %v1003_v57, %v1016_v14  ;;  %v5254_v57 = vmov 0  }
 0x935   :  { %v1013_v15 = vpop.xlane.xlu0 %1012  ;;  %1567 = vmatprep.mubr.bf16.mxu0 %v5254_v57  ;;  %1720 = vmatprep.mubr.bf16.mxu1 %v5254_v57 }
 0x936   :  { %v1017_v17 = vmul.f32 0.015625, %v1013_v15  ;;  %v1022_v11 = vmul.f32 %v5760_v16, %v5760_v16 }
 0x938   :  { %v5764_v62 = vsub.f32 %v1004_v6, %v1017_v17  ;;  %v1027_v18 = vsel %vm365_vm1, %v1022_v11, 0.0  ;;  %v3869_v11 = vld [vmem:[#allocation12 + $0x1] ss:$0 sm:$0xff] }
 0x939   :  { %1028 = vadd.xlane.f32.xlu1 %v1027_v18 }
 0x93a   :  { %v1023_v19 = vmul.f32 %v5764_v62, %v5764_v62 }
 0x93c   :  { %v1030_v20 = vsel %vm365_vm1, %v1023_v19, 0.0 }
 0x93d   :  { %1031 = vadd.xlane.f32.xlu0 %v1030_v20 }
 0x958   :  { %v1026_v5 = vpop.xlane.xlu0 %1025 }
 0x959   :  { %v1033_v6 = vmul.f32 0.015625, %v1026_v5  ;;  %v1092_v5 = vld [vmem:[#allocation14 + $0xf8] sm:$0xff] }
 0x95b   :  { %v1036_v59 = vadd.f32 1e-05, %v1033_v6  ;;  %v3875_v6 = vcombine.low %v1063_v51, %v1071_v2  ;;  %v1067_v51 = vld [vmem:[#allocation14 + $0x30] sm:$0xff] }
 0x95c   :  { %v1075_v2 = vld [vmem:[#allocation14 + $0x70] sm:$0xff] }
 0x95d   :  { %4867 = vrsqrt.f32 %v1036_v59  ;;  %v3885_v59 = vcombine.low %v1068_v45, %v1076_v46  ;;  %v3884_v46 = vcombine.high %v1067_v51, %v1075_v2 }
 0x967   :  { %v4868_v15 = vpop.eup %4867 }
 0x968   :  { %v1042_v17 = vmul.f32 %v4868_v15, %v5755_v12 }
 0x96a   :  { %v1049_v19 = vmul.f32 %v3869_v11, %v1042_v17  ;;  %v3901_v17 = vcombine.low %v1084_v4, %v1092_v5 }
 0x96c   :  { %v5774_v29 = vadd.f32 %v3870_v21, %v1049_v19  ;;  %v1111_v19 = vld [vmem:[#allocation14 + $0x190] sm:$0xff] }
 0x9c6   :  { %v1029_v9 = vpop.xlane.xlu1 %1028 }
 0x9c7   :  { %v1034_v10 = vmul.f32 0.015625, %v1029_v9 }
 0x9c9   :  { %v1037_v8 = vadd.f32 1e-05, %v1034_v10  ;;  %v3902_v10 = vcombine.high %v1084_v4, %v1092_v5 }
 0x9ca   :  { %v1032_v53 = vpop.xlane.xlu0 %1031 }
 0x9cb   :  { %4869 = vrsqrt.f32 %v1037_v8  ;;  %v1035_v60 = vmul.f32 0.015625, %v1032_v53  ;;  %v1095_v8 = vld [vmem:[#allocation14 + $0x110] sm:$0xff] }
 0x9cc   :  { %v1103_v53 = vld [vmem:[#allocation14 + $0x150] sm:$0xff] }
 0x9cd   :  { %v1038_v14 = vadd.f32 1e-05, %v1035_v60  ;;  %v1100_v60 = vld [vmem:[#allocation14 + $0x138] sm:$0xff] }
 0x9cf   :  { %4871 = vrsqrt.f32 %v1038_v14  ;;  %v1108_v14 = vld [vmem:[#allocation14 + $0x178] sm:$0xff] }
 0x9d5   :  { %v4870_v18 = vpop.eup %4869 }
 0x9d6   :  { %v1043_v20 = vmul.f32 %v4870_v18, %v5760_v16  ;;  %v3898_v16 = vcombine.high %v1082_v26, %v1090_v28  ;;  %v3918_v18 = vcombine.high %v1100_v60, %v1108_v14  ;;  %v1065_v28 = vld [vmem:[#allocation14 + $0x20] sm:$0xff] }
 0x9d8   :  { %v1050_v13 = vmul.f32 %v3869_v11, %v1043_v20  ;;  %v1119_v20 = vld [vmem:[#allocation14 + $0x1d0] sm:$0xff] }
 0x9d9   :  { %v4872_v24 = vpop.eup %4871 }
 0x9da   :  { %v5776_v30 = vadd.f32 %v3870_v21, %v1050_v13  ;;  %v1044_v31 = vmul.f32 %v4872_v24, %v5764_v62  ;;  %v3889_v62 = vcombine.low %v1078_v23, %v1086_v25  ;;  %v1124_v13 = vld [vmem:[#allocation14 + $0x1f8] sm:$0xff]  ;;  %v3907_v23 = vcombine.low %v1095_v8, %v1103_v53 }
 0x9db   :  { %v3917_v24 = vcombine.low %v1100_v60, %v1108_v14  ;;  %v3924_v25 = vcombine.high %v1111_v19, %v1119_v20  ;;  %v4716_v60 = vld [vmem:[#allocation17] sm:$0xff]   ;;  %v4717_v14 = vld [vmem:[#allocation17 + $0x48] sm:$0xff]  }
 0x9dc   :  { %v5781_v12 = vpack.c.bf16 %v5776_v30, %v5774_v29  ;;  %v1051_v32 = vmul.f32 %v3869_v11, %v1044_v31  ;;  %v3908_v11 = vcombine.high %v1095_v8, %v1103_v53  ;;  %v1073_v31 = vld [vmem:[#allocation14 + $0x60] sm:$0xff]  ;;  %v4715_v53 = vld [vmem:[#allocation17 + $0x40] sm:$0xff]  }
 0x9dd   :  { %v3879_v39 = vcombine.low %v1065_v28, %v1073_v31 }
 0x9de   :  { %3935 = vmatmul.mubr.msk.bf16.vlgmr.msra.gmra.mrb[16].mxu0 %vm365_vm1, %v5781_v12  ;;  %3941 = vmatmul.mubr.msk.bf16.vlgmr.msra.gmra.mrb[12].mxu1 %vm365_vm1, %v5781_v12  ;;  %v5787_v41 = vadd.f32 %v3870_v21, %v1051_v32  ;;  %v1116_v21 = vld [vmem:[#allocation14 + $0x1b8] sm:$0xff]  ;;  %v3923_v32 = vcombine.low %v1111_v19, %v1119_v20  ;;  %v4722_v19 = vld [vmem:[#allocation17 + $0x18] sm:$0xff]   ;;  %v4723_v20 = vld [vmem:[#allocation17 + $0x60] sm:$0xff]  }
 0x9df   :  { %1587 = vmatpush1.bf16.msra.mxu0 %v3873_v63  ;;  %1791 = vmatpush1.bf16.msra.mxu1 %v3881_v3  ;;  %v1079_v63 = vld [vmem:[#allocation14 + $0x90] sm:$0xff]  ;;  %v3934_v26 = vcombine.high %v1116_v21, %v1124_v13 }
 0x9e0   :  { %1588 = vmatprep.subr.bf16.mxu0 %v3890_v33  ;;  %1792 = vmatprep.subr.bf16.mxu1 %v3898_v16  ;;  %v5793_v48 = vpack.c.bf16 %v5787_v41, %v5787_v41  ;;  %v1087_v3 = vld [vmem:[#allocation14 + $0xd0] sm:$0xff]  ;;  %v3933_v33 = vcombine.low %v1116_v21, %v1124_v13  ;;  %v3880_v16 = vcombine.high %v1065_v28, %v1073_v31  ;;  %v4731_v13 = vld [vmem:[#allocation17 + $0x70] sm:$0xff]   ;;  %v4737_v28 = vld [vmem:[#allocation17 + $0x38] sm:$0xff]  }
 0x9e1   :  { %1577 = vmatprep.mubr.bf16.mxu0 %v5254_v57  ;;  %1730 = vmatprep.mubr.bf16.mxu1 %v5254_v57  ;;  %v3892_v9 = vcombine.high %v1079_v63, %v1087_v3  ;;  %v3891_v15 = vcombine.low %v1079_v63, %v1087_v3  ;;  %v1099_v63 = vld [vmem:[#allocation14 + $0x130] sm:$0xff]  ;;  %v4738_v31 = vld [vmem:[#allocation17 + $0x98] sm:$0xff]  }
 0x9e2   :  { %v1107_v3 = vld [vmem:[#allocation14 + $0x170] sm:$0xff] }
 0x9e3   :  { %1589 = vmatpush1.bf16.msra.mxu0 %v3889_v62  ;;  %1793 = vmatpush1.bf16.msra.mxu1 %v3897_v40  ;;  %v3896_v62 = vcombine.high %v1081_v36, %v1089_v37  ;;  %v1097_v40 = vld [vmem:[#allocation14 + $0x120] sm:$0xff]  ;;  %v3916_v5 = vcombine.high %v1099_v63, %v1107_v3  ;;  %v4725_v21 = vld [vmem:[#allocation17 + $0x20] sm:$0xff]   ;;  %v4745_v36 = vld [vmem:[#allocation17 + $0xa8] sm:$0xff]  }
 0x9e4   :  { %1590 = vmatprep.subr.bf16.mxu0 %v3906_v42  ;;  %1794 = vmatprep.subr.bf16.mxu1 %v3914_v43  ;;  %v1105_v42 = vld [vmem:[#allocation14 + $0x160] sm:$0xff]  ;;  %v4726_v43 = vld [vmem:[#allocation17 + $0x80] sm:$0xff]  }
 0x9e5   :  { %v3912_v34 = vcombine.high %v1097_v40, %v1105_v42  ;;  %v4747_v37 = vld [vmem:[#allocation17 + $0xf0] sm:$0xff]  }
 0x9e6   :  { %3936 = vmatmul.mubr.msk.bf16.gmra.mrb[20].mxu0 %vm365_vm1, %v5793_v48  ;;  %3942 = vmatmul.mubr.msk.bf16.gmra.mrb[16].mxu1 %vm365_vm1, %v5793_v48 }
 0x9e7   :  { %1591 = vmatpush1.bf16.msra.mxu0 %v3905_v44  ;;  %1795 = vmatpush1.bf16.msra.mxu1 %v3913_v47  ;;  %v1121_v44 = vld [vmem:[#allocation14 + $0x1e0] sm:$0xff]  ;;  %v4730_v47 = vld [vmem:[#allocation17 + $0x88] sm:$0xff]  }
 0x9e8   :  { %1592 = vmatprep.subr.bf16.mxu0 %v3922_v49  ;;  %1796 = vmatprep.subr.bf16.mxu1 %v3930_v50  ;;  %v3911_v49 = vcombine.low %v1097_v40, %v1105_v42  ;;  %v3928_v50 = vcombine.high %v1113_v38, %v1121_v44  ;;  %v3927_v45 = vcombine.low %v1113_v38, %v1121_v44  ;;  %v4753_v40 = vld [vmem:[#allocation17 + $0xb8] sm:$0xff]   ;;  %v4756_v42 = vld [vmem:[#allocation17 + $0x1c0] sm:$0xff]   ;;  %v1159_v38 = vsub.s32 7, %v5565_v55 }
 0x9e9   :  { %1618 = vmatprep.mubr.bf16.mxu0 %v5254_v57  ;;  %1822 = vmatprep.mubr.bf16.mxu1 %v5254_v57 }
 0x9eb   :  { %1593 = vmatpush1.bf16.msra.mxu0 %v3921_v61  ;;  %1797 = vmatpush1.bf16.msra.mxu1 %v3929_v52  ;;  %v1083_v61 = vld [vmem:[#allocation14 + $0xb0] sm:$0xff] }
 0x9ec   :  { %1637 = vmatprep.subr.bf16.mxu0 %v3876_v7  ;;  %1892 = vmatprep.subr.bf16.mxu1 %v3886_v54  ;;  %v1091_v52 = vld [vmem:[#allocation14 + $0xf0] sm:$0xff]  ;;  %v3883_v7 = vcombine.low %v1067_v51, %v1075_v2 }
 0x9ed   :  { %v3900_v54 = vcombine.high %v1083_v61, %v1091_v52  ;;  %v3899_v4 = vcombine.low %v1083_v61, %v1091_v52 }
 0x9ee   :  { %3937 = vmatmul.mubr.msk.bf16.vlgmr.msra.gmra.mrb[24].mxu0 %vm365_vm1, %v5781_v12  ;;  %3945 = vmatmul.mubr.msk.bf16.vlgmr.msra.gmra.mrb[20].mxu1 %vm365_vm1, %v5781_v12 }
 0x9ef   :  { %1638 = vmatpush1.bf16.msra.mxu0 %v3875_v6  ;;  %1893 = vmatpush1.bf16.msra.mxu1 %v3885_v59  ;;  %v1115_v6 = vld [vmem:[#allocation14 + $0x1b0] sm:$0xff] }
 0x9f0   :  { %1639 = vmatprep.subr.bf16.mxu0 %v3892_v9  ;;  %1894 = vmatprep.subr.bf16.mxu1 %v3902_v10  ;;  %v1123_v59 = vld [vmem:[#allocation14 + $0x1f0] sm:$0xff]  ;;  %v3915_v9 = vcombine.low %v1099_v63, %v1107_v3 }
 0x9f1   :  { %1628 = vmatprep.mubr.bf16.mxu0 %v5254_v57  ;;  %1832 = vmatprep.mubr.bf16.mxu1 %v5254_v57  ;;  %v3932_v10 = vcombine.high %v1115_v6, %v1123_v59  ;;  %v3931_v8 = vcombine.low %v1115_v6, %v1123_v59 }
 0x9f3   :  { %1640 = vmatpush1.bf16.msra.mxu0 %v3891_v15  ;;  %1895 = vmatpush1.bf16.msra.mxu1 %v3901_v17  ;;  %v4718_v15 = vld [vmem:[#allocation17 + $0x8] sm:$0xff]   ;;  %v4719_v17 = vld [vmem:[#allocation17 + $0x50] sm:$0xff]  }
 0x9f4   :  { %1641 = vmatprep.subr.bf16.mxu0 %v3908_v11  ;;  %1896 = vmatprep.subr.bf16.mxu1 %v3918_v18  ;;  %v4720_v11 = vld [vmem:[#allocation17 + $0x10] sm:$0xff]   ;;  %v4721_v18 = vld [vmem:[#allocation17 + $0x58] sm:$0xff]  }
 0x9f6   :  { %3938 = vmatmul.mubr.msk.bf16.gmra.mrb[28].mxu0 %vm365_vm1, %v5793_v48  ;;  %3946 = vmatmul.mubr.msk.bf16.gmra.mrb[24].mxu1 %vm365_vm1, %v5793_v48 }
 0x9f7   :  { %1642 = vmatpush1.bf16.msra.mxu0 %v3907_v23  ;;  %1897 = vmatpush1.bf16.msra.mxu1 %v3917_v24  ;;  %v4732_v23 = vld [vmem:[#allocation17 + $0xd0] sm:$0xff]  }
 0x9f8   :  { %1643 = vmatprep.subr.bf16.mxu0 %v3924_v25  ;;  %1898 = vmatprep.subr.bf16.mxu1 %v3934_v26  ;;  %v4733_v24 = vld [vmem:[#allocation17 + $0x30] sm:$0xff]   ;;  %v4736_v26 = vld [vmem:[#allocation17 + $0xd8] sm:$0xff]  }
 0x9f9   :  { %1669 = vmatprep.mubr.bf16.mxu0 %v5254_v57  ;;  %1924 = vmatprep.mubr.bf16.mxu1 %v5254_v57  ;;  %v4734_v25 = vld [vmem:[#allocation17 + $0x90] sm:$0xff]  }
 0x9fb   :  { %1644 = vmatpush1.bf16.msra.mxu0 %v3923_v32  ;;  %1899 = vmatpush1.bf16.msra.mxu1 %v3933_v33  ;;  %v4739_v32 = vld [vmem:[#allocation17 + $0xe0] sm:$0xff]  }
 0x9fc   :  { %1739 = vmatprep.subr.bf16.mxu0 %v3880_v16  ;;  %4143 = vmatprep.subr.bf16.mxu1 %v4724_v35  ;;  %v4740_v33 = vld [vmem:[#allocation17 + $0x140] sm:$0xff]   ;;  %v4743_v35 = vld [vmem:[#allocation17 + $0xe8] sm:$0xff]  }
 0x9fd   :  { %v4741_v16 = vld [vmem:[#allocation17 + $0xa0] sm:$0xff]  }
 0x9fe   :  { %3939 = vmatmul.mubr.msk.bf16.vlgmr.msra.gmra.mrb[32].mxu0 %vm365_vm1, %v5781_v12  ;;  %3949 = vmatmul.mubr.msk.bf16.vlgmr.msra.gmra.mrb[28].mxu1 %vm365_vm1, %v5781_v12 }
 0x9ff   :  { %1740 = vmatpush1.bf16.msra.mxu0 %v3879_v39  ;;  %1679 = vmatprep.mubr.bf16.mxu0 %v5254_v57  ;;  %v4749_v39 = vld [vmem:[#allocation17 + $0xb0] sm:$0xff]  }
 0xa00   :  { %1741 = vmatprep.subr.bf16.mxu0 %v3896_v62  ;;  %1934 = vmatprep.mubr.bf16.mxu1 %v5254_v57  ;;  %v4751_v62 = vld [vmem:[#allocation17 + $0xf8] sm:$0xff]  }
 0xa01   :  { %4144 = vmatpush3.bf16.msra.mxu1 %v4726_v43  ;;  %v1155_v43 = vsub.s32 6, %v5565_v55 }
 0xa02   :  { %4145 = vmatprep.subr.bf16.mxu1 %v4728_v22  ;;  %v5836_v22 = vld [vmem:[#allocation15 + $0x8] sm:$0xff] }
 0xa03   :  { %1742 = vmatpush1.bf16.msra.mxu0 %v3895_v27  ;;  %v5839_v27 = vrot.slane %v5836_v22, %v1155_v43 }
 0xa04   :  { %1743 = vmatprep.subr.bf16.mxu0 %v3912_v34  ;;  %v5841_v34 = vld [vmem:[#allocation15] sm:$0xff] }
 0xa05   :  { %4146 = vmatpush3.bf16.msra.mxu1 %v4730_v47  ;;  %v1132_v44 = vrot.slane %v5841_v34, %v5568_v56  ;;  %v5847_v47 = vrot.slane %v5841_v34, %v1155_v43  ;;  %v4748_v43 = vld [vmem:[#allocation17 + $0x150] sm:$0xff]  }
 0xa06   :  { %3940 = vmatmul.mubr.msk.bf16.gmra.mrb[36].mxu0 %vm365_vm1, %v5793_v48  ;;  %3950 = vmatmul.mubr.msk.bf16.gmra.mrb[32].mxu1 %vm365_vm1, %v5793_v48 }
 0xa07   :  { %1744 = vmatpush1.bf16.msra.mxu0 %v3911_v49  ;;  %1771 = vmatprep.mubr.bf16.mxu0 %v5254_v57  ;;  %v1136_v49 = vrot.slane %v5841_v34, %v5571_v58 }
 0xa08   :  { %1745 = vmatprep.subr.bf16.mxu0 %v3928_v50  ;;  %4147 = vmatprep.subr.bf16.mxu1 %v4732_v23  ;;  %v5854_v50 = vrot.slane %v5841_v34, %v1159_v38  ;;  %v4742_v23 = vld [vmem:[#allocation17 + $0x100] sm:$0xff]  }
 0xa09   :  { %4148 = vmatpush3.bf16.msra.mxu1 %v4734_v25 }
 0xa0a   :  { %4149 = vmatprep.subr.bf16.mxu1 %v4736_v26  ;;  %v4744_v26 = vld [vmem:[#allocation17 + $0x148] sm:$0xff]  }
 0xa0b   :  { %1746 = vmatpush1.bf16.msra.mxu0 %v3927_v45 }
 0xa0c   :  { %1841 = vmatprep.subr.bf16.mxu0 %v3884_v46 }
 0xa0d   :  { %4150 = vmatpush3.bf16.msra.mxu1 %v4738_v31 }
 0xa0e   :  { %3943 = vmatmul.mubr.msk.bf16.vlgmr.msra.gmra.mrb[40].mxu0 %vm365_vm1, %v5781_v12  ;;  %4151 = vmatprep.subr.bf16.mxu1 %v4739_v32 }
 0xa0f   :  { %1842 = vmatpush1.bf16.msra.mxu0 %v3883_v7  ;;  %1781 = vmatprep.mubr.bf16.mxu0 %v5254_v57 }
 0xa10   :  { %1843 = vmatprep.subr.bf16.mxu0 %v3900_v54 }
 0xa11   :  { %4152 = vmatpush3.bf16.msra.mxu1 %v4741_v16  ;;  %v1143_v16 = vsub.s32 3, %v5565_v55 }
 0xa12   :  { %4153 = vmatprep.subr.bf16.mxu1 %v4743_v35 }
 0xa13   :  { %1844 = vmatpush1.bf16.msra.mxu0 %v3899_v4 }
 0xa14   :  { %1845 = vmatprep.subr.bf16.mxu0 %v3916_v5 }
 0xa15   :  { %4154 = vmatpush3.bf16.msra.mxu1 %v4745_v36 }
 0xa16   :  { %3944 = vmatmul.mubr.msk.bf16.gmra.mrb[44].mxu0 %vm365_vm1, %v5793_v48  ;;  %4155 = vmatprep.subr.bf16.mxu1 %v4747_v37 }
 0xa17   :  { %1846 = vmatpush1.bf16.msra.mxu0 %v3915_v9  ;;  %1873 = vmatprep.mubr.bf16.mxu0 %v5254_v57 }
 0xa18   :  { %1847 = vmatprep.subr.bf16.mxu0 %v3932_v10 }
 0xa19   :  { %4156 = vmatpush3.bf16.msra.mxu1 %v4749_v39  ;;  %v4746_v39 = vld [vmem:[#allocation17 + $0x108] sm:$0xff]  }
 0xa1a   :  { %4157 = vmatprep.subr.bf16.mxu1 %v4751_v62 }
 0xa1b   :  { %1848 = vmatpush1.bf16.msra.mxu0 %v3931_v8 }
 0xa1c   :  { %4115 = vmatprep.subr.bf16.mxu0 %v4715_v53 }
 0xa1d   :  { %4158 = vmatpush3.bf16.msra.mxu1 %v4753_v40 }
 0xa1e   :  { %3947 = vmatmul.mubr.msk.bf16.vlgmr.msra.gmra.mrb[48].mxu0 %vm365_vm1, %v5781_v12  ;;  %v4727_v12 = vld [vmem:[#allocation17 + $0x68] sm:$0xff]   ;;  %4199 = vmatprep.subr.bf16.mxu1 %v4756_v42 }
 0xa1f   :  { %1883 = vmatprep.mubr.bf16.mxu0 %v5254_v57  ;;  %4116 = vmatpush3.bf16.msra.mxu0 %v4716_v60  ;;  %v4729_v57 = vld [vmem:[#allocation17 + $0x28] sm:$0xff]  }
 0xa20   :  { %4117 = vmatprep.subr.bf16.mxu0 %v4717_v14 }
 0xa23   :  { %4118 = vmatpush3.bf16.msra.mxu0 %v4718_v15 }
 0xa24   :  { %4119 = vmatprep.subr.bf16.mxu0 %v4719_v17 }
 0xa26   :  { %3948 = vmatmul.mubr.msk.bf16.gmra.mrb[52].mxu0 %vm365_vm1, %v5793_v48  ;;  %v4735_v48 = vld [vmem:[#allocation17 + $0x78] sm:$0xff]  }
 0xa27   :  { %4120 = vmatpush3.bf16.msra.mxu0 %v4720_v11 }
 0xa28   :  { %4121 = vmatprep.subr.bf16.mxu0 %v4721_v18 }
 0xa2b   :  { %4122 = vmatpush3.bf16.msra.mxu0 %v4722_v19 }
 0xa2c   :  { %4123 = vmatprep.subr.bf16.mxu0 %v4723_v20 }
 0xa2f   :  { %4124 = vmatpush3.bf16.msra.mxu0 %v4725_v21 }
 0xa30   :  { %4125 = vmatprep.subr.bf16.mxu0 %v4727_v12 }
 0xa33   :  { %4126 = vmatpush3.bf16.msra.mxu0 %v4729_v57 }
 0xa34   :  { %4127 = vmatprep.subr.bf16.mxu0 %v4731_v13 }
 0xa37   :  { %4128 = vmatpush3.bf16.msra.mxu0 %v4733_v24 }
 0xa38   :  { %4129 = vmatprep.subr.bf16.mxu0 %v4735_v48 }
 0xa3b   :  { %4130 = vmatpush3.bf16.msra.mxu0 %v4737_v28  ;;  %v1139_v28 = vsub.s32 2, %v5565_v55 }
 0xa3c   :  { %4171 = vmatprep.subr.bf16.mxu0 %v4740_v33 }
 0xa3d   :  { %v1140_v40 = vrot.slane %v5841_v34, %v1139_v28  ;;  %v1172_v42 = vrot.slane %v5836_v22, %v1139_v28 }
 0xab1   :  { %v1569_v51 = vpop.f32.mrb[16].mxu0  ;;  %v1722_v2 = vpop.f32.mrb[12].mxu1 }
 0xab2   :  { %v1570_v45 = vadd.f32 %v1569_v51, %v1132_v44  ;;  %v1723_v46 = vadd.f32 %v1722_v2, %v5847_v47  ;;  %v1571_v61 = vpop.f32.mrb[17].mxu0  ;;  %v1724_v52 = vpop.f32.mrb[13].mxu1  ;;  %v5874_v51 = vrot.slane %v5836_v22, %v1143_v16 }
 0xab3   :  { %v1572_v7 = vadd.f32 %v1571_v61, %v1136_v49  ;;  %v1725_v54 = vadd.f32 %v1724_v52, %v5854_v50  ;;  %v1573_v63 = vpop.f32.mrb[18].mxu0  ;;  %v1726_v3 = vpop.f32.mrb[14].mxu1 }
 0xab4   :  { %v1574_v4 = vadd.f32 %v1573_v63, %v1132_v44  ;;  %v1727_v5 = vadd.f32 %v1726_v3, %v5847_v47  ;;  %v1575_v6 = vpop.f32.mrb[19].mxu0  ;;  %v1728_v59 = vpop.f32.mrb[15].mxu1  ;;  %v1943_v8 = vmax.f32 %v1570_v45, 0.0  ;;  %v1949_v53 = vmax.f32 %v1723_v46, 0.0  ;;  %v4750_v46 = vld [vmem:[#allocation17 + $0x110] sm:$0xff]   ;;  %v4752_v3 = vld [vmem:[#allocation17 + $0x158] sm:$0xff]  }
 0xab5   :  { %v1576_v9 = vadd.f32 %v1575_v6, %v1136_v49  ;;  %v1729_v10 = vadd.f32 %v1728_v59, %v5854_v50  ;;  %v1944_v15 = vmax.f32 %v1572_v7, 0.0  ;;  %v1950_v17 = vmax.f32 %v1725_v54, 0.0 }
 0xab6   :  { %v1959_v60 = vmax.f32 %v1574_v4, 0.0  ;;  %v1965_v14 = vmax.f32 %v1727_v5, 0.0 }
 0xab7   :  { %v1960_v11 = vmax.f32 %v1576_v9, 0.0  ;;  %v1966_v18 = vmax.f32 %v1729_v10, 0.0 }
 0xab8   :  { %v1991_v19 = vpack.c.bf16 %v1959_v60, %v1943_v8  ;;  %v5860_v20 = vpack.c.bf16 %v1965_v14, %v1949_v53 }
 0xab9   :  { %v1992_v21 = vpack.c.bf16 %v1960_v11, %v1944_v15  ;;  %v5862_v12 = vpack.c.bf16 %v1966_v18, %v1950_v17  ;;  %v1579_v57 = vpop.f32.mrb[20].mxu0  ;;  %v5864_v13 = vpop.f32.mrb[16].mxu1  ;;  %v4754_v15 = vld [vmem:[#allocation17 + $0x118] sm:$0xff]  }
 0xaba   :  { %v1580_v24 = vadd.f32 %v1579_v57, %v1132_v44  ;;  %v1581_v25 = vpop.f32.mrb[21].mxu0  ;;  %v5866_v48 = vpop.f32.mrb[17].mxu1 }
 0xabb   :  { %v1582_v31 = vadd.f32 %v1581_v25, %v1136_v49  ;;  %v1583_v32 = vpop.f32.mrb[22].mxu0  ;;  %v1736_v33 = vpop.f32.mrb[18].mxu1  ;;  %3083 = vmatprep.mubr.bf16.mxu0 %v1992_v21  ;;  %v1144_v49 = vrot.slane %v5841_v34, %v1143_v16  ;;  %v4755_v21 = vld [vmem:[#allocation17 + $0x160] sm:$0xff]  }
 0xabc   :  { %v1584_v35 = vpop.f32.mrb[23].mxu0  ;;  %v1737_v36 = vpop.f32.mrb[19].mxu1  ;;  %3084 = vmatmul.mubr.bf16.vlgmr.msra.gmra.mrb[56].mxu0 %v1991_v19  ;;  %v1975_v62 = vmax.f32 %v1580_v24, 0.0 }
 0xabd   :  { %v1976_v37 = vmax.f32 %v1582_v31, 0.0  ;;  %4172 = vmatpush3.bf16.msra.mxu0 %v4742_v23  ;;  %v4757_v35 = vld [vmem:[#allocation17 + $0x120] sm:$0xff]  }
 0xabe   :  { %4173 = vmatprep.subr.bf16.mxu0 %v4744_v26  ;;  %v2007_v61 = vpack.c.bf16 %v1975_v62, %v1975_v62  ;;  %v4758_v36 = vld [vmem:[#allocation17 + $0x180] sm:$0xff]  }
 0xabf   :  { %v2008_v44 = vpack.c.bf16 %v1976_v37, %v1976_v37 }
 0xac1   :  { %4174 = vmatpush3.bf16.msra.mxu0 %v4746_v39  ;;  %v1620_v2 = vpop.f32.mrb[24].mxu0  ;;  %v1824_v45 = vpop.f32.mrb[20].mxu1  ;;  %3091 = vmatprep.mubr.bf16.mxu0 %v2008_v44  ;;  %v4759_v44 = vld [vmem:[#allocation17 + $0x168] sm:$0xff]  }
 0xac2   :  { %v1621_v52 = vadd.f32 %v1620_v2, %v1140_v40  ;;  %v1825_v7 = vadd.f32 %v1824_v45, %v1172_v42  ;;  %v1622_v54 = vpop.f32.mrb[25].mxu0  ;;  %v1826_v63 = vpop.f32.mrb[21].mxu1  ;;  %4175 = vmatprep.subr.bf16.mxu0 %v4748_v43  ;;  %v4760_v2 = vld [vmem:[#allocation17 + $0x1c8] sm:$0xff]   ;;  %v1147_v45 = vsub.s32 4, %v5565_v55 }
 0xac3   :  { %v1623_v4 = vadd.f32 %v1622_v54, %v1144_v49  ;;  %v1827_v5 = vadd.f32 %v1826_v63, %v5874_v51  ;;  %v1624_v6 = vpop.f32.mrb[26].mxu0  ;;  %v1828_v59 = vpop.f32.mrb[22].mxu1 }
 0xac4   :  { %v1625_v9 = vadd.f32 %v1624_v6, %v1140_v40  ;;  %v1829_v10 = vadd.f32 %v1828_v59, %v1172_v42  ;;  %v1626_v8 = vpop.f32.mrb[27].mxu0  ;;  %v1830_v53 = vpop.f32.mrb[23].mxu1  ;;  %3092 = vmatmul.mubr.bf16.gmra.mrb[60].mxu0 %v2007_v61  ;;  %v1945_v17 = vmax.f32 %v1621_v52, 0.0  ;;  %v1953_v11 = vmax.f32 %v1825_v7, 0.0 }
 0xac5   :  { %v1627_v60 = vadd.f32 %v1626_v8, %v1144_v49  ;;  %v1831_v14 = vadd.f32 %v1830_v53, %v5874_v51  ;;  %4176 = vmatpush3.bf16.msra.mxu0 %v4750_v46  ;;  %v1946_v57 = vmax.f32 %v1623_v4, 0.0  ;;  %v1954_v23 = vmax.f32 %v1827_v5, 0.0  ;;  %v4763_v5 = vld [vmem:[#allocation17 + $0x170] sm:$0xff]  }
 0xac6   :  { %v1961_v18 = vmax.f32 %v1625_v9, 0.0  ;;  %v1969_v19 = vmax.f32 %v1829_v10, 0.0  ;;  %4177 = vmatprep.subr.bf16.mxu0 %v4752_v3  ;;  %v1151_v7 = vsub.s32 5, %v5565_v55  ;;  %v4762_v3 = vld [vmem:[#allocation17 + $0x188] sm:$0xff]   ;;  %v5899_v9 = vrot.slane %v5836_v22, %v1159_v38  ;;  %v4764_v10 = vld [vmem:[#allocation17 + $0x1d0] sm:$0xff]   ;;  %v4800_v55 = vld [vmem:[#allocation17 + $0x2d8] sm:$0xff]  }
 0xac7   :  { %v1962_v24 = vmax.f32 %v1627_v60, 0.0  ;;  %v1970_v25 = vmax.f32 %v1831_v14, 0.0  ;;  %v4765_v60 = vld [vmem:[#allocation17 + $0x130] sm:$0xff]  }
 0xac8   :  { %v1993_v26 = vpack.c.bf16 %v1961_v18, %v1945_v17  ;;  %v5878_v28 = vpack.c.bf16 %v1969_v19, %v1953_v11  ;;  %v5894_v59 = vrot.slane %v5841_v34, %v1151_v7  ;;  %v4766_v14 = vld [vmem:[#allocation17 + $0x190] sm:$0xff]   ;;  %v4767_v19 = vld [vmem:[#allocation17 + $0x178] sm:$0xff]  }
 0xac9   :  { %v1994_v31 = vpack.c.bf16 %v1962_v24, %v1946_v57  ;;  %v5880_v32 = vpack.c.bf16 %v1970_v25, %v1954_v23  ;;  %4178 = vmatpush3.bf16.msra.mxu0 %v4754_v15  ;;  %v1630_v33 = vpop.f32.mrb[28].mxu0  ;;  %v1834_v16 = vpop.f32.mrb[24].mxu1  ;;  %v4768_v24 = vld [vmem:[#allocation17 + $0x1d8] sm:$0xff]  }
 0xaca   :  { %v1631_v37 = vadd.f32 %v1630_v33, %v1140_v40  ;;  %v5882_v39 = vadd.f32 %v1834_v16, %v1172_v42  ;;  %v1632_v62 = vpop.f32.mrb[29].mxu0  ;;  %v5884_v43 = vpop.f32.mrb[25].mxu1  ;;  %4179 = vmatprep.subr.bf16.mxu0 %v4755_v21  ;;  %v4761_v42 = vld [vmem:[#allocation17 + $0x128] sm:$0xff]  }
 0xacb   :  { %v1633_v46 = vadd.f32 %v1632_v62, %v1144_v49  ;;  %v1634_v61 = vpop.f32.mrb[30].mxu0  ;;  %v1838_v52 = vpop.f32.mrb[26].mxu1  ;;  %3131 = vmatprep.mubr.bf16.mxu1 %v1994_v31  ;;  %v1148_v49 = vrot.slane %v5841_v34, %v1147_v45 }
 0xacc   :  { %v1635_v54 = vpop.f32.mrb[31].mxu0  ;;  %v1839_v63 = vpop.f32.mrb[27].mxu1  ;;  %3132 = vmatmul.mubr.bf16.vlgmr.msra.gmra.mrb[36].mxu1 %v1993_v26  ;;  %v1977_v4 = vmax.f32 %v1631_v37, 0.0  ;;  %v4770_v37 = vld [vmem:[#allocation17 + $0x198] sm:$0xff]   ;;  %v4771_v61 = vld [vmem:[#allocation17 + $0x1e0] sm:$0xff]  }
 0xacd   :  { %v1978_v40 = vmax.f32 %v1633_v46, 0.0  ;;  %4180 = vmatpush3.bf16.msra.mxu0 %v4757_v35  ;;  %4200 = vmatpush3.bf16.msra.mxu1 %v4758_v36  ;;  %v4769_v36 = vld [vmem:[#allocation17 + $0x138] sm:$0xff]   ;;  %v4772_v52 = vld [vmem:[#allocation17 + $0x240] sm:$0xff]  }
 0xace   :  { %4181 = vmatprep.subr.bf16.mxu0 %v4759_v44  ;;  %4201 = vmatprep.subr.bf16.mxu1 %v4760_v2  ;;  %v2009_v15 = vpack.c.bf16 %v1977_v4, %v1977_v4 }
 0xacf   :  { %v2010_v6 = vpack.c.bf16 %v1978_v40, %v1978_v40 }
 0xad1   :  { %4182 = vmatpush3.bf16.msra.mxu0 %v4761_v42  ;;  %4202 = vmatpush3.bf16.msra.mxu1 %v4762_v3  ;;  %v1671_v8 = vpop.f32.mrb[32].mxu0  ;;  %v1926_v53 = vpop.f32.mrb[28].mxu1 }
 0xad2   :  { %v1672_v17 = vadd.f32 %v1671_v8, %v1148_v49  ;;  %v1927_v11 = vadd.f32 %v1926_v53, %v5839_v27  ;;  %3139 = vmatprep.mubr.bf16.mxu1 %v2010_v6  ;;  %v1673_v18 = vpop.f32.mrb[33].mxu0  ;;  %v1928_v34 = vpop.f32.mrb[29].mxu1  ;;  %4183 = vmatprep.subr.bf16.mxu0 %v4763_v5  ;;  %v4773_v53 = vld [vmem:[#allocation17 + $0x1a0] sm:$0xff]  }
 0xad3   :  { %v1674_v21 = vadd.f32 %v1673_v18, %v5894_v59  ;;  %v1929_v38 = vadd.f32 %v1928_v34, %v5899_v9  ;;  %v1675_v57 = vpop.f32.mrb[34].mxu0  ;;  %v1930_v23 = vpop.f32.mrb[30].mxu1  ;;  %4203 = vmatprep.subr.bf16.mxu1 %v4764_v10  ;;  %v4776_v18 = vld [vmem:[#allocation17 + $0x248] sm:$0xff]  }
 0xad4   :  { %v1676_v25 = vadd.f32 %v1675_v57, %v1148_v49  ;;  %v1931_v26 = vadd.f32 %v1930_v23, %v5839_v27  ;;  %v1677_v31 = vpop.f32.mrb[35].mxu0  ;;  %v1932_v33 = vpop.f32.mrb[31].mxu1  ;;  %3140 = vmatmul.mubr.bf16.gmra.mrb[40].mxu1 %v2009_v15  ;;  %v1947_v62 = vmax.f32 %v1672_v17, 0.0  ;;  %v1957_v44 = vmax.f32 %v1927_v11, 0.0  ;;  %v4775_v11 = vld [vmem:[#allocation17 + $0x1e8] sm:$0xff]  }
 0xad5   :  { %v1678_v16 = vadd.f32 %v1677_v31, %v5894_v59  ;;  %v1933_v35 = vadd.f32 %v1932_v33, %v5899_v9  ;;  %4184 = vmatpush3.bf16.msra.mxu0 %v4765_v60  ;;  %4204 = vmatpush3.bf16.msra.mxu1 %v4766_v14  ;;  %v1948_v54 = vmax.f32 %v1674_v21, 0.0  ;;  %v1958_v63 = vmax.f32 %v1929_v38, 0.0  ;;  %v4780_v33 = vld [vmem:[#allocation17 + $0x250] sm:$0xff]  }
 0xad6   :  { %v1963_v2 = vmax.f32 %v1676_v25, 0.0  ;;  %v1973_v46 = vmax.f32 %v1931_v26, 0.0  ;;  %3227 = vmatprep.mubr.bf16.mxu1 %v5862_v12  ;;  %4185 = vmatprep.subr.bf16.mxu0 %v4767_v19  ;;  %v4774_v12 = vld [vmem:[#allocation17 + $0x200] sm:$0xff]   ;;  %v5925_v31 = vrot.slane %v5836_v22, %v5571_v58 }
 0xad7   :  { %v1964_v40 = vmax.f32 %v1678_v16, 0.0  ;;  %v1974_v42 = vmax.f32 %v1933_v35, 0.0  ;;  %4205 = vmatprep.subr.bf16.mxu1 %v4768_v24  ;;  %v4778_v24 = vld [vmem:[#allocation17 + $0x208] sm:$0xff]   ;;  %v4781_v35 = vld [vmem:[#allocation17 + $0x1b0] sm:$0xff]  }
 0xad8   :  { %v1995_v3 = vpack.c.bf16 %v1963_v2, %v1947_v62  ;;  %v5908_v4 = vpack.c.bf16 %v1973_v46, %v1957_v44  ;;  %v4784_v2 = vld [vmem:[#allocation17 + $0x258] sm:$0xff]   ;;  %v1735_v46 = vadd.f32 %v5866_v48, %v5854_v50  ;;  %v4788_v50 = vld [vmem:[#allocation17 + $0x2c0] sm:$0xff]  }
 0xad9   :  { %v1996_v5 = vpack.c.bf16 %v1964_v40, %v1948_v54  ;;  %v5910_v6 = vpack.c.bf16 %v1974_v42, %v1958_v63  ;;  %4186 = vmatpush3.bf16.msra.mxu0 %v4769_v36  ;;  %4206 = vmatpush3.bf16.msra.mxu1 %v4770_v37  ;;  %v1681_v10 = vpop.f32.mrb[36].mxu0  ;;  %v1936_v8 = vpop.f32.mrb[32].mxu1  ;;  %v4782_v36 = vld [vmem:[#allocation17 + $0x210] sm:$0xff]   ;;  %v4785_v40 = vld [vmem:[#allocation17 + $0x1b8] sm:$0xff]  }
 0xada   :  { %v1682_v60 = vadd.f32 %v1681_v10, %v1148_v49  ;;  %v5913_v14 = vadd.f32 %v1936_v8, %v5839_v27  ;;  %v1683_v15 = vpop.f32.mrb[37].mxu0  ;;  %v1938_v17 = vpop.f32.mrb[33].mxu1  ;;  %4207 = vmatprep.subr.bf16.mxu1 %v4771_v61  ;;  %4227 = vmatprep.subr.bf16.mxu0 %v4772_v52  ;;  %v4777_v27 = vld [vmem:[#allocation17 + $0x1a8] sm:$0xff]   ;;  %v4786_v42 = vld [vmem:[#allocation17 + $0x218] sm:$0xff]   ;;  %v4787_v10 = vld [vmem:[#allocation17 + $0x260] sm:$0xff]   ;;  %v1982_v48 = vmax.f32 %v1735_v46, 0.0 }
 0xadb   :  { %v1684_v34 = vadd.f32 %v1683_v15, %v5894_v59  ;;  %v5917_v19 = vadd.f32 %v1938_v17, %v5899_v9  ;;  %v1685_v21 = vpop.f32.mrb[38].mxu0  ;;  %v1940_v38 = vpop.f32.mrb[34].mxu1  ;;  %3179 = vmatprep.mubr.bf16.mxu0 %v1996_v5  ;;  %v5921_v59 = vrot.slane %v5836_v22, %v5568_v56  ;;  %v4779_v9 = vld [vmem:[#allocation17 + $0x1f0] sm:$0xff]   ;;  %v4783_v56 = vld [vmem:[#allocation17 + $0x1f8] sm:$0xff]   ;;  %v4789_v17 = vld [vmem:[#allocation17 + $0x220] sm:$0xff]  }
 0xadc   :  { %v1686_v57 = vpop.f32.mrb[39].mxu0  ;;  %v1941_v23 = vpop.f32.mrb[35].mxu1  ;;  %3180 = vmatmul.mubr.bf16.vlgmr.msra.gmra.mrb[64].mxu0 %v1995_v3  ;;  %v1979_v25 = vmax.f32 %v1682_v60, 0.0  ;;  %v4791_v21 = vld [vmem:[#allocation17 + $0x268] sm:$0xff]   ;;  %v2014_v38 = vpack.c.bf16 %v1982_v48, %v1982_v48  ;;  %v4801_v46 = vld [vmem:[#allocation17 + $0x238] sm:$0xff]  }
 0xadd   :  { %v1980_v49 = vmax.f32 %v1684_v34, 0.0  ;;  %4208 = vmatpush3.bf16.msra.mxu1 %v4773_v53  ;;  %4228 = vmatpush3.bf16.msra.mxu0 %v4774_v12  ;;  %v4790_v34 = vld [vmem:[#allocation17 + $0x280] sm:$0xff]   ;;  %v4792_v23 = vld [vmem:[#allocation17 + $0x2c8] sm:$0xff]  }
 0xade   :  { %4209 = vmatprep.subr.bf16.mxu1 %v4775_v11  ;;  %4229 = vmatprep.subr.bf16.mxu0 %v4776_v18  ;;  %v2011_v37 = vpack.c.bf16 %v1979_v25, %v1979_v25  ;;  %v1733_v11 = vadd.f32 %v5864_v13, %v5847_v47  ;;  %v4794_v25 = vld [vmem:[#allocation17 + $0x288] sm:$0xff]   ;;  %v1180_v47 = vrot.slane %v5836_v22, %v1147_v45  ;;  %v4795_v13 = vld [vmem:[#allocation17 + $0x270] sm:$0xff]  }
 0xadf   :  { %v2012_v26 = vpack.c.bf16 %v1980_v49, %v1980_v49 }
 0xae1   :  { %4210 = vmatpush3.bf16.msra.mxu1 %v4777_v27  ;;  %4230 = vmatpush3.bf16.msra.mxu0 %v4778_v24  ;;  %v1773_v16 = vpop.f32.mrb[40].mxu0  ;;  %v4793_v27 = vld [vmem:[#allocation17 + $0x228] sm:$0xff]   ;;  %v1981_v24 = vmax.f32 %v1733_v11, 0.0 }
 0xae2   :  { %v1774_v62 = vadd.f32 %v1773_v16, %v5921_v59  ;;  %3187 = vmatprep.mubr.bf16.mxu0 %v2012_v26  ;;  %v1775_v44 = vpop.f32.mrb[41].mxu0  ;;  %4211 = vmatprep.subr.bf16.mxu1 %v4779_v9  ;;  %v5946_v9 = vrot.slane %v5836_v22, %v1151_v7 }
 0xae3   :  { %v1776_v58 = vadd.f32 %v1775_v44, %v5925_v31  ;;  %v1777_v61 = vpop.f32.mrb[42].mxu0  ;;  %4231 = vmatprep.subr.bf16.mxu0 %v4780_v33  ;;  %v4797_v33 = vld [vmem:[#allocation17 + $0x230] sm:$0xff]   ;;  %v2013_v16 = vpack.c.bf16 %v1981_v24, %v1981_v24  ;;  %v4816_v24 = vld [vmem:[#allocation17 + $0x358] sm:$0xff]  }
 0xae4   :  { %v1778_v52 = vadd.f32 %v1777_v61, %v5921_v59  ;;  %v1779_v54 = vpop.f32.mrb[43].mxu0  ;;  %3188 = vmatmul.mubr.bf16.gmra.mrb[68].mxu0 %v2011_v37  ;;  %v1951_v3 = vmax.f32 %v1774_v62, 0.0  ;;  %v4798_v37 = vld [vmem:[#allocation17 + $0x290] sm:$0xff]   ;;  %v4799_v62 = vld [vmem:[#allocation17 + $0x278] sm:$0xff]  }
 0xae5   :  { %v1780_v63 = vadd.f32 %v1779_v54, %v5925_v31  ;;  %4212 = vmatpush3.bf16.msra.mxu1 %v4781_v35  ;;  %4232 = vmatpush3.bf16.msra.mxu0 %v4782_v36  ;;  %v1952_v8 = vmax.f32 %v1776_v58, 0.0 }
 0xae6   :  { %v1967_v5 = vmax.f32 %v1778_v52, 0.0  ;;  %4213 = vmatprep.subr.bf16.mxu1 %v4783_v56  ;;  %4233 = vmatprep.subr.bf16.mxu0 %v4784_v2  ;;  %v4802_v52 = vld [vmem:[#allocation17 + $0x298] sm:$0xff]  }
 0xae7   :  { %v1968_v53 = vmax.f32 %v1780_v63, 0.0 }
 0xae8   :  { %v5933_v12 = vpack.c.bf16 %v1967_v5, %v1951_v3 }
 0xae9   :  { %v2000_v60 = vpack.c.bf16 %v1968_v53, %v1952_v8  ;;  %4214 = vmatpush3.bf16.msra.mxu1 %v4785_v40  ;;  %4234 = vmatpush3.bf16.msra.mxu0 %v4786_v42  ;;  %v5935_v15 = vpop.f32.mrb[44].mxu0  ;;  %v4803_v42 = vld [vmem:[#allocation17 + $0x2e0] sm:$0xff]  }
 0xaea   :  { %v1785_v18 = vpop.f32.mrb[45].mxu0  ;;  %4235 = vmatprep.subr.bf16.mxu0 %v4787_v10  ;;  %4255 = vmatprep.subr.bf16.mxu1 %v4788_v50  ;;  %v4806_v50 = vld [vmem:[#allocation17 + $0x300] sm:$0xff]  }
 0xaeb   :  { %v1787_v57 = vpop.f32.mrb[46].mxu0  ;;  %3275 = vmatprep.mubr.bf16.mxu0 %v2000_v60  ;;  %v1786_v45 = vadd.f32 %v1785_v18, %v5925_v31  ;;  %v4804_v31 = vld [vmem:[#allocation17 + $0x340] sm:$0xff]   ;;  %v4808_v60 = vld [vmem:[#allocation17 + $0x348] sm:$0xff]  }
 0xaec   :  { %3228 = vmatmul.mubr.bf16.vlgmr.msra.gmra.mrb[44].mxu1 %v5860_v20  ;;  %v1788_v49 = vpop.f32.mrb[47].mxu0  ;;  %v4796_v20 = vld [vmem:[#allocation17 + $0x2d0] sm:$0xff]   ;;  %v4805_v53 = vld [vmem:[#allocation17 + $0x2a0] sm:$0xff]   ;;  %v4807_v18 = vld [vmem:[#allocation17 + $0x2e8] sm:$0xff]  }
 0xaed   :  { %3235 = vmatprep.mubr.bf16.mxu1 %v2014_v38  ;;  %4236 = vmatpush3.bf16.msra.mxu0 %v4789_v17  ;;  %v1984_v54 = vmax.f32 %v1786_v45, 0.0  ;;  %v4811_v57 = vld [vmem:[#allocation17 + $0x2f0] sm:$0xff]  }
 0xaee   :  { %4256 = vmatpush3.bf16.msra.mxu1 %v4790_v34  ;;  %4237 = vmatprep.subr.bf16.mxu0 %v4791_v21  ;;  %v4810_v21 = vld [vmem:[#allocation17 + $0x308] sm:$0xff]   ;;  %v4827_v45 = vld [vmem:[#allocation17 + $0x370] sm:$0xff]  }
 0xaef   :  { %4257 = vmatprep.subr.bf16.mxu1 %v4792_v23  ;;  %v2016_v17 = vpack.c.bf16 %v1984_v54, %v1984_v54  ;;  %v4814_v23 = vld [vmem:[#allocation17 + $0x310] sm:$0xff]   ;;  %v4837_v54 = vld [vmem:[#allocation17 + $0x3e8] sm:$0xff]  }
 0xaf1   :  { %4238 = vmatpush3.bf16.msra.mxu0 %v4793_v27  ;;  %v1875_v26 = vpop.f32.mrb[48].mxu0  ;;  %v4813_v27 = vld [vmem:[#allocation17 + $0x2b0] sm:$0xff]  }
 0xaf2   :  { %4258 = vmatpush3.bf16.msra.mxu1 %v4794_v25  ;;  %v1876_v35 = vadd.f32 %v1875_v26, %v1180_v47  ;;  %v1877_v36 = vpop.f32.mrb[49].mxu0  ;;  %4239 = vmatprep.subr.bf16.mxu0 %v4795_v13  ;;  %v1837_v25 = vadd.f32 %v5884_v43, %v5874_v51  ;;  %v4817_v13 = vld [vmem:[#allocation17 + $0x2b8] sm:$0xff]   ;;  %v4820_v26 = vld [vmem:[#allocation17 + $0x3c0] sm:$0xff]   ;;  %v4825_v43 = vld [vmem:[#allocation17 + $0x328] sm:$0xff]  }
 0xaf3   :  { %v1878_v44 = vadd.f32 %v1877_v36, %v5946_v9  ;;  %v1879_v56 = vpop.f32.mrb[50].mxu0  ;;  %4259 = vmatprep.subr.bf16.mxu1 %v4796_v20  ;;  %v4819_v20 = vld [vmem:[#allocation17 + $0x360] sm:$0xff]   ;;  %v4823_v36 = vld [vmem:[#allocation17 + $0x368] sm:$0xff]  }
 0xaf4   :  { %v1880_v22 = vadd.f32 %v1879_v56, %v1180_v47  ;;  %3236 = vmatmul.mubr.bf16.gmra.mrb[48].mxu1 %v2013_v16  ;;  %v1881_v7 = vpop.f32.mrb[51].mxu0  ;;  %v1955_v58 = vmax.f32 %v1876_v35, 0.0  ;;  %v4821_v16 = vld [vmem:[#allocation17 + $0x320] sm:$0xff]   ;;  %v4828_v56 = vld [vmem:[#allocation17 + $0x3d0] sm:$0xff]  }
 0xaf5   :  { %v1882_v2 = vadd.f32 %v1881_v7, %v5946_v9  ;;  %4240 = vmatpush3.bf16.msra.mxu0 %v4797_v33  ;;  %3323 = vmatprep.mubr.bf16.mxu1 %v5880_v32  ;;  %v1956_v63 = vmax.f32 %v1878_v44, 0.0  ;;  %v1784_v32 = vadd.f32 %v5935_v15, %v5921_v59  ;;  %v4809_v59 = vld [vmem:[#allocation17 + $0x2a8] sm:$0xff]   ;;  %v4812_v15 = vld [vmem:[#allocation17 + $0x350] sm:$0xff]   ;;  %v1986_v33 = vmax.f32 %v1837_v25, 0.0  ;;  %v4822_v35 = vld [vmem:[#allocation17 + $0x380] sm:$0xff]  }
 0xaf6   :  { %v1971_v61 = vmax.f32 %v1880_v22, 0.0  ;;  %4260 = vmatpush3.bf16.msra.mxu1 %v4798_v37  ;;  %4241 = vmatprep.subr.bf16.mxu0 %v4799_v62  ;;  %v4824_v37 = vld [vmem:[#allocation17 + $0x3c8] sm:$0xff]   ;;  %v1985_v44 = vmax.f32 %v5882_v39, 0.0  ;;  %v4830_v22 = vld [vmem:[#allocation17 + $0x390] sm:$0xff]   ;;  %v4834_v39 = vld [vmem:[#allocation17 + $0x398] sm:$0xff]  }
 0xaf7   :  { %v1972_v40 = vmax.f32 %v1882_v2, 0.0  ;;  %4261 = vmatprep.subr.bf16.mxu1 %v4800_v55  ;;  %v1983_v38 = vmax.f32 %v1784_v32, 0.0  ;;  %v2018_v51 = vpack.c.bf16 %v1986_v33, %v1986_v33  ;;  %v4826_v62 = vld [vmem:[#allocation17 + $0x388] sm:$0xff]   ;;  %v4829_v55 = vld [vmem:[#allocation17 + $0x330] sm:$0xff]   ;;  %v4831_v2 = vld [vmem:[#allocation17 + $0x378] sm:$0xff]  }
 0xaf8   :  { %v5952_v3 = vpack.c.bf16 %v1971_v61, %v1955_v58  ;;  %v2017_v7 = vpack.c.bf16 %v1985_v44, %v1985_v44  ;;  %v4833_v58 = vld [vmem:[#allocation17 + $0x338] sm:$0xff]  }
 0xaf9   :  { %v2004_v5 = vpack.c.bf16 %v1972_v40, %v1956_v63  ;;  %4242 = vmatpush3.bf16.msra.mxu0 %v4801_v46  ;;  %v1885_v10 = vpop.f32.mrb[52].mxu0  ;;  %v2015_v49 = vpack.c.bf16 %v1983_v38, %v1983_v38  ;;  %v4832_v46 = vld [vmem:[#allocation17 + $0x3d8] sm:$0xff]   ;;  %v4839_v40 = vld [vmem:[#allocation17 + $0x3f0] sm:$0xff]  }
 0xafa   :  { %4262 = vmatpush3.bf16.msra.mxu1 %v4802_v52  ;;  %v5956_v48 = vadd.f32 %v1885_v10, %v1180_v47  ;;  %v5958_v8 = vpop.f32.mrb[53].mxu0  ;;  %4283 = vmatprep.subr.bf16.mxu0 %v4804_v31  ;;  %v4818_v47 = vld [vmem:[#allocation17 + $0x318] sm:$0xff]   ;;  %v4835_v52 = vld [vmem:[#allocation17 + $0x3e0] sm:$0xff]  }
 0xafb   :  { %v1889_v11 = vpop.f32.mrb[54].mxu0  ;;  %4263 = vmatprep.subr.bf16.mxu1 %v4803_v42  ;;  %v4836_v31 = vld [vmem:[#allocation17 + $0x3a0] sm:$0xff]   ;;  %v4841_v10 = vld [vmem:[#allocation17 + $0x3f8] sm:$0xff]  }
 0xafc   :  { %3276 = vmatmul.mubr.bf16.vlgmr.msra.gmra.mrb[72].mxu0 %v5933_v12  ;;  %v1890_v34 = vpop.f32.mrb[55].mxu0  ;;  %v4815_v12 = vld [vmem:[#allocation17 + $0x2f8] sm:$0xff]   ;;  %v1987_v63 = vmax.f32 %v5956_v48, 0.0  ;;  %v1989_v48 = vmax.f32 %v5913_v14, 0.0 }
 0xafd   :  { %3283 = vmatprep.mubr.bf16.mxu0 %v2016_v17  ;;  %4284 = vmatpush3.bf16.msra.mxu0 %v4806_v50  ;;  %v4842_v50 = vld [vmem:[#allocation17 + $0x3b8] sm:$0xff]  }
 0xafe   :  { %4264 = vmatpush3.bf16.msra.mxu1 %v4805_v53  ;;  %4285 = vmatprep.subr.bf16.mxu0 %v4808_v60  ;;  %v2019_v42 = vpack.c.bf16 %v1987_v63, %v1987_v63 }
 0xaff   :  { %4265 = vmatprep.subr.bf16.mxu1 %v4807_v18 }
 0xb01   :  { %4286 = vmatpush3.bf16.msra.mxu0 %v4810_v21 }
 0xb02   :  { %4266 = vmatpush3.bf16.msra.mxu1 %v4809_v59  ;;  %4287 = vmatprep.subr.bf16.mxu0 %v4812_v15 }
 0xb03   :  { %4267 = vmatprep.subr.bf16.mxu1 %v4811_v57 }
 0xb04   :  { %3284 = vmatmul.mubr.bf16.gmra.mrb[76].mxu0 %v2015_v49 }
 0xb05   :  { %4288 = vmatpush3.bf16.msra.mxu0 %v4814_v23  ;;  %3371 = vmatprep.mubr.bf16.mxu0 %v2004_v5  ;;  %v4840_v5 = vld [vmem:[#allocation17 + $0x3b0] sm:$0xff]  }
 0xb06   :  { %4268 = vmatpush3.bf16.msra.mxu1 %v4813_v27  ;;  %4289 = vmatprep.subr.bf16.mxu0 %v4816_v24 }
 0xb07   :  { %4269 = vmatprep.subr.bf16.mxu1 %v4815_v12 }
 0xb09   :  { %4290 = vmatpush3.bf16.msra.mxu0 %v4818_v47 }
 0xb0a   :  { %4270 = vmatpush3.bf16.msra.mxu1 %v4817_v13  ;;  %4291 = vmatprep.subr.bf16.mxu0 %v4819_v20 }
 0xb0b   :  { %4311 = vmatprep.subr.bf16.mxu1 %v4820_v26 }
 0xb0d   :  { %3324 = vmatmul.mubr.bf16.vlgmr.msra.gmra.mrb[52].mxu1 %v5878_v28  ;;  %4292 = vmatpush3.bf16.msra.mxu0 %v4821_v16  ;;  %v1888_v28 = vadd.f32 %v5958_v8, %v5946_v9  ;;  %v2021_v8 = vpack.c.bf16 %v1989_v48, %v1989_v48 }
 0xb0e   :  { %3331 = vmatprep.mubr.bf16.mxu1 %v2018_v51  ;;  %4312 = vmatpush3.bf16.msra.mxu1 %v4822_v35 }
 0xb0f   :  { %4293 = vmatprep.subr.bf16.mxu0 %v4823_v36  ;;  %4313 = vmatprep.subr.bf16.mxu1 %v4824_v37  ;;  %v1988_v61 = vmax.f32 %v1888_v28, 0.0 }
 0xb11   :  { %4294 = vmatpush3.bf16.msra.mxu0 %v4825_v43  ;;  %v2020_v9 = vpack.c.bf16 %v1988_v61, %v1988_v61 }
 0xb12   :  { %4314 = vmatpush3.bf16.msra.mxu1 %v4826_v62  ;;  %4295 = vmatprep.subr.bf16.mxu0 %v4827_v45 }
 0xb13   :  { %4315 = vmatprep.subr.bf16.mxu1 %v4828_v56 }
 0xb15   :  { %3332 = vmatmul.mubr.bf16.gmra.mrb[56].mxu1 %v2017_v7  ;;  %4296 = vmatpush3.bf16.msra.mxu0 %v4829_v55 }
 0xb16   :  { %4316 = vmatpush3.bf16.msra.mxu1 %v4830_v22  ;;  %3419 = vmatprep.mubr.bf16.mxu1 %v5910_v6  ;;  %v4838_v6 = vld [vmem:[#allocation17 + $0x3a8] sm:$0xff]  }
 0xb17   :  { %4297 = vmatprep.subr.bf16.mxu0 %v4831_v2  ;;  %4317 = vmatprep.subr.bf16.mxu1 %v4832_v46 }
 0xb19   :  { %4298 = vmatpush3.bf16.msra.mxu0 %v4833_v58 }
 0xb1a   :  { %4318 = vmatpush3.bf16.msra.mxu1 %v4834_v39  ;;  %4627 = vmatprep.subr.bf16.mxu0 %v5249_v0 }
 0xb1b   :  { %4319 = vmatprep.subr.bf16.mxu1 %v4835_v52 }
 0xb1c   :  { %3372 = vmatmul.mubr.bf16.vlgmr.msra.gmra.mrb[80].mxu0 %v5952_v3  ;;  %v1990_v3 = vmax.f32 %v5917_v19, 0.0 }
 0xb1d   :  { %3379 = vmatprep.mubr.bf16.mxu0 %v2020_v9 }
 0xb1e   :  { %4320 = vmatpush3.bf16.msra.mxu1 %v4836_v31  ;;  %v2022_v32 = vpack.c.bf16 %v1990_v3, %v1990_v3 }
 0xb1f   :  { %4321 = vmatprep.subr.bf16.mxu1 %v4837_v54 }
 0xb22   :  { %4322 = vmatpush3.bf16.msra.mxu1 %v4838_v6 }
 0xb23   :  { %4323 = vmatprep.subr.bf16.mxu1 %v4839_v40 }
 0xb24   :  { %3380 = vmatmul.mubr.bf16.gmra.mrb[84].mxu0 %v2019_v42 }
 0xb25   :  { %4459 = vmatprep.mubr.msk.f32.mxu0 %vm5250_vm0, %v5251_v1 }
 0xb26   :  { %4324 = vmatpush3.bf16.msra.mxu1 %v4840_v5 }
 0xb27   :  { %4325 = vmatprep.subr.bf16.mxu1 %v4841_v10 }
 0xb2a   :  { %4326 = vmatpush3.bf16.msra.mxu1 %v4842_v50 }
 0xb2b   :  { %4639 = vmatprep.subr.bf16.mxu1 %v5249_v0 }
 0xb2d   :  { %3420 = vmatmul.mubr.bf16.vlgmr.msra.gmra.mrb[60].mxu1 %v5908_v4  ;;  %v3951_v4 = vld [vmem:[#allocation12 + $0x5] ss:$0 sm:$0xff] }
 0xb2e   :  { %3427 = vmatprep.mubr.bf16.mxu1 %v2022_v32 }
 0xb35   :  { %3428 = vmatmul.mubr.bf16.gmra.mrb[64].mxu1 %v2021_v8 }
 0xb36   :  { %4478 = vmatprep.mubr.msk.f32.mxu1 %vm5250_vm0, %v5251_v1 }
 0xb8f   :  { %v4131_v53 = vpop.f32.mrb[56].mxu0 }
 0xb90   :  { %v4132_v60 = vpop.f32.mrb[57].mxu0 }
 0xb91   :  { %v4133_v17 = vadd.f32 %v4132_v60, %v4131_v53  ;;  %v4134_v11 = vpop.f32.mrb[58].mxu0 }
 0xb92   :  { %v4135_v18 = vpop.f32.mrb[59].mxu0 }
 0xb93   :  { %v4136_v19 = vadd.f32 %v4135_v18, %v4134_v11  ;;  %v3086_v14 = vadd.f32 %v4133_v17, %v3951_v4 }
 0xb95   :  { %v3089_v12 = vadd.f32 %v4136_v19, %v3951_v4 }
 0xb97   :  { %v4137_v34 = vpop.f32.mrb[60].mxu0 }
 0xb98   :  { %v4138_v21 = vpop.f32.mrb[61].mxu0 }
 0xb99   :  { %v4139_v38 = vadd.f32 %v4138_v21, %v4137_v34  ;;  %v4140_v59 = vpop.f32.mrb[62].mxu0 }
 0xb9a   :  { %v4141_v15 = vpop.f32.mrb[63].mxu0 }
 0xb9b   :  { %v3094_v33 = vadd.f32 %v4139_v38, %v3951_v4 }
 0xb9f   :  { %v4159_v57 = vpop.f32.mrb[36].mxu1 }
 0xba0   :  { %v4160_v23 = vpop.f32.mrb[37].mxu1 }
 0xba1   :  { %v4161_v49 = vadd.f32 %v4160_v23, %v4159_v57  ;;  %v4162_v27 = vpop.f32.mrb[38].mxu1 }
 0xba2   :  { %v4163_v24 = vpop.f32.mrb[39].mxu1 }
 0xba3   :  { %v3134_v25 = vadd.f32 %v4161_v49, %v3086_v14  ;;  %v4164_v47 = vadd.f32 %v4163_v24, %v4162_v27 }
 0xba5   :  { %v3137_v13 = vadd.f32 %v4164_v47, %v3089_v12 }
 0xba7   :  { %v4165_v20 = vpop.f32.mrb[40].mxu1 }
 0xba8   :  { %v4166_v26 = vpop.f32.mrb[41].mxu1 }
 0xba9   :  { %v4167_v16 = vadd.f32 %v4166_v26, %v4165_v20  ;;  %v4168_v35 = vpop.f32.mrb[42].mxu1 }
 0xbaa   :  { %v4169_v36 = vpop.f32.mrb[43].mxu1 }
 0xbab   :  { %v3142_v37 = vadd.f32 %v4167_v16, %v3094_v33 }
 0xbaf   :  { %v4187_v51 = vpop.f32.mrb[64].mxu0 }
 0xbb0   :  { %v4188_v43 = vpop.f32.mrb[65].mxu0 }
 0xbb1   :  { %v4189_v62 = vadd.f32 %v4188_v43, %v4187_v51  ;;  %v4190_v45 = vpop.f32.mrb[66].mxu0 }
 0xbb2   :  { %v4191_v44 = vpop.f32.mrb[67].mxu0 }
 0xbb3   :  { %v3182_v56 = vadd.f32 %v4189_v62, %v3134_v25  ;;  %v4192_v55 = vadd.f32 %v4191_v44, %v4190_v45 }
 0xbb5   :  { %v3185_v22 = vadd.f32 %v4192_v55, %v3137_v13 }
 0xbb7   :  { %v4193_v7 = vpop.f32.mrb[68].mxu0 }
 0xbb8   :  { %v4194_v28 = vpop.f32.mrb[69].mxu0 }
 0xbb9   :  { %v4195_v2 = vadd.f32 %v4194_v28, %v4193_v7  ;;  %v4196_v46 = vpop.f32.mrb[70].mxu0 }
 0xbba   :  { %v4197_v58 = vpop.f32.mrb[71].mxu0 }
 0xbbb   :  { %v3190_v39 = vadd.f32 %v4195_v2, %v3142_v37 }
 0xbbf   :  { %v4215_v61 = vpop.f32.mrb[44].mxu1 }
 0xbc0   :  { %v4216_v52 = vpop.f32.mrb[45].mxu1 }
 0xbc1   :  { %v4217_v31 = vadd.f32 %v4216_v52, %v4215_v61  ;;  %v4218_v9 = vpop.f32.mrb[46].mxu1 }
 0xbc2   :  { %v4219_v54 = vpop.f32.mrb[47].mxu1 }
 0xbc3   :  { %v3230_v63 = vadd.f32 %v4217_v31, %v3182_v56  ;;  %v4220_v6 = vadd.f32 %v4219_v54, %v4218_v9 }
 0xbc5   :  { %v3233_v40 = vadd.f32 %v4220_v6, %v3185_v22 }
 0xbc7   :  { %v4221_v42 = vpop.f32.mrb[48].mxu1 }
 0xbc8   :  { %v4222_v5 = vpop.f32.mrb[49].mxu1 }
 0xbc9   :  { %v4223_v10 = vadd.f32 %v4222_v5, %v4221_v42  ;;  %v4224_v50 = vpop.f32.mrb[50].mxu1 }
 0xbca   :  { %v4225_v3 = vpop.f32.mrb[51].mxu1 }
 0xbcb   :  { %v3238_v32 = vadd.f32 %v4223_v10, %v3190_v39 }
 0xbcf   :  { %v4243_v48 = vpop.f32.mrb[72].mxu0 }
 0xbd0   :  { %v4244_v8 = vpop.f32.mrb[73].mxu0 }
 0xbd1   :  { %v4245_v53 = vadd.f32 %v4244_v8, %v4243_v48  ;;  %v4246_v60 = vpop.f32.mrb[74].mxu0 }
 0xbd2   :  { %v4247_v17 = vpop.f32.mrb[75].mxu0 }
 0xbd3   :  { %v3278_v11 = vadd.f32 %v4245_v53, %v3230_v63  ;;  %v4248_v18 = vadd.f32 %v4247_v17, %v4246_v60 }
 0xbd5   :  { %v3281_v19 = vadd.f32 %v4248_v18, %v3233_v40 }
 0xbd7   :  { %v4249_v34 = vpop.f32.mrb[76].mxu0 }
 0xbd8   :  { %v4250_v21 = vpop.f32.mrb[77].mxu0 }
 0xbd9   :  { %v4251_v38 = vadd.f32 %v4250_v21, %v4249_v34  ;;  %v4252_v59 = vpop.f32.mrb[78].mxu0 }
 0xbda   :  { %v4253_v15 = vpop.f32.mrb[79].mxu0 }
 0xbdb   :  { %v3286_v4 = vadd.f32 %v4251_v38, %v3238_v32 }
 0xbe0   :  { %v4271_v57 = vpop.f32.mrb[52].mxu1 }
 0xbe1   :  { %v4272_v23 = vpop.f32.mrb[53].mxu1 }
 0xbe2   :  { %v4273_v14 = vadd.f32 %v4272_v23, %v4271_v57  ;;  %v4274_v49 = vpop.f32.mrb[54].mxu1  ;;  %v3491_v23 = vld [vmem:[#allocation18] sm:$0xff] }
 0xbe3   :  { %v4275_v27 = vpop.f32.mrb[55].mxu1 }
 0xbe4   :  { %v3326_v24 = vadd.f32 %v4273_v14, %v3278_v11  ;;  %v4276_v12 = vadd.f32 %v4275_v27, %v4274_v49  ;;  %v3492_v14 = vld [vmem:[#allocation18 + $0x8] sm:$0xff]  ;;  %v3499_v27 = vld [vmem:[#allocation18 + $0x40] sm:$0xff] }
 0xbe5   :  { %v4640_v49 = vpack.c.bf16 %v3492_v14, %v3491_v23  ;;  %v3660_v23 = vld [vmem:[#allocation18 + $0xb8] sm:$0xff] }
 0xbe6   :  { %v3329_v25 = vadd.f32 %v4276_v12, %v3281_v19 }
 0xbe7   :  { %4641 = vmatpush3.bf16.msra.mxu1 %v4640_v49 }
 0xbe8   :  { %v4277_v47 = vpop.f32.mrb[56].mxu1  ;;  %4642 = vmatprep.subr.bf16.mxu1 %v5249_v0 }
 0xbe9   :  { %v4278_v13 = vpop.f32.mrb[57].mxu1 }
 0xbea   :  { %v4279_v20 = vadd.f32 %v4278_v13, %v4277_v47  ;;  %v4280_v26 = vpop.f32.mrb[58].mxu1  ;;  %v3494_v47 = vld [vmem:[#allocation18 + $0x18] sm:$0xff] }
 0xbeb   :  { %v4281_v33 = vpop.f32.mrb[59].mxu1  ;;  %v3502_v26 = vld [vmem:[#allocation18 + $0x58] sm:$0xff] }
 0xbec   :  { %v3334_v16 = vadd.f32 %v4279_v20, %v3286_v4  ;;  %v3501_v20 = vld [vmem:[#allocation18 + $0x50] sm:$0xff] }
 0xbed   :  { %v4631_v33 = vpack.c.bf16 %v3502_v26, %v3501_v20  ;;  %v3751_v20 = vld [vmem:[#allocation20 + $0x48] sm:$0xff] }
 0xbef   :  { %v4299_v35 = vpop.f32.mrb[80].mxu0 }
 0xbf0   :  { %v4300_v36 = vpop.f32.mrb[81].mxu0 }
 0xbf1   :  { %v4301_v37 = vadd.f32 %v4300_v36, %v4299_v35  ;;  %v4302_v51 = vpop.f32.mrb[82].mxu0  ;;  %v3496_v35 = vld [vmem:[#allocation18 + $0x28] sm:$0xff] }
 0xbf2   :  { %v4303_v43 = vpop.f32.mrb[83].mxu0 }
 0xbf3   :  { %v3374_v62 = vadd.f32 %v4301_v37, %v3326_v24  ;;  %v4304_v45 = vadd.f32 %v4303_v43, %v4302_v51  ;;  %v3500_v24 = vld [vmem:[#allocation18 + $0x48] sm:$0xff]  ;;  %v3503_v37 = vld [vmem:[#allocation18 + $0x60] sm:$0xff] }
 0xbf4   :  { %v4628_v12 = vpack.c.bf16 %v3500_v24, %v3499_v27  ;;  %v3504_v51 = vld [vmem:[#allocation18 + $0x68] sm:$0xff]  ;;  %v3746_v27 = vld [vmem:[#allocation20 + $0x20] sm:$0xff] }
 0xbf5   :  { %v3377_v44 = vadd.f32 %v4304_v45, %v3329_v25  ;;  %v3493_v25 = vld [vmem:[#allocation18 + $0x10] sm:$0xff]  ;;  %v4634_v43 = vpack.c.bf16 %v3504_v51, %v3503_v37  ;;  %v3498_v45 = vld [vmem:[#allocation18 + $0x38] sm:$0xff]  ;;  %v3747_v24 = vld [vmem:[#allocation20 + $0x28] sm:$0xff] }
 0xbf6   :  { %4629 = vmatpush3.bf16.msra.mxu0 %v4628_v12  ;;  %v4643_v13 = vpack.c.bf16 %v3494_v47, %v3493_v25  ;;  %v4670_v12 = vpack.c.bf16 %v3747_v24, %v3746_v27  ;;  %v3749_v25 = vld [vmem:[#allocation20 + $0x38] sm:$0xff]  ;;  %v3750_v47 = vld [vmem:[#allocation20 + $0x40] sm:$0xff]  ;;  %v3755_v37 = vld [vmem:[#allocation20 + $0x68] sm:$0xff] }
 0xbf7   :  { %v4305_v56 = vpop.f32.mrb[84].mxu0  ;;  %4630 = vmatprep.subr.bf16.mxu0 %v5249_v0  ;;  %v4676_v26 = vpack.c.bf16 %v3751_v20, %v3750_v47 }
 0xbf8   :  { %v4306_v55 = vpop.f32.mrb[85].mxu0  ;;  %4644 = vmatpush3.bf16.msra.mxu1 %v4643_v13 }
 0xbf9   :  { %v4307_v22 = vadd.f32 %v4306_v55, %v4305_v56  ;;  %v4308_v7 = vpop.f32.mrb[86].mxu0  ;;  %4645 = vmatprep.subr.bf16.mxu1 %v5249_v0  ;;  %v3505_v56 = vld [vmem:[#allocation18 + $0x70] sm:$0xff]  ;;  %v3506_v55 = vld [vmem:[#allocation18 + $0x78] sm:$0xff] }
 0xbfa   :  { %v4309_v28 = vpop.f32.mrb[87].mxu0  ;;  %4632 = vmatpush3.bf16.msra.mxu0 %v4631_v33  ;;  %v3752_v33 = vld [vmem:[#allocation20 + $0x50] sm:$0xff] }
 0xbfb   :  { %v3382_v2 = vadd.f32 %v4307_v22, %v3334_v16  ;;  %v3495_v16 = vld [vmem:[#allocation18 + $0x20] sm:$0xff]  ;;  %4633 = vmatprep.subr.bf16.mxu0 %v5249_v0  ;;  %v4637_v22 = vpack.c.bf16 %v3506_v55, %v3505_v56 }
 0xbfc   :  { %v4646_v36 = vpack.c.bf16 %v3496_v35, %v3495_v16  ;;  %v3753_v16 = vld [vmem:[#allocation20 + $0x58] sm:$0xff] }
 0xbfd   :  { %v4679_v35 = vpack.c.bf16 %v3753_v16, %v3752_v33 }
 0xbfe   :  { %4647 = vmatpush3.bf16.msra.mxu1 %v4646_v36  ;;  %4635 = vmatpush3.bf16.msra.mxu0 %v4634_v43  ;;  %v3754_v36 = vld [vmem:[#allocation20 + $0x60] sm:$0xff]  ;;  %v3756_v43 = vld [vmem:[#allocation20 + $0x70] sm:$0xff] }
 0xbff   :  { %4648 = vmatprep.subr.bf16.mxu1 %v5249_v0  ;;  %4636 = vmatprep.subr.bf16.mxu0 %v5249_v0  ;;  %v4682_v51 = vpack.c.bf16 %v3755_v37, %v3754_v36 }
 0xc00   :  { %v4327_v46 = vpop.f32.mrb[60].mxu1 }
 0xc01   :  { %v4328_v58 = vpop.f32.mrb[61].mxu1 }
 0xc02   :  { %v4329_v39 = vadd.f32 %v4328_v58, %v4327_v46  ;;  %v4330_v61 = vpop.f32.mrb[62].mxu1  ;;  %4638 = vmatpush3.bf16.msra.mxu0 %v4637_v22 }
 0xc03   :  { %v4331_v52 = vpop.f32.mrb[63].mxu1  ;;  %4651 = vmatprep.subr.bf16.mxu0 %v5249_v0 }
 0xc04   :  { %v3422_v31 = vadd.f32 %v4329_v39, %v3374_v62  ;;  %v4332_v9 = vadd.f32 %v4331_v52, %v4330_v61  ;;  %v3497_v62 = vld [vmem:[#allocation18 + $0x30] sm:$0xff] }
 0xc06   :  { %v3425_v54 = vadd.f32 %v4332_v9, %v3377_v44  ;;  %v3435_v63 = vadd.f32 %v3422_v31, %v5774_v29  ;;  %v4649_v44 = vpack.c.bf16 %v3498_v45, %v3497_v62  ;;  %v3757_v62 = vld [vmem:[#allocation20 + $0x78] sm:$0xff] }
 0xc07   :  { %v4685_v45 = vpack.c.bf16 %v3757_v62, %v3756_v43 }
 0xc08   :  { %v4333_v6 = vpop.f32.mrb[64].mxu1  ;;  %v3438_v40 = vsel %vm365_vm1, %v3435_v63, 0.0  ;;  %v3436_v42 = vadd.f32 %v3425_v54, %v5776_v30  ;;  %4650 = vmatpush3.bf16.msra.mxu1 %v4649_v44  ;;  %v4080_v54 = vld [vmem:[#allocation12 + $0x3] ss:$0 sm:$0xff] }
 0xc09   :  { %v4334_v5 = vpop.f32.mrb[65].mxu1  ;;  %3439 = vadd.xlane.f32.xlu0 %v3438_v40  ;;  %4663 = vmatprep.subr.bf16.mxu1 %v5249_v0  ;;  %v3743_v40 = vld [vmem:[#allocation20 + $0x8] sm:$0xff] }
 0xc0a   :  { %v4335_v10 = vadd.f32 %v4334_v5, %v4333_v6  ;;  %v4336_v50 = vpop.f32.mrb[66].mxu1  ;;  %v3441_v3 = vsel %vm365_vm1, %v3436_v42, 0.0  ;;  %v3742_v6 = vld [vmem:[#allocation20] sm:$0xff]  ;;  %v4081_v5 = vld [vmem:[#allocation12 + $0x4] ss:$0 sm:$0xff] }
 0xc0b   :  { %v4337_v32 = vpop.f32.mrb[67].mxu1  ;;  %3442 = vadd.xlane.f32.xlu1 %v3441_v3  ;;  %v3653_v3 = vld [vmem:[#allocation18 + $0x80] sm:$0xff] }
 0xc0c   :  { %v3430_v48 = vadd.f32 %v4335_v10, %v3382_v2  ;;  %v3654_v32 = vld [vmem:[#allocation18 + $0x88] sm:$0xff] }
 0xc0e   :  { %v3437_v8 = vadd.f32 %v3430_v48, %v5787_v41  ;;  %v4664_v48 = vpack.c.bf16 %v3743_v40, %v3742_v6 }
 0xc10   :  { %v3444_v53 = vsel %vm365_vm1, %v3437_v8, 0.0 }
 0xc11   :  { %3445 = vadd.xlane.f32.xlu1 %v3444_v53 }
 0xc96   :  { %v3440_v29 = vpop.xlane.xlu0 %3439 }
 0xc97   :  { %v3447_v60 = vmul.f32 0.015625, %v3440_v29  ;;  %v3744_v29 = vld [vmem:[#allocation20 + $0x10] sm:$0xff] }
 0xc98   :  { %v3443_v17 = vpop.xlane.xlu1 %3442 }
 0xc99   :  { %v5985_v11 = vsub.f32 %v3435_v63, %v3447_v60  ;;  %v3448_v30 = vmul.f32 0.015625, %v3443_v17  ;;  %v3745_v60 = vld [vmem:[#allocation20 + $0x18] sm:$0xff]  ;;  %v4652_v17 = vpack.c.bf16 %v3654_v32, %v3653_v3 }
 0xc9b   :  { %v5987_v18 = vsub.f32 %v3436_v42, %v3448_v30  ;;  %v3453_v19 = vmul.f32 %v5985_v11, %v5985_v11 }
 0xc9d   :  { %v3456_v34 = vsel %vm365_vm1, %v3453_v19, 0.0  ;;  %v3454_v21 = vmul.f32 %v5987_v18, %v5987_v18  ;;  %v3656_v19 = vld [vmem:[#allocation18 + $0x98] sm:$0xff] }
 0xc9e   :  { %v3446_v41 = vpop.xlane.xlu1 %3445  ;;  %3457 = vadd.xlane.f32.xlu1 %v3456_v34  ;;  %v4667_v34 = vpack.c.bf16 %v3745_v60, %v3744_v29 }
 0xc9f   :  { %v3449_v38 = vmul.f32 0.015625, %v3446_v41  ;;  %v3459_v59 = vsel %vm365_vm1, %v3454_v21, 0.0  ;;  %v3657_v21 = vld [vmem:[#allocation18 + $0xa0] sm:$0xff]  ;;  %v3658_v41 = vld [vmem:[#allocation18 + $0xa8] sm:$0xff] }
 0xca0   :  { %3460 = vadd.xlane.f32.xlu0 %v3459_v59  ;;  %v4658_v59 = vpack.c.bf16 %v3658_v41, %v3657_v21 }
 0xca1   :  { %v5995_v15 = vsub.f32 %v3437_v8, %v3449_v38 }
 0xca3   :  { %v3455_v4 = vmul.f32 %v5995_v15, %v5995_v15 }
 0xca5   :  { %v3462_v57 = vsel %vm365_vm1, %v3455_v4, 0.0 }
 0xca6   :  { %3463 = vadd.xlane.f32.xlu0 %v3462_v57  ;;  %v3659_v57 = vld [vmem:[#allocation18 + $0xb0] sm:$0xff] }
 0xca7   :  { %v4661_v14 = vpack.c.bf16 %v3660_v23, %v3659_v57 }
 0xd2b   :  { %v3458_v7 = vpop.xlane.xlu1 %3457 }
 0xd2c   :  { %v3465_v28 = vmul.f32 0.015625, %v3458_v7 }
 0xd2d   :  { %v3461_v2 = vpop.xlane.xlu0 %3460 }
 0xd2e   :  { %v3468_v46 = vadd.f32 1e-05, %v3465_v28  ;;  %v3466_v58 = vmul.f32 0.015625, %v3461_v2  ;;  %v4085_v2 = vld [vmem:[#allocation21] ss:$0 sm:$0xff] }
 0xd30   :  { %4873 = vrsqrt.f32 %v3468_v46  ;;  %v3469_v39 = vadd.f32 1e-05, %v3466_v58 }
 0xd32   :  { %4875 = vrsqrt.f32 %v3469_v39 }
 0xd33   :  { %v3464_v61 = vpop.xlane.xlu0 %3463 }
 0xd34   :  { %v3467_v52 = vmul.f32 0.015625, %v3464_v61 }
 0xd36   :  { %v3470_v31 = vadd.f32 1e-05, %v3467_v52  ;;  %v4086_v52 = vld [vmem:[#allocation21 + $0x1] ss:$0 sm:$0xff] }
 0xd38   :  { %4877 = vrsqrt.f32 %v3470_v31 }
 0xd3a   :  { %v4874_v9 = vpop.eup %4873 }
 0xd3b   :  { %v3474_v63 = vmul.f32 %v4874_v9, %v5985_v11  ;;  %v3655_v11 = vld [vmem:[#allocation18 + $0x90] sm:$0xff] }
 0xd3c   :  { %v4876_v42 = vpop.eup %4875 }
 0xd3d   :  { %v3481_v10 = vmul.f32 %v4080_v54, %v3474_v63  ;;  %v3475_v50 = vmul.f32 %v4876_v42, %v5987_v18  ;;  %v4655_v18 = vpack.c.bf16 %v3656_v19, %v3655_v11 }
 0xd3f   :  { %v3488_v8 = vadd.f32 %v4081_v5, %v3481_v10  ;;  %v3482_v53 = vmul.f32 %v4080_v54, %v3475_v50 }
 0xd41   :  { %v3489_v30 = vadd.f32 %v4081_v5, %v3482_v53  ;;  %4479 = vmatmul.mubr.msk.f32.vlgmr.msra.gmra.mrb[68].mxu1 %vm365_vm1, %v3488_v8 }
 0xd42   :  { %4665 = vmatpush3.bf16.msra.mxu1 %v4664_v48  ;;  %4532 = vmatprep.mubr.msk.f32.mxu1 %vm5250_vm0, %v5251_v1  ;;  %v4878_v38 = vpop.eup %4877 }
 0xd43   :  { %4460 = vmatmul.mubr.msk.f32.vlgmr.msra.gmra.mrb[14].mxu0 %vm365_vm1, %v3489_v30  ;;  %4666 = vmatprep.subr.bf16.mxu1 %v5249_v0  ;;  %v3476_v4 = vmul.f32 %v4878_v38, %v5995_v15  ;;  %v3748_v15 = vld [vmem:[#allocation20 + $0x30] sm:$0xff] }
 0xd44   :  { %4653 = vmatpush3.bf16.msra.mxu0 %v4652_v17  ;;  %4497 = vmatprep.mubr.msk.f32.mxu0 %vm5250_vm0, %v5251_v1  ;;  %v4673_v13 = vpack.c.bf16 %v3749_v25, %v3748_v15 }
 0xd45   :  { %4654 = vmatprep.subr.bf16.mxu0 %v5249_v0  ;;  %v3483_v49 = vmul.f32 %v4080_v54, %v3476_v4 }
 0xd46   :  { %4668 = vmatpush3.bf16.msra.mxu1 %v4667_v34 }
 0xd47   :  { %4669 = vmatprep.subr.bf16.mxu1 %v5249_v0  ;;  %v3490_v1 = vadd.f32 %v4081_v5, %v3483_v49 }
 0xd48   :  { %4656 = vmatpush3.bf16.msra.mxu0 %v4655_v18 }
 0xd49   :  { %4657 = vmatprep.subr.bf16.mxu0 %v5249_v0 }
 0xd4a   :  { %4671 = vmatpush3.bf16.msra.mxu1 %v4670_v12 }
 0xd4b   :  { %4672 = vmatprep.subr.bf16.mxu1 %v5249_v0 }
 0xd4c   :  { %4659 = vmatpush3.bf16.msra.mxu0 %v4658_v59 }
 0xd4d   :  { %4660 = vmatprep.subr.bf16.mxu0 %v5249_v0 }
 0xd4e   :  { %4674 = vmatpush3.bf16.msra.mxu1 %v4673_v13 }
 0xd4f   :  { %4675 = vmatprep.subr.bf16.mxu1 %v5249_v0 }
 0xd50   :  { %4662 = vmatpush3.bf16.msra.mxu0 %v4661_v14 }
 0xd52   :  { %4677 = vmatpush3.bf16.msra.mxu1 %v4676_v26 }
 0xd53   :  { %4498 = vmatmul.mubr.msk.f32.vlgmr.msra.gmra.mrb[88].mxu0 %vm365_vm1, %v3490_v1  ;;  %4678 = vmatprep.subr.bf16.mxu1 %v5249_v0 }
 0xd56   :  { %4680 = vmatpush3.bf16.msra.mxu1 %v4679_v35 }
 0xd57   :  { %4681 = vmatprep.subr.bf16.mxu1 %v5249_v0 }
 0xd5a   :  { %4683 = vmatpush3.bf16.msra.mxu1 %v4682_v51 }
 0xd5b   :  { %4684 = vmatprep.subr.bf16.mxu1 %v5249_v0 }
 0xd5e   :  { %4686 = vmatpush3.bf16.msra.mxu1 %v4685_v45 }
 0xe14   :  { %v3649_v44 = vpop.f32.mrb[68].mxu1 }
 0xe15   :  { %v4480_v56 = vpop.f32.mrb[69].mxu1 }
 0xe16   :  { %v3576_v55 = vpop.f32.mrb[14].mxu0 }
 0xe17   :  { %v3650_v22 = vadd.f32 %v3649_v44, %v3576_v55  ;;  %v4461_v7 = vpop.f32.mrb[15].mxu0 }
 0xe26   :  { %v3730_v28 = vpop.f32.mrb[88].mxu0 }
 0xe27   :  { %v3734_v46 = vadd.f32 %v3730_v28, %v3650_v22  ;;  %v4499_v58 = vpop.f32.mrb[89].mxu0 }
 0xe29   :  { %v3740_v39 = vadd.f32 %v4085_v2, %v3734_v46 }
 0xe2b   :  { %v3741_v61 = vmax.f32 %v3740_v39, 0.0 }
 0xe2d   :  { %4533 = vmatmul.mubr.f32.vlgmr.msra.gmra.mrb[70].mxu1 %v3741_v61 }
 0xf00   :  { %v3829_v0 = vpop.f32.mrb[70].mxu1 }
 0xf01   :  { %v3830_v31 = vadd.f32 %v4086_v52, %v3829_v0  ;;  %v4534_v9 = vpop.f32.mrb[71].mxu1 }
 0xf03   :  { %3833 = vst [vmem:[#allocation26] sm:$0xff] %v3830_v31 }
 0xf04   :  { %5199 = shalt.err (!%p5196_p4)
}
 0xf05   :  { %s6058_s19 = sld [smem:[#allocation36_spill]] }
 0xf0b   :  { %s5200_s2 = scalar_lea.hbm %s6058_s19, 128 }
 0xf0c   :  { %p5201_p5 = scmp.ne.s32.totalorder %s6058_s19, %s5200_s2  ;;  %p5204_p6 = scmp.lt.u32.totalorder %s5200_s2, %s6058_s19 }
 0xf0e   :  { %p5206_p7 = pnand %p5204_p6, %p5201_p5 }
 0xf10   :  { %5209 = shalt.err (!%p5206_p7)
}
 0xf11   :  { %3843 = dma.vmem_to_hbm [thread:$0]  %s3841_s23, 128, %s6058_s19, [#allocation5]  }
 0xf12   :  { %5226 = dma.done.wait [#allocation5], 128  }
 0xf13   :  { %5227 = vsyncadd [#allocation5], 4294967168 }
 0xf14   :  { %3847 = vsyncpa [#allocation4], 1 }
 0xf15   :  { %3848 = vsyncpa [#allocation7], 1 }
 0xf16   :  { %3849 = vsyncpa [#allocation10], 1 }
 0xf17   :  { %3850 = vsyncpa [#allocation13], 1 }
 0xf18   :  { %3851 = vsyncpa [#allocation16], 1 }
 0xf19   :  { %3852 = vsyncpa [#allocation19], 1 }
 0xf1a   :  { %3853 = vsyncpa [#allocation22], 1 }
 0xf1b   :  { %3854 = vsyncpa [#allocation25], 1 }
 0xf1c   :  { %3855 = vsyncpa [#allocation5], 1 }

</bundles_post_ra>
